<compile_context>
chip_gen: v6e
topology: v6e:2x2x1
jax: 0.10.0
libtpu: 0.0.40
codegen_flags: <defaults>
</compile_context>

<pallas_src>
import functools

import jax
import jax.numpy as jnp
from jax.experimental import pallas as pl
from jax.experimental.pallas import tpu as pltpu


# ----------------------------------------------------------------------------
# helpers
# ----------------------------------------------------------------------------
def _full_spec(shape):
    zeros = (0,) * len(shape)
    return pl.BlockSpec(shape, lambda i, _z=zeros: _z)


def _row(v):
    return v.reshape(1, -1).astype(jnp.float32)


# ----------------------------------------------------------------------------
# Kernel A: global visual branch -- 1x1x1 conv as a single matmul on the
# spatially pre-pooled features.  bf16 operands, f32 accumulation / epilogue.
# ----------------------------------------------------------------------------
def _global_conv_kernel(x_ref, w_ref, b_ref, o_ref):
    y = jnp.dot(x_ref[...], w_ref[...], preferred_element_type=jnp.float32)
    o_ref[...] = y + b_ref[...]


def global_conv_matmul(x_pooled, conv_w, conv_b):
    M, K = x_pooled.shape
    N = conv_w.shape[1]
    x_bf = x_pooled.astype(jnp.bfloat16)
    w_bf = conv_w.astype(jnp.bfloat16)
    bias = conv_b.reshape(1, N).astype(jnp.float32)
    return pl.pallas_call(
        _global_conv_kernel,
        out_shape=jax.ShapeDtypeStruct((M, N), jnp.float32),
        grid=(1,),
        in_specs=[_full_spec((M, K)), _full_spec((K, N)), _full_spec((1, N))],
        out_specs=_full_spec((M, N)),
        compiler_params=pltpu.CompilerParams(
            dimension_semantics=("arbitrary",),
            vmem_limit_bytes=32 * 1024 * 1024),
    )(x_bf, w_bf, bias)


# ----------------------------------------------------------------------------
# Kernel B: fused coordinate branch + classifier (everything VMEM-resident).
# ----------------------------------------------------------------------------
def _coord_classifier_kernel(*refs, b, N, T2, D):
    (coords_ref, emb_ref, gf_ref,
     a_spatial_ref, temporal_sel_ref, box_mean_ref,
     ctf_w1_ref, ctf_s1_ref, ctf_b1_ref,
     ctf_w2_ref, ctf_s2_ref, ctf_b2_ref,
     ccf_wb_ref, ccf_we_ref, ccf_s_ref, ccf_b_ref,
     snf_wself_ref, snf_wsum_ref, snf_s1_ref, snf_b1_ref,
     snf_w2_ref, snf_s2_ref, snf_b2_ref,
     bff_w1_ref, bff_s1_ref, bff_b1_ref,
     bff_w2_ref, bff_s2_ref, bff_b2_ref,
     cls_w1g_ref, cls_w1c_ref, cls_b1_ref,
     cls_w2_ref, cls_b2_ref, cls_w3_ref, cls_b3_ref,
     out_ref) = refs

    f32 = jnp.float32

    # --- c_coord_to_feature layer 1 (K=4): 4 VPU FMAs, no MXU involvement ---
    x = coords_ref[...]                                  # [M2, 4]
    w1 = ctf_w1_ref[...]                                 # [4, Dh]
    h = x[:, 0:1] * w1[0:1, :]
    for c in range(1, 4):
        h = h + x[:, c:c + 1] * w1[c:c + 1, :]
    h = jnp.maximum(h * ctf_s1_ref[...] + ctf_b1_ref[...], 0.0)

    # --- c_coord_to_feature layer 2 ---
    bf = jnp.dot(h, ctf_w2_ref[...], preferred_element_type=f32)
    bf = jnp.maximum(bf * ctf_s2_ref[...] + ctf_b2_ref[...], 0.0)

    # --- c_coord_category_fusion (concat folded into split weights) ---
    bf = (jnp.dot(bf, ccf_wb_ref[...], preferred_element_type=f32)
          + jnp.dot(emb_ref[...], ccf_we_ref[...], preferred_element_type=f32))
    bf = jnp.maximum(bf * ccf_s_ref[...] + ccf_b_ref[...], 0.0)

    # --- spatial message folded into snf_w1: bf@W_self + (sum over boxes)@W_sum ---
    s_bcast = jnp.dot(a_spatial_ref[...], bf, preferred_element_type=f32)
    h = (jnp.dot(bf, snf_wself_ref[...], preferred_element_type=f32)
         + jnp.dot(s_bcast, snf_wsum_ref[...], preferred_element_type=f32))
    h = jnp.maximum(h * snf_s1_ref[...] + snf_b1_ref[...], 0.0)
    h = jnp.dot(h, snf_w2_ref[...], preferred_element_type=f32)
    bf_spatial = jnp.maximum(h * snf_s2_ref[...] + snf_b2_ref[...], 0.0)

    # --- c_box_feature_fusion layer 1: the (b*N, T2*D) reshape is expressed as
    #     sum_t (Sel_t @ bf_spatial) @ W1[t*D:(t+1)*D]  (no in-kernel reshape) ---
    BN = b * N
    acc = None
    for t in range(T2):
        rows_t = jnp.dot(temporal_sel_ref[t * BN:(t + 1) * BN, :], bf_spatial,
                         preferred_element_type=f32)                 # [BN, D]
        term = jnp.dot(rows_t, bff_w1_ref[t * D:(t + 1) * D, :],
                       preferred_element_type=f32)                   # [BN, D]
        acc = term if acc is None else acc + term
    h = jnp.maximum(acc * bff_s1_ref[...] + bff_b1_ref[...], 0.0)
    h = jnp.dot(h, bff_w2_ref[...], preferred_element_type=f32)
    box_features = jnp.maximum(h * bff_s2_ref[...] + bff_b2_ref[...], 0.0)

    # --- mean over boxes via tiny mean-matrix matmul -> [b, D] ---
    coord_ft = jnp.dot(box_mean_ref[...], box_features, preferred_element_type=f32)

    # --- classifier (concat [gf, coord_ft] folded into split cls_w1) ---
    h = (jnp.dot(gf_ref[...], cls_w1g_ref[...], preferred_element_type=f32)
         + jnp.dot(coord_ft, cls_w1c_ref[...], preferred_element_type=f32)
         + cls_b1_ref[...])
    h = jnp.maximum(h, 0.0)
    h = jnp.maximum(jnp.dot(h, cls_w2_ref[...], preferred_element_type=f32)
                    + cls_b2_ref[...], 0.0)
    out_ref[...] = (jnp.dot(h, cls_w3_ref[...], preferred_element_type=f32)
                    + cls_b3_ref[...])                                # [b, 128]


def fused_coord_classifier(inputs, *, b, N, T2, D, n_out_pad):
    in_specs = [_full_spec(x.shape) for x in inputs]
    return pl.pallas_call(
        functools.partial(_coord_classifier_kernel, b=b, N=N, T2=T2, D=D),
        out_shape=jax.ShapeDtypeStruct((b, n_out_pad), jnp.float32),
        grid=(1,),
        in_specs=in_specs,
        out_specs=_full_spec((b, n_out_pad)),
        compiler_params=pltpu.CompilerParams(dimension_semantics=("arbitrary",)),
    )(*inputs)


# ----------------------------------------------------------------------------
# Deterministic parameter initialization (module layout, [in, out] weights)
# ----------------------------------------------------------------------------
def _bn_fold(key, n, eps=1e-5):
    k1, k2, k3, k4 = jax.random.split(key, 4)
    gamma = jax.random.uniform(k1, (n,), jnp.float32, 0.5, 1.5)
    beta = 0.1 * jax.random.normal(k2, (n,), jnp.float32)
    mean = 0.1 * jax.random.normal(k3, (n,), jnp.float32)
    var = jax.random.uniform(k4, (n,), jnp.float32, 0.5, 1.5)
    scale = gamma / jnp.sqrt(var + eps)
    shift = beta - mean * scale
    return scale, shift


def init_params(key, *, nr_frames, coord_feature_dim, img_feature_dim, num_classes):
    D = coord_feature_dim
    Dh = D // 2
    T2 = nr_frames // 2
    keys = iter(jax.random.split(key, 32))

    def lin(kk, fan_in, fan_out):
        lim = 1.0 / float(fan_in) ** 0.5
        return jax.random.uniform(kk, (fan_in, fan_out), jnp.float32, -lim, lim)

    p = {}
    p['conv_w'] = lin(next(keys), 2048, 512)
    p['conv_b'] = 0.01 * jax.random.normal(next(keys), (512,), jnp.float32)
    emb = 0.1 * jax.random.normal(next(keys), (3, Dh), jnp.float32)
    p['embed'] = emb.at[0].set(0.0)                      # padding_idx=0
    p['ctf_w1'] = lin(next(keys), 4, Dh)
    p['ctf_s1'], p['ctf_b1'] = _bn_fold(next(keys), Dh)
    p['ctf_w2'] = lin(next(keys), Dh, D)
    p['ctf_s2'], p['ctf_b2'] = _bn_fold(next(keys), D)
    p['ccf_w'] = lin(next(keys), D + Dh, D)
    p['ccf_s'], p['ccf_b'] = _bn_fold(next(keys), D)
    p['snf_w1'] = lin(next(keys), 2 * D, D)
    p['snf_s1'], p['snf_b1'] = _bn_fold(next(keys), D)
    p['snf_w2'] = lin(next(keys), D, D)
    p['snf_s2'], p['snf_b2'] = _bn_fold(next(keys), D)
    p['bff_w1'] = lin(next(keys), T2 * D, D)
    p['bff_s1'], p['bff_b1'] = _bn_fold(next(keys), D)
    p['bff_w2'] = lin(next(keys), D, D)
    p['bff_s2'], p['bff_b2'] = _bn_fold(next(keys), D)
    p['cls_w1'] = lin(next(keys), D + 2 * img_feature_dim, D)
    p['cls_b1'] = 0.01 * jax.random.normal(next(keys), (D,), jnp.float32)
    p['cls_w2'] = lin(next(keys), D, 512)
    p['cls_b2'] = 0.01 * jax.random.normal(next(keys), (512,), jnp.float32)
    p['cls_w3'] = lin(next(keys), 512, num_classes)
    p['cls_b3'] = 0.01 * jax.random.normal(next(keys), (num_classes,), jnp.float32)
    return p


# ----------------------------------------------------------------------------
# Forward pass (mirrors VideoModelGlobalCoordLatent.forward)
# ----------------------------------------------------------------------------
def video_model_forward(org_features, box_categories, box_input, params, *,
                        nr_boxes, nr_frames, coord_feature_dim, img_feature_dim):
    # TODO(synk): the i3D backbone (Net) is an external module not defined in
    # the reference; org_features stands in for its feature-map output.
    b, Cin, T2, H, W = org_features.shape
    D = coord_feature_dim
    N = nr_boxes
    assert T2 == nr_frames // 2
    assert 2 * img_feature_dim == params['conv_w'].shape[1]

    # ---- global visual branch: mean over (H,W) FIRST (commutes with the
    #      1x1x1 conv), then one [b*T2, 2048] @ [2048, 512] fused matmul ----
    x_pooled = jnp.mean(org_features, axis=(3, 4))                     # [b, Cin, T2]
    x_pooled = jnp.transpose(x_pooled, (0, 2, 1)).reshape(b * T2, Cin)
    pooled = global_conv_matmul(x_pooled, params['conv_w'], params['conv_b'])  # [b*T2,512]
    # reproduce PyTorch's channel-major .view(b, T2, 512).mean(1) trick
    pooled_cm = jnp.transpose(pooled.reshape(b, T2, 2 * img_feature_dim), (0, 2, 1))
    gf = pooled_cm.reshape(b, T2, 2 * img_feature_dim).mean(axis=1)    # [b, 512]

    # ---- coordinate-branch inputs (row order = (b, n, t) as in PyTorch) ----
    M2 = b * N * T2
    BN = b * N
    coords = jnp.transpose(box_input, (0, 2, 1, 3)).reshape(M2, 4).astype(jnp.float32)
    box_cat = jnp.transpose(box_categories.astype(jnp.int32), (0, 2, 1)).reshape(-1)
    cat_emb = jnp.take(params['embed'], box_cat, axis=0).astype(jnp.float32)  # [M2, Dh]

    # ---- tiny structure matrices (replace in-kernel reshapes / reductions) ----
    idx = jnp.arange(M2)
    b_idx = idx // (N * T2)
    t_idx = idx % T2
    a_spatial = ((b_idx[:, None] == b_idx[None, :]) &
                 (t_idx[:, None] == t_idx[None, :])).astype(jnp.float32)   # [M2, M2]
    rows = jnp.arange(T2 * BN)
    temporal_sel = (idx[None, :] ==
                    ((rows % BN) * T2 + rows // BN)[:, None]).astype(jnp.float32)  # [T2*BN, M2]
    box_mean = ((jnp.arange(BN)[None, :] // N) ==
                jnp.arange(b)[:, None]).astype(jnp.float32) / float(N)     # [b, BN]

    # ---- fold the spatial message & concats into split weights ----
    w_self = params['snf_w1'][:D, :] - params['snf_w1'][D:, :] / float(N - 1)
    w_sum = params['snf_w1'][D:, :] / float(N - 1)
    ccf_wb = params['ccf_w'][:D, :]
    ccf_we = params['ccf_w'][D:, :]
    cls_w1g = params['cls_w1'][:2 * img_feature_dim, :]     # gf part (concat order [gf, coord])
    cls_w1c = params['cls_w1'][2 * img_feature_dim:, :]     # coord_ft part
    nC = params['cls_w3'].shape[1]
    n_out_pad = ((nC + 127) // 128) * 128                   # lane-dense logits slab
    cls_w3p = jnp.zeros((params['cls_w3'].shape[0], n_out_pad),
                        jnp.float32).at[:, :nC].set(params['cls_w3'])
    cls_b3p = jnp.zeros((1, n_out_pad), jnp.float32).at[0, :nC].set(params['cls_b3'])

    inputs = [
        coords, cat_emb, gf,
        a_spatial, temporal_sel, box_mean,
        params['ctf_w1'], _row(params['ctf_s1']), _row(params['ctf_b1']),
        params['ctf_w2'], _row(params['ctf_s2']), _row(params['ctf_b2']),
        ccf_wb, ccf_we, _row(params['ccf_s']), _row(params['ccf_b']),
        w_self, w_sum, _row(params['snf_s1']), _row(params['snf_b1']),
        params['snf_w2'], _row(params['snf_s2']), _row(params['snf_b2']),
        params['bff_w1'], _row(params['bff_s1']), _row(params['bff_b1']),
        params['bff_w2'], _row(params['bff_s2']), _row(params['bff_b2']),
        cls_w1g, cls_w1c, _row(params['cls_b1']),
        params['cls_w2'], _row(params['cls_b2']),
        cls_w3p, cls_b3p,
    ]
    logits_pad = fused_coord_classifier(inputs, b=b, N=N, T2=T2, D=D,
                                        n_out_pad=n_out_pad)           # [b, 128]
    return logits_pad[:, :nC]                                          # [b, nC]


# ----------------------------------------------------------------------------
if __name__ == "__main__":
    # opt: num_boxes=4, num_frames=8, img_feature_dim=256 (forced by the
    # 2*img_feature_dim == 512 conv-channel constraint), coord_feature_dim=128,
    # num_classes=10.  Feature map from i3D at small spatial size 3x3.
    b, N, T, H, W = 2, 4, 8, 3, 3
    T2 = T // 2
    D = 128
    img_dim = 256
    nC = 10

    key = jax.random.PRNGKey(0)
    k1, k2, k3, kp = jax.random.split(key, 4)
    org_features = jax.random.normal(k1, (b, 2048, T2, H, W), jnp.float32)
    box_input = jax.random.uniform(k2, (b, T2, N, 4), jnp.float32)
    box_categories = jax.random.randint(k3, (b, T2, N), 0, 3)
    video_label = jnp.zeros((b,), jnp.int32)   # unused by forward (as in PyTorch)

    params = init_params(kp, nr_frames=T, coord_feature_dim=D,
                         img_feature_dim=img_dim, num_classes=nC)

    fwd = jax.jit(functools.partial(
        video_model_forward,
        nr_boxes=N, nr_frames=T, coord_feature_dim=D, img_feature_dim=img_dim))
    out = fwd(org_features, box_categories, box_input, params)
    out = jax.block_until_ready(out)
    assert out.shape == (b, nC), out.shape
    assert bool(jnp.all(jnp.isfinite(out)))
    print("KERNEL_OK")
</pallas_src>

<mosaic_0001>
module attributes {stable_mosaic.version = 11 : i64} {
  func.func @_global_conv_kernel(%arg0: i32, %arg1: memref<8x2048xbf16, #tpu.memory_space<vmem>>, %arg2: memref<2048x512xbf16, #tpu.memory_space<vmem>>, %arg3: memref<1x512xf32, #tpu.memory_space<vmem>>, %arg4: memref<8x512xf32, #tpu.memory_space<vmem>>) attributes {dimension_semantics = [#tpu.dimension_semantics<arbitrary>], iteration_bounds = array<i64: 1>, scalar_prefetch = 0 : i64, scratch_operands = 0 : i64, tpu.core_type = #tpu.core_type<tc>, window_params = [{pipeline_mode = #tpu.pipeline_mode<synchronous>, transform_indices = @transform_0, window_bounds = array<i64: 8, 2048>}, {pipeline_mode = #tpu.pipeline_mode<synchronous>, transform_indices = @transform_1, window_bounds = array<i64: 2048, 512>}, {pipeline_mode = #tpu.pipeline_mode<synchronous>, transform_indices = @transform_2, window_bounds = array<i64: 1, 512>}, {pipeline_mode = #tpu.pipeline_mode<synchronous>, transform_indices = @transform_3, window_bounds = array<i64: 8, 512>}]} {
    %c0 = arith.constant 0 : index
    %c0_0 = arith.constant 0 : index
    %0 = vector.load %arg1[%c0, %c0_0] : memref<8x2048xbf16, #tpu.memory_space<vmem>>, vector<8x2048xbf16>
    %c0_1 = arith.constant 0 : index
    %c0_2 = arith.constant 0 : index
    %1 = vector.load %arg2[%c0_1, %c0_2] : memref<2048x512xbf16, #tpu.memory_space<vmem>>, vector<2048x512xbf16>
    %cst = arith.constant dense<0.000000e+00> : vector<8x512xf32>
    %2 = tpu.matmul %0, %1, %cst {dimension_numbers = #tpu.dot_dimension_numbers<[1], [0], [0], [1], [0, 0, 1, 1], [], []>} : vector<8x2048xbf16>, vector<2048x512xbf16>, vector<8x512xf32> -> vector<8x512xf32>
    %c0_3 = arith.constant 0 : index
    %c0_4 = arith.constant 0 : index
    %3 = vector.load %arg3[%c0_3, %c0_4] : memref<1x512xf32, #tpu.memory_space<vmem>>, vector<1x512xf32>
    %4 = vector.broadcast %3 : vector<1x512xf32> to vector<8x512xf32>
    %5 = arith.addf %2, %4 : vector<8x512xf32>
    %c0_5 = arith.constant 0 : index
    %c0_6 = arith.constant 0 : index
    %6 = vector.load %arg4[%c0_5, %c0_6] : memref<8x512xf32, #tpu.memory_space<vmem>>, vector<8x512xf32>
    tpu.vector_store %arg4[%c0_5, %c0_6], %5 {strides = array<i32>} : memref<8x512xf32, #tpu.memory_space<vmem>>, vector<8x512xf32>,
    return
  }
  func.func @transform_0(%arg0: i32) -> (i32, i32) {
    %c0_i32 = arith.constant 0 : i32
    %c0_i32_0 = arith.constant 0 : i32
    %c0_i32_1 = arith.constant 0 : i32
    return %c0_i32, %c0_i32_0 : i32, i32
  }
  func.func @transform_1(%arg0: i32) -> (i32, i32) {
    %c0_i32 = arith.constant 0 : i32
    %c0_i32_0 = arith.constant 0 : i32
    %c0_i32_1 = arith.constant 0 : i32
    return %c0_i32, %c0_i32_0 : i32, i32
  }
  func.func @transform_2(%arg0: i32) -> (i32, i32) {
    %c0_i32 = arith.constant 0 : i32
    %c0_i32_0 = arith.constant 0 : i32
    %c0_i32_1 = arith.constant 0 : i32
    return %c0_i32, %c0_i32_0 : i32, i32
  }
  func.func @transform_3(%arg0: i32) -> (i32, i32) {
    %c0_i32 = arith.constant 0 : i32
    %c0_i32_0 = arith.constant 0 : i32
    %c0_i32_1 = arith.constant 0 : i32
    return %c0_i32, %c0_i32_0 : i32, i32
  }
}

module attributes {stable_mosaic.version = 11 : i64} {
  func.func @_coord_classifier_kernel(%arg0: i32, %arg1: memref<32x4xf32, #tpu.memory_space<vmem>>, %arg2: memref<32x64xf32, #tpu.memory_space<vmem>>, %arg3: memref<2x512xf32, #tpu.memory_space<vmem>>, %arg4: memref<32x32xf32, #tpu.memory_space<vmem>>, %arg5: memref<32x32xf32, #tpu.memory_space<vmem>>, %arg6: memref<2x8xf32, #tpu.memory_space<vmem>>, %arg7: memref<4x64xf32, #tpu.memory_space<vmem>>, %arg8: memref<1x64xf32, #tpu.memory_space<vmem>>, %arg9: memref<1x64xf32, #tpu.memory_space<vmem>>, %arg10: memref<64x128xf32, #tpu.memory_space<vmem>>, %arg11: memref<1x128xf32, #tpu.memory_space<vmem>>, %arg12: memref<1x128xf32, #tpu.memory_space<vmem>>, %arg13: memref<128x128xf32, #tpu.memory_space<vmem>>, %arg14: memref<64x128xf32, #tpu.memory_space<vmem>>, %arg15: memref<1x128xf32, #tpu.memory_space<vmem>>, %arg16: memref<1x128xf32, #tpu.memory_space<vmem>>, %arg17: memref<128x128xf32, #tpu.memory_space<vmem>>, %arg18: memref<128x128xf32, #tpu.memory_space<vmem>>, %arg19: memref<1x128xf32, #tpu.memory_space<vmem>>, %arg20: memref<1x128xf32, #tpu.memory_space<vmem>>, %arg21: memref<128x128xf32, #tpu.memory_space<vmem>>, %arg22: memref<1x128xf32, #tpu.memory_space<vmem>>, %arg23: memref<1x128xf32, #tpu.memory_space<vmem>>, %arg24: memref<512x128xf32, #tpu.memory_space<vmem>>, %arg25: memref<1x128xf32, #tpu.memory_space<vmem>>, %arg26: memref<1x128xf32, #tpu.memory_space<vmem>>, %arg27: memref<128x128xf32, #tpu.memory_space<vmem>>, %arg28: memref<1x128xf32, #tpu.memory_space<vmem>>, %arg29: memref<1x128xf32, #tpu.memory_space<vmem>>, %arg30: memref<512x128xf32, #tpu.memory_space<vmem>>, %arg31: memref<128x128xf32, #tpu.memory_space<vmem>>, %arg32: memref<1x128xf32, #tpu.memory_space<vmem>>, %arg33: memref<128x512xf32, #tpu.memory_space<vmem>>, %arg34: memref<1x512xf32, #tpu.memory_space<vmem>>, %arg35: memref<512x128xf32, #tpu.memory_space<vmem>>, %arg36: memref<1x128xf32, #tpu.memory_space<vmem>>, %arg37: memref<2x128xf32, #tpu.memory_space<vmem>>) attributes {dimension_semantics = [#tpu.dimension_semantics<arbitrary>], iteration_bounds = array<i64: 1>, scalar_prefetch = 0 : i64, scratch_operands = 0 : i64, tpu.core_type = #tpu.core_type<tc>, window_params = [{pipeline_mode = #tpu.pipeline_mode<synchronous>, transform_indices = @transform_0, window_bounds = array<i64: 32, 4>}, {pipeline_mode = #tpu.pipeline_mode<synchronous>, transform_indices = @transform_1, window_bounds = array<i64: 32, 64>}, {pipeline_mode = #tpu.pipeline_mode<synchronous>, transform_indices = @transform_2, window_bounds = array<i64: 2, 512>}, {pipeline_mode = #tpu.pipeline_mode<synchronous>, transform_indices = @transform_3, window_bounds = array<i64: 32, 32>}, {pipeline_mode = #tpu.pipeline_mode<synchronous>, transform_indices = @transform_4, window_bounds = array<i64: 32, 32>}, {pipeline_mode = #tpu.pipeline_mode<synchronous>, transform_indices = @transform_5, window_bounds = array<i64: 2, 8>}, {pipeline_mode = #tpu.pipeline_mode<synchronous>, transform_indices = @transform_6, window_bounds = array<i64: 4, 64>}, {pipeline_mode = #tpu.pipeline_mode<synchronous>, transform_indices = @transform_7, window_bounds = array<i64: 1, 64>}, {pipeline_mode = #tpu.pipeline_mode<synchronous>, transform_indices = @transform_8, window_bounds = array<i64: 1, 64>}, {pipeline_mode = #tpu.pipeline_mode<synchronous>, transform_indices = @transform_9, window_bounds = array<i64: 64, 128>}, {pipeline_mode = #tpu.pipeline_mode<synchronous>, transform_indices = @transform_10, window_bounds = array<i64: 1, 128>}, {pipeline_mode = #tpu.pipeline_mode<synchronous>, transform_indices = @transform_11, window_bounds = array<i64: 1, 128>}, {pipeline_mode = #tpu.pipeline_mode<synchronous>, transform_indices = @transform_12, window_bounds = array<i64: 128, 128>}, {pipeline_mode = #tpu.pipeline_mode<synchronous>, transform_indices = @transform_13, window_bounds = array<i64: 64, 128>}, {pipeline_mode = #tpu.pipeline_mode<synchronous>, transform_indices = @transform_14, window_bounds = array<i64: 1, 128>}, {pipeline_mode = #tpu.pipeline_mode<synchronous>, transform_indices = @transform_15, window_bounds = array<i64: 1, 128>}, {pipeline_mode = #tpu.pipeline_mode<synchronous>, transform_indices = @transform_16, window_bounds = array<i64: 128, 128>}, {pipeline_mode = #tpu.pipeline_mode<synchronous>, transform_indices = @transform_17, window_bounds = array<i64: 128, 128>}, {pipeline_mode = #tpu.pipeline_mode<synchronous>, transform_indices = @transform_18, window_bounds = array<i64: 1, 128>}, {pipeline_mode = #tpu.pipeline_mode<synchronous>, transform_indices = @transform_19, window_bounds = array<i64: 1, 128>}, {pipeline_mode = #tpu.pipeline_mode<synchronous>, transform_indices = @transform_20, window_bounds = array<i64: 128, 128>}, {pipeline_mode = #tpu.pipeline_mode<synchronous>, transform_indices = @transform_21, window_bounds = array<i64: 1, 128>}, {pipeline_mode = #tpu.pipeline_mode<synchronous>, transform_indices = @transform_22, window_bounds = array<i64: 1, 128>}, {pipeline_mode = #tpu.pipeline_mode<synchronous>, transform_indices = @transform_23, window_bounds = array<i64: 512, 128>}, {pipeline_mode = #tpu.pipeline_mode<synchronous>, transform_indices = @transform_24, window_bounds = array<i64: 1, 128>}, {pipeline_mode = #tpu.pipeline_mode<synchronous>, transform_indices = @transform_25, window_bounds = array<i64: 1, 128>}, {pipeline_mode = #tpu.pipeline_mode<synchronous>, transform_indices = @transform_26, window_bounds = array<i64: 128, 128>}, {pipeline_mode = #tpu.pipeline_mode<synchronous>, transform_indices = @transform_27, window_bounds = array<i64: 1, 128>}, {pipeline_mode = #tpu.pipeline_mode<synchronous>, transform_indices = @transform_28, window_bounds = array<i64: 1, 128>}, {pipeline_mode = #tpu.pipeline_mode<synchronous>, transform_indices = @transform_29, window_bounds = array<i64: 512, 128>}, {pipeline_mode = #tpu.pipeline_mode<synchronous>, transform_indices = @transform_30, window_bounds = array<i64: 128, 128>}, {pipeline_mode = #tpu.pipeline_mode<synchronous>, transform_indices = @transform_31, window_bounds = array<i64: 1, 128>}, {pipeline_mode = #tpu.pipeline_mode<synchronous>, transform_indices = @transform_32, window_bounds = array<i64: 128, 512>}, {pipeline_mode = #tpu.pipeline_mode<synchronous>, transform_indices = @transform_33, window_bounds = array<i64: 1, 512>}, {pipeline_mode = #tpu.pipeline_mode<synchronous>, transform_indices = @transform_34, window_bounds = array<i64: 512, 128>}, {pipeline_mode = #tpu.pipeline_mode<synchronous>, transform_indices = @transform_35, window_bounds = array<i64: 1, 128>}, {pipeline_mode = #tpu.pipeline_mode<synchronous>, transform_indices = @transform_36, window_bounds = array<i64: 2, 128>}]} {
    %c0 = arith.constant 0 : index
    %c0_0 = arith.constant 0 : index
    %0 = vector.load %arg1[%c0, %c0_0] : memref<32x4xf32, #tpu.memory_space<vmem>>, vector<32x4xf32>
    %c0_1 = arith.constant 0 : index
    %c0_2 = arith.constant 0 : index
    %1 = vector.load %arg7[%c0_1, %c0_2] : memref<4x64xf32, #tpu.memory_space<vmem>>, vector<4x64xf32>
    %2 = vector.extract_strided_slice %0 {offsets = [0, 0], sizes = [32, 1], strides = [1, 1]} : vector<32x4xf32> to vector<32x1xf32>
    %3 = vector.extract_strided_slice %1 {offsets = [0, 0], sizes = [1, 64], strides = [1, 1]} : vector<4x64xf32> to vector<1x64xf32>
    %4 = vector.broadcast %2 : vector<32x1xf32> to vector<32x64xf32>
    %5 = vector.broadcast %3 : vector<1x64xf32> to vector<32x64xf32>
    %6 = arith.mulf %4, %5 : vector<32x64xf32>
    %7 = vector.extract_strided_slice %0 {offsets = [0, 1], sizes = [32, 1], strides = [1, 1]} : vector<32x4xf32> to vector<32x1xf32>
    %8 = vector.extract_strided_slice %1 {offsets = [1, 0], sizes = [1, 64], strides = [1, 1]} : vector<4x64xf32> to vector<1x64xf32>
    %9 = vector.broadcast %7 : vector<32x1xf32> to vector<32x64xf32>
    %10 = vector.broadcast %8 : vector<1x64xf32> to vector<32x64xf32>
    %11 = arith.mulf %9, %10 : vector<32x64xf32>
    %12 = arith.addf %6, %11 : vector<32x64xf32>
    %13 = vector.extract_strided_slice %0 {offsets = [0, 2], sizes = [32, 1], strides = [1, 1]} : vector<32x4xf32> to vector<32x1xf32>
    %14 = vector.extract_strided_slice %1 {offsets = [2, 0], sizes = [1, 64], strides = [1, 1]} : vector<4x64xf32> to vector<1x64xf32>
    %15 = vector.broadcast %13 : vector<32x1xf32> to vector<32x64xf32>
    %16 = vector.broadcast %14 : vector<1x64xf32> to vector<32x64xf32>
    %17 = arith.mulf %15, %16 : vector<32x64xf32>
    %18 = arith.addf %12, %17 : vector<32x64xf32>
    %19 = vector.extract_strided_slice %0 {offsets = [0, 3], sizes = [32, 1], strides = [1, 1]} : vector<32x4xf32> to vector<32x1xf32>
    %20 = vector.extract_strided_slice %1 {offsets = [3, 0], sizes = [1, 64], strides = [1, 1]} : vector<4x64xf32> to vector<1x64xf32>
    %21 = vector.broadcast %19 : vector<32x1xf32> to vector<32x64xf32>
    %22 = vector.broadcast %20 : vector<1x64xf32> to vector<32x64xf32>
    %23 = arith.mulf %21, %22 : vector<32x64xf32>
    %24 = arith.addf %18, %23 : vector<32x64xf32>
    %c0_3 = arith.constant 0 : index
    %c0_4 = arith.constant 0 : index
    %25 = vector.load %arg8[%c0_3, %c0_4] : memref<1x64xf32, #tpu.memory_space<vmem>>, vector<1x64xf32>
    %26 = vector.broadcast %25 : vector<1x64xf32> to vector<32x64xf32>
    %27 = arith.mulf %24, %26 : vector<32x64xf32>
    %c0_5 = arith.constant 0 : index
    %c0_6 = arith.constant 0 : index
    %28 = vector.load %arg9[%c0_5, %c0_6] : memref<1x64xf32, #tpu.memory_space<vmem>>, vector<1x64xf32>
    %29 = vector.broadcast %28 : vector<1x64xf32> to vector<32x64xf32>
    %30 = arith.addf %27, %29 : vector<32x64xf32>
    %cst = arith.constant 0.000000e+00 : f32
    %31 = vector.broadcast %cst : f32 to vector<32x64xf32>
    %32 = arith.maximumf %30, %31 : vector<32x64xf32>
    %c0_7 = arith.constant 0 : index
    %c0_8 = arith.constant 0 : index
    %33 = vector.load %arg10[%c0_7, %c0_8] : memref<64x128xf32, #tpu.memory_space<vmem>>, vector<64x128xf32>
    %cst_9 = arith.constant dense<0.000000e+00> : vector<32x128xf32>
    %34 = tpu.matmul %32, %33, %cst_9 {dimension_numbers = #tpu.dot_dimension_numbers<[1], [0], [0], [1], [0, 0, 1, 1], [], []>} : vector<32x64xf32>, vector<64x128xf32>, vector<32x128xf32> -> vector<32x128xf32>
    %c0_10 = arith.constant 0 : index
    %c0_11 = arith.constant 0 : index
    %35 = vector.load %arg11[%c0_10, %c0_11] : memref<1x128xf32, #tpu.memory_space<vmem>>, vector<1x128xf32>
    %36 = vector.broadcast %35 : vector<1x128xf32> to vector<32x128xf32>
    %37 = arith.mulf %34, %36 : vector<32x128xf32>
    %c0_12 = arith.constant 0 : index
    %c0_13 = arith.constant 0 : index
    %38 = vector.load %arg12[%c0_12, %c0_13] : memref<1x128xf32, #tpu.memory_space<vmem>>, vector<1x128xf32>
    %39 = vector.broadcast %38 : vector<1x128xf32> to vector<32x128xf32>
    %40 = arith.addf %37, %39 : vector<32x128xf32>
    %cst_14 = arith.constant 0.000000e+00 : f32
    %41 = vector.broadcast %cst_14 : f32 to vector<32x128xf32>
    %42 = arith.maximumf %40, %41 : vector<32x128xf32>
    %c0_15 = arith.constant 0 : index
    %c0_16 = arith.constant 0 : index
    %43 = vector.load %arg13[%c0_15, %c0_16] : memref<128x128xf32, #tpu.memory_space<vmem>>, vector<128x128xf32>
    %cst_17 = arith.constant dense<0.000000e+00> : vector<32x128xf32>
    %44 = tpu.matmul %42, %43, %cst_17 {dimension_numbers = #tpu.dot_dimension_numbers<[1], [0], [0], [1], [0, 0, 1, 1], [], []>} : vector<32x128xf32>, vector<128x128xf32>, vector<32x128xf32> -> vector<32x128xf32>
    %c0_18 = arith.constant 0 : index
    %c0_19 = arith.constant 0 : index
    %45 = vector.load %arg2[%c0_18, %c0_19] : memref<32x64xf32, #tpu.memory_space<vmem>>, vector<32x64xf32>
    %c0_20 = arith.constant 0 : index
    %c0_21 = arith.constant 0 : index
    %46 = vector.load %arg14[%c0_20, %c0_21] : memref<64x128xf32, #tpu.memory_space<vmem>>, vector<64x128xf32>
    %cst_22 = arith.constant dense<0.000000e+00> : vector<32x128xf32>
    %47 = tpu.matmul %45, %46, %cst_22 {dimension_numbers = #tpu.dot_dimension_numbers<[1], [0], [0], [1], [0, 0, 1, 1], [], []>} : vector<32x64xf32>, vector<64x128xf32>, vector<32x128xf32> -> vector<32x128xf32>
    %48 = arith.addf %44, %47 : vector<32x128xf32>
    %c0_23 = arith.constant 0 : index
    %c0_24 = arith.constant 0 : index
    %49 = vector.load %arg15[%c0_23, %c0_24] : memref<1x128xf32, #tpu.memory_space<vmem>>, vector<1x128xf32>
    %50 = vector.broadcast %49 : vector<1x128xf32> to vector<32x128xf32>
    %51 = arith.mulf %48, %50 : vector<32x128xf32>
    %c0_25 = arith.constant 0 : index
    %c0_26 = arith.constant 0 : index
    %52 = vector.load %arg16[%c0_25, %c0_26] : memref<1x128xf32, #tpu.memory_space<vmem>>, vector<1x128xf32>
    %53 = vector.broadcast %52 : vector<1x128xf32> to vector<32x128xf32>
    %54 = arith.addf %51, %53 : vector<32x128xf32>
    %cst_27 = arith.constant 0.000000e+00 : f32
    %55 = vector.broadcast %cst_27 : f32 to vector<32x128xf32>
    %56 = arith.maximumf %54, %55 : vector<32x128xf32>
    %c0_28 = arith.constant 0 : index
    %c0_29 = arith.constant 0 : index
    %57 = vector.load %arg4[%c0_28, %c0_29] : memref<32x32xf32, #tpu.memory_space<vmem>>, vector<32x32xf32>
    %cst_30 = arith.constant dense<0.000000e+00> : vector<32x128xf32>
    %58 = tpu.matmul %57, %56, %cst_30 {dimension_numbers = #tpu.dot_dimension_numbers<[1], [0], [0], [1], [0, 0, 1, 1], [], []>} : vector<32x32xf32>, vector<32x128xf32>, vector<32x128xf32> -> vector<32x128xf32>
    %c0_31 = arith.constant 0 : index
    %c0_32 = arith.constant 0 : index
    %59 = vector.load %arg17[%c0_31, %c0_32] : memref<128x128xf32, #tpu.memory_space<vmem>>, vector<128x128xf32>
    %cst_33 = arith.constant dense<0.000000e+00> : vector<32x128xf32>
    %60 = tpu.matmul %56, %59, %cst_33 {dimension_numbers = #tpu.dot_dimension_numbers<[1], [0], [0], [1], [0, 0, 1, 1], [], []>} : vector<32x128xf32>, vector<128x128xf32>, vector<32x128xf32> -> vector<32x128xf32>
    %c0_34 = arith.constant 0 : index
    %c0_35 = arith.constant 0 : index
    %61 = vector.load %arg18[%c0_34, %c0_35] : memref<128x128xf32, #tpu.memory_space<vmem>>, vector<128x128xf32>
    %cst_36 = arith.constant dense<0.000000e+00> : vector<32x128xf32>
    %62 = tpu.matmul %58, %61, %cst_36 {dimension_numbers = #tpu.dot_dimension_numbers<[1], [0], [0], [1], [0, 0, 1, 1], [], []>} : vector<32x128xf32>, vector<128x128xf32>, vector<32x128xf32> -> vector<32x128xf32>
    %63 = arith.addf %60, %62 : vector<32x128xf32>
    %c0_37 = arith.constant 0 : index
    %c0_38 = arith.constant 0 : index
    %64 = vector.load %arg19[%c0_37, %c0_38] : memref<1x128xf32, #tpu.memory_space<vmem>>, vector<1x128xf32>
    %65 = vector.broadcast %64 : vector<1x128xf32> to vector<32x128xf32>
    %66 = arith.mulf %63, %65 : vector<32x128xf32>
    %c0_39 = arith.constant 0 : index
    %c0_40 = arith.constant 0 : index
    %67 = vector.load %arg20[%c0_39, %c0_40] : memref<1x128xf32, #tpu.memory_space<vmem>>, vector<1x128xf32>
    %68 = vector.broadcast %67 : vector<1x128xf32> to vector<32x128xf32>
    %69 = arith.addf %66, %68 : vector<32x128xf32>
    %cst_41 = arith.constant 0.000000e+00 : f32
    %70 = vector.broadcast %cst_41 : f32 to vector<32x128xf32>
    %71 = arith.maximumf %69, %70 : vector<32x128xf32>
    %c0_42 = arith.constant 0 : index
    %c0_43 = arith.constant 0 : index
    %72 = vector.load %arg21[%c0_42, %c0_43] : memref<128x128xf32, #tpu.memory_space<vmem>>, vector<128x128xf32>
    %cst_44 = arith.constant dense<0.000000e+00> : vector<32x128xf32>
    %73 = tpu.matmul %71, %72, %cst_44 {dimension_numbers = #tpu.dot_dimension_numbers<[1], [0], [0], [1], [0, 0, 1, 1], [], []>} : vector<32x128xf32>, vector<128x128xf32>, vector<32x128xf32> -> vector<32x128xf32>
    %c0_45 = arith.constant 0 : index
    %c0_46 = arith.constant 0 : index
    %74 = vector.load %arg22[%c0_45, %c0_46] : memref<1x128xf32, #tpu.memory_space<vmem>>, vector<1x128xf32>
    %75 = vector.broadcast %74 : vector<1x128xf32> to vector<32x128xf32>
    %76 = arith.mulf %73, %75 : vector<32x128xf32>
    %c0_47 = arith.constant 0 : index
    %c0_48 = arith.constant 0 : index
    %77 = vector.load %arg23[%c0_47, %c0_48] : memref<1x128xf32, #tpu.memory_space<vmem>>, vector<1x128xf32>
    %78 = vector.broadcast %77 : vector<1x128xf32> to vector<32x128xf32>
    %79 = arith.addf %76, %78 : vector<32x128xf32>
    %cst_49 = arith.constant 0.000000e+00 : f32
    %80 = vector.broadcast %cst_49 : f32 to vector<32x128xf32>
    %81 = arith.maximumf %79, %80 : vector<32x128xf32>
    %c0_50 = arith.constant 0 : index
    %c0_51 = arith.constant 0 : index
    %82 = vector.load %arg5[%c0_50, %c0_51] : memref<32x32xf32, #tpu.memory_space<vmem>>, vector<8x32xf32>
    %cst_52 = arith.constant dense<0.000000e+00> : vector<8x128xf32>
    %83 = tpu.matmul %82, %81, %cst_52 {dimension_numbers = #tpu.dot_dimension_numbers<[1], [0], [0], [1], [0, 0, 1, 1], [], []>} : vector<8x32xf32>, vector<32x128xf32>, vector<8x128xf32> -> vector<8x128xf32>
    %c0_53 = arith.constant 0 : index
    %c0_54 = arith.constant 0 : index
    %84 = vector.load %arg24[%c0_53, %c0_54] : memref<512x128xf32, #tpu.memory_space<vmem>>, vector<128x128xf32>
    %cst_55 = arith.constant dense<0.000000e+00> : vector<8x128xf32>
    %85 = tpu.matmul %83, %84, %cst_55 {dimension_numbers = #tpu.dot_dimension_numbers<[1], [0], [0], [1], [0, 0, 1, 1], [], []>} : vector<8x128xf32>, vector<128x128xf32>, vector<8x128xf32> -> vector<8x128xf32>
    %c8 = arith.constant 8 : index
    %c0_56 = arith.constant 0 : index
    %86 = vector.load %arg5[%c8, %c0_56] : memref<32x32xf32, #tpu.memory_space<vmem>>, vector<8x32xf32>
    %cst_57 = arith.constant dense<0.000000e+00> : vector<8x128xf32>
    %87 = tpu.matmul %86, %81, %cst_57 {dimension_numbers = #tpu.dot_dimension_numbers<[1], [0], [0], [1], [0, 0, 1, 1], [], []>} : vector<8x32xf32>, vector<32x128xf32>, vector<8x128xf32> -> vector<8x128xf32>
    %c128 = arith.constant 128 : index
    %c0_58 = arith.constant 0 : index
    %88 = vector.load %arg24[%c128, %c0_58] : memref<512x128xf32, #tpu.memory_space<vmem>>, vector<128x128xf32>
    %cst_59 = arith.constant dense<0.000000e+00> : vector<8x128xf32>
    %89 = tpu.matmul %87, %88, %cst_59 {dimension_numbers = #tpu.dot_dimension_numbers<[1], [0], [0], [1], [0, 0, 1, 1], [], []>} : vector<8x128xf32>, vector<128x128xf32>, vector<8x128xf32> -> vector<8x128xf32>
    %90 = arith.addf %85, %89 : vector<8x128xf32>
    %c16 = arith.constant 16 : index
    %c0_60 = arith.constant 0 : index
    %91 = vector.load %arg5[%c16, %c0_60] : memref<32x32xf32, #tpu.memory_space<vmem>>, vector<8x32xf32>
    %cst_61 = arith.constant dense<0.000000e+00> : vector<8x128xf32>
    %92 = tpu.matmul %91, %81, %cst_61 {dimension_numbers = #tpu.dot_dimension_numbers<[1], [0], [0], [1], [0, 0, 1, 1], [], []>} : vector<8x32xf32>, vector<32x128xf32>, vector<8x128xf32> -> vector<8x128xf32>
    %c256 = arith.constant 256 : index
    %c0_62 = arith.constant 0 : index
    %93 = vector.load %arg24[%c256, %c0_62] : memref<512x128xf32, #tpu.memory_space<vmem>>, vector<128x128xf32>
    %cst_63 = arith.constant dense<0.000000e+00> : vector<8x128xf32>
    %94 = tpu.matmul %92, %93, %cst_63 {dimension_numbers = #tpu.dot_dimension_numbers<[1], [0], [0], [1], [0, 0, 1, 1], [], []>} : vector<8x128xf32>, vector<128x128xf32>, vector<8x128xf32> -> vector<8x128xf32>
    %95 = arith.addf %90, %94 : vector<8x128xf32>
    %c24 = arith.constant 24 : index
    %c0_64 = arith.constant 0 : index
    %96 = vector.load %arg5[%c24, %c0_64] : memref<32x32xf32, #tpu.memory_space<vmem>>, vector<8x32xf32>
    %cst_65 = arith.constant dense<0.000000e+00> : vector<8x128xf32>
    %97 = tpu.matmul %96, %81, %cst_65 {dimension_numbers = #tpu.dot_dimension_numbers<[1], [0], [0], [1], [0, 0, 1, 1], [], []>} : vector<8x32xf32>, vector<32x128xf32>, vector<8x128xf32> -> vector<8x128xf32>
    %c384 = arith.constant 384 : index
    %c0_66 = arith.constant 0 : index
    %98 = vector.load %arg24[%c384, %c0_66] : memref<512x128xf32, #tpu.memory_space<vmem>>, vector<128x128xf32>
    %cst_67 = arith.constant dense<0.000000e+00> : vector<8x128xf32>
    %99 = tpu.matmul %97, %98, %cst_67 {dimension_numbers = #tpu.dot_dimension_numbers<[1], [0], [0], [1], [0, 0, 1, 1], [], []>} : vector<8x128xf32>, vector<128x128xf32>, vector<8x128xf32> -> vector<8x128xf32>
    %100 = arith.addf %95, %99 : vector<8x128xf32>
    %c0_68 = arith.constant 0 : index
    %c0_69 = arith.constant 0 : index
    %101 = vector.load %arg25[%c0_68, %c0_69] : memref<1x128xf32, #tpu.memory_space<vmem>>, vector<1x128xf32>
    %102 = vector.broadcast %101 : vector<1x128xf32> to vector<8x128xf32>
    %103 = arith.mulf %100, %102 : vector<8x128xf32>
    %c0_70 = arith.constant 0 : index
    %c0_71 = arith.constant 0 : index
    %104 = vector.load %arg26[%c0_70, %c0_71] : memref<1x128xf32, #tpu.memory_space<vmem>>, vector<1x128xf32>
    %105 = vector.broadcast %104 : vector<1x128xf32> to vector<8x128xf32>
    %106 = arith.addf %103, %105 : vector<8x128xf32>
    %cst_72 = arith.constant 0.000000e+00 : f32
    %107 = vector.broadcast %cst_72 : f32 to vector<8x128xf32>
    %108 = arith.maximumf %106, %107 : vector<8x128xf32>
    %c0_73 = arith.constant 0 : index
    %c0_74 = arith.constant 0 : index
    %109 = vector.load %arg27[%c0_73, %c0_74] : memref<128x128xf32, #tpu.memory_space<vmem>>, vector<128x128xf32>
    %cst_75 = arith.constant dense<0.000000e+00> : vector<8x128xf32>
    %110 = tpu.matmul %108, %109, %cst_75 {dimension_numbers = #tpu.dot_dimension_numbers<[1], [0], [0], [1], [0, 0, 1, 1], [], []>} : vector<8x128xf32>, vector<128x128xf32>, vector<8x128xf32> -> vector<8x128xf32>
    %c0_76 = arith.constant 0 : index
    %c0_77 = arith.constant 0 : index
    %111 = vector.load %arg28[%c0_76, %c0_77] : memref<1x128xf32, #tpu.memory_space<vmem>>, vector<1x128xf32>
    %112 = vector.broadcast %111 : vector<1x128xf32> to vector<8x128xf32>
    %113 = arith.mulf %110, %112 : vector<8x128xf32>
    %c0_78 = arith.constant 0 : index
    %c0_79 = arith.constant 0 : index
    %114 = vector.load %arg29[%c0_78, %c0_79] : memref<1x128xf32, #tpu.memory_space<vmem>>, vector<1x128xf32>
    %115 = vector.broadcast %114 : vector<1x128xf32> to vector<8x128xf32>
    %116 = arith.addf %113, %115 : vector<8x128xf32>
    %cst_80 = arith.constant 0.000000e+00 : f32
    %117 = vector.broadcast %cst_80 : f32 to vector<8x128xf32>
    %118 = arith.maximumf %116, %117 : vector<8x128xf32>
    %c0_81 = arith.constant 0 : index
    %c0_82 = arith.constant 0 : index
    %119 = vector.load %arg6[%c0_81, %c0_82] : memref<2x8xf32, #tpu.memory_space<vmem>>, vector<2x8xf32>
    %cst_83 = arith.constant dense<0.000000e+00> : vector<2x128xf32>
    %120 = tpu.matmul %119, %118, %cst_83 {dimension_numbers = #tpu.dot_dimension_numbers<[1], [0], [0], [1], [0, 0, 1, 1], [], []>} : vector<2x8xf32>, vector<8x128xf32>, vector<2x128xf32> -> vector<2x128xf32>
    %c0_84 = arith.constant 0 : index
    %c0_85 = arith.constant 0 : index
    %121 = vector.load %arg3[%c0_84, %c0_85] : memref<2x512xf32, #tpu.memory_space<vmem>>, vector<2x512xf32>
    %c0_86 = arith.constant 0 : index
    %c0_87 = arith.constant 0 : index
    %122 = vector.load %arg30[%c0_86, %c0_87] : memref<512x128xf32, #tpu.memory_space<vmem>>, vector<512x128xf32>
    %cst_88 = arith.constant dense<0.000000e+00> : vector<2x128xf32>
    %123 = tpu.matmul %121, %122, %cst_88 {dimension_numbers = #tpu.dot_dimension_numbers<[1], [0], [0], [1], [0, 0, 1, 1], [], []>} : vector<2x512xf32>, vector<512x128xf32>, vector<2x128xf32> -> vector<2x128xf32>
    %c0_89 = arith.constant 0 : index
    %c0_90 = arith.constant 0 : index
    %124 = vector.load %arg31[%c0_89, %c0_90] : memref<128x128xf32, #tpu.memory_space<vmem>>, vector<128x128xf32>
    %cst_91 = arith.constant dense<0.000000e+00> : vector<2x128xf32>
    %125 = tpu.matmul %120, %124, %cst_91 {dimension_numbers = #tpu.dot_dimension_numbers<[1], [0], [0], [1], [0, 0, 1, 1], [], []>} : vector<2x128xf32>, vector<128x128xf32>, vector<2x128xf32> -> vector<2x128xf32>
    %126 = arith.addf %123, %125 : vector<2x128xf32>
    %c0_92 = arith.constant 0 : index
    %c0_93 = arith.constant 0 : index
    %127 = vector.load %arg32[%c0_92, %c0_93] : memref<1x128xf32, #tpu.memory_space<vmem>>, vector<1x128xf32>
    %128 = vector.broadcast %127 : vector<1x128xf32> to vector<2x128xf32>
    %129 = arith.addf %126, %128 : vector<2x128xf32>
    %cst_94 = arith.constant 0.000000e+00 : f32
    %130 = vector.broadcast %cst_94 : f32 to vector<2x128xf32>
    %131 = arith.maximumf %129, %130 : vector<2x128xf32>
    %c0_95 = arith.constant 0 : index
    %c0_96 = arith.constant 0 : index
    %132 = vector.load %arg33[%c0_95, %c0_96] : memref<128x512xf32, #tpu.memory_space<vmem>>, vector<128x512xf32>
    %cst_97 = arith.constant dense<0.000000e+00> : vector<2x512xf32>
    %133 = tpu.matmul %131, %132, %cst_97 {dimension_numbers = #tpu.dot_dimension_numbers<[1], [0], [0], [1], [0, 0, 1, 1], [], []>} : vector<2x128xf32>, vector<128x512xf32>, vector<2x512xf32> -> vector<2x512xf32>
    %c0_98 = arith.constant 0 : index
    %c0_99 = arith.constant 0 : index
    %134 = vector.load %arg34[%c0_98, %c0_99] : memref<1x512xf32, #tpu.memory_space<vmem>>, vector<1x512xf32>
    %135 = vector.broadcast %134 : vector<1x512xf32> to vector<2x512xf32>
    %136 = arith.addf %133, %135 : vector<2x512xf32>
    %cst_100 = arith.constant 0.000000e+00 : f32
    %137 = vector.broadcast %cst_100 : f32 to vector<2x512xf32>
    %138 = arith.maximumf %136, %137 : vector<2x512xf32>
    %c0_101 = arith.constant 0 : index
    %c0_102 = arith.constant 0 : index
    %139 = vector.load %arg35[%c0_101, %c0_102] : memref<512x128xf32, #tpu.memory_space<vmem>>, vector<512x128xf32>
    %cst_103 = arith.constant dense<0.000000e+00> : vector<2x128xf32>
    %140 = tpu.matmul %138, %139, %cst_103 {dimension_numbers = #tpu.dot_dimension_numbers<[1], [0], [0], [1], [0, 0, 1, 1], [], []>} : vector<2x512xf32>, vector<512x128xf32>, vector<2x128xf32> -> vector<2x128xf32>
    %c0_104 = arith.constant 0 : index
    %c0_105 = arith.constant 0 : index
    %141 = vector.load %arg36[%c0_104, %c0_105] : memref<1x128xf32, #tpu.memory_space<vmem>>, vector<1x128xf32>
    %142 = vector.broadcast %141 : vector<1x128xf32> to vector<2x128xf32>
    %143 = arith.addf %140, %142 : vector<2x128xf32>
    %c0_106 = arith.constant 0 : index
    %c0_107 = arith.constant 0 : index
    %144 = vector.load %arg37[%c0_106, %c0_107] : memref<2x128xf32, #tpu.memory_space<vmem>>, vector<2x128xf32>
    tpu.vector_store %arg37[%c0_106, %c0_107], %143 {strides = array<i32>} : memref<2x128xf32, #tpu.memory_space<vmem>>, vector<2x128xf32>,
    return
  }
  func.func @transform_0(%arg0: i32) -> (i32, i32) {
    %c0_i32 = arith.constant 0 : i32
    %c0_i32_0 = arith.constant 0 : i32
    %c0_i32_1 = arith.constant 0 : i32
    return %c0_i32, %c0_i32_0 : i32, i32
  }
  func.func @transform_1(%arg0: i32) -> (i32, i32) {
    %c0_i32 = arith.constant 0 : i32
    %c0_i32_0 = arith.constant 0 : i32
    %c0_i32_1 = arith.constant 0 : i32
    return %c0_i32, %c0_i32_0 : i32, i32
  }
  func.func @transform_2(%arg0: i32) -> (i32, i32) {
    %c0_i32 = arith.constant 0 : i32
    %c0_i32_0 = arith.constant 0 : i32
    %c0_i32_1 = arith.constant 0 : i32
    return %c0_i32, %c0_i32_0 : i32, i32
  }
  func.func @transform_3(%arg0: i32) -> (i32, i32) {
    %c0_i32 = arith.constant 0 : i32
    %c0_i32_0 = arith.constant 0 : i32
    %c0_i32_1 = arith.constant 0 : i32
    return %c0_i32, %c0_i32_0 : i32, i32
  }
  func.func @transform_4(%arg0: i32) -> (i32, i32) {
    %c0_i32 = arith.constant 0 : i32
    %c0_i32_0 = arith.constant 0 : i32
    %c0_i32_1 = arith.constant 0 : i32
    return %c0_i32, %c0_i32_0 : i32, i32
  }
  func.func @transform_5(%arg0: i32) -> (i32, i32) {
    %c0_i32 = arith.constant 0 : i32
    %c0_i32_0 = arith.constant 0 : i32
    %c0_i32_1 = arith.constant 0 : i32
    return %c0_i32, %c0_i32_0 : i32, i32
  }
  func.func @transform_6(%arg0: i32) -> (i32, i32) {
    %c0_i32 = arith.constant 0 : i32
    %c0_i32_0 = arith.constant 0 : i32
    %c0_i32_1 = arith.constant 0 : i32
    return %c0_i32, %c0_i32_0 : i32, i32
  }
  func.func @transform_7(%arg0: i32) -> (i32, i32) {
    %c0_i32 = arith.constant 0 : i32
    %c0_i32_0 = arith.constant 0 : i32
    %c0_i32_1 = arith.constant 0 : i32
    return %c0_i32, %c0_i32_0 : i32, i32
  }
  func.func @transform_8(%arg0: i32) -> (i32, i32) {
    %c0_i32 = arith.constant 0 : i32
    %c0_i32_0 = arith.constant 0 : i32
    %c0_i32_1 = arith.constant 0 : i32
    return %c0_i32, %c0_i32_0 : i32, i32
  }
  func.func @transform_9(%arg0: i32) -> (i32, i32) {
    %c0_i32 = arith.constant 0 : i32
    %c0_i32_0 = arith.constant 0 : i32
    %c0_i32_1 = arith.constant 0 : i32
    return %c0_i32, %c0_i32_0 : i32, i32
  }
  func.func @transform_10(%arg0: i32) -> (i32, i32) {
    %c0_i32 = arith.constant 0 : i32
    %c0_i32_0 = arith.constant 0 : i32
    %c0_i32_1 = arith.constant 0 : i32
    return %c0_i32, %c0_i32_0 : i32, i32
  }
  func.func @transform_11(%arg0: i32) -> (i32, i32) {
    %c0_i32 = arith.constant 0 : i32
    %c0_i32_0 = arith.constant 0 : i32
    %c0_i32_1 = arith.constant 0 : i32
    return %c0_i32, %c0_i32_0 : i32, i32
  }
  func.func @transform_12(%arg0: i32) -> (i32, i32) {
    %c0_i32 = arith.constant 0 : i32
    %c0_i32_0 = arith.constant 0 : i32
    %c0_i32_1 = arith.constant 0 : i32
    return %c0_i32, %c0_i32_0 : i32, i32
  }
  func.func @transform_13(%arg0: i32) -> (i32, i32) {
    %c0_i32 = arith.constant 0 : i32
    %c0_i32_0 = arith.constant 0 : i32
    %c0_i32_1 = arith.constant 0 : i32
    return %c0_i32, %c0_i32_0 : i32, i32
  }
  func.func @transform_14(%arg0: i32) -> (i32, i32) {
    %c0_i32 = arith.constant 0 : i32
    %c0_i32_0 = arith.constant 0 : i32
    %c0_i32_1 = arith.constant 0 : i32
    return %c0_i32, %c0_i32_0 : i32, i32
  }
  func.func @transform_15(%arg0: i32) -> (i32, i32) {
    %c0_i32 = arith.constant 0 : i32
    %c0_i32_0 = arith.constant 0 : i32
    %c0_i32_1 = arith.constant 0 : i32
    return %c0_i32, %c0_i32_0 : i32, i32
  }
  func.func @transform_16(%arg0: i32) -> (i32, i32) {
    %c0_i32 = arith.constant 0 : i32
    %c0_i32_0 = arith.constant 0 : i32
    %c0_i32_1 = arith.constant 0 : i32
    return %c0_i32, %c0_i32_0 : i32, i32
  }
  func.func @transform_17(%arg0: i32) -> (i32, i32) {
    %c0_i32 = arith.constant 0 : i32
    %c0_i32_0 = arith.constant 0 : i32
    %c0_i32_1 = arith.constant 0 : i32
    return %c0_i32, %c0_i32_0 : i32, i32
  }
  func.func @transform_18(%arg0: i32) -> (i32, i32) {
    %c0_i32 = arith.constant 0 : i32
    %c0_i32_0 = arith.constant 0 : i32
    %c0_i32_1 = arith.constant 0 : i32
    return %c0_i32, %c0_i32_0 : i32, i32
  }
  func.func @transform_19(%arg0: i32) -> (i32, i32) {
    %c0_i32 = arith.constant 0 : i32
    %c0_i32_0 = arith.constant 0 : i32
    %c0_i32_1 = arith.constant 0 : i32
    return %c0_i32, %c0_i32_0 : i32, i32
  }
  func.func @transform_20(%arg0: i32) -> (i32, i32) {
    %c0_i32 = arith.constant 0 : i32
    %c0_i32_0 = arith.constant 0 : i32
    %c0_i32_1 = arith.constant 0 : i32
    return %c0_i32, %c0_i32_0 : i32, i32
  }
  func.func @transform_21(%arg0: i32) -> (i32, i32) {
    %c0_i32 = arith.constant 0 : i32
    %c0_i32_0 = arith.constant 0 : i32
    %c0_i32_1 = arith.constant 0 : i32
    return %c0_i32, %c0_i32_0 : i32, i32
  }
  func.func @transform_22(%arg0: i32) -> (i32, i32) {
    %c0_i32 = arith.constant 0 : i32
    %c0_i32_0 = arith.constant 0 : i32
    %c0_i32_1 = arith.constant 0 : i32
    return %c0_i32, %c0_i32_0 : i32, i32
  }
  func.func @transform_23(%arg0: i32) -> (i32, i32) {
    %c0_i32 = arith.constant 0 : i32
    %c0_i32_0 = arith.constant 0 : i32
    %c0_i32_1 = arith.constant 0 : i32
    return %c0_i32, %c0_i32_0 : i32, i32
  }
  func.func @transform_24(%arg0: i32) -> (i32, i32) {
    %c0_i32 = arith.constant 0 : i32
    %c0_i32_0 = arith.constant 0 : i32
    %c0_i32_1 = arith.constant 0 : i32
    return %c0_i32, %c0_i32_0 : i32, i32
  }
  func.func @transform_25(%arg0: i32) -> (i32, i32) {
    %c0_i32 = arith.constant 0 : i32
    %c0_i32_0 = arith.constant 0 : i32
    %c0_i32_1 = arith.constant 0 : i32
    return %c0_i32, %c0_i32_0 : i32, i32
  }
  func.func @transform_26(%arg0: i32) -> (i32, i32) {
    %c0_i32 = arith.constant 0 : i32
    %c0_i32_0 = arith.constant 0 : i32
    %c0_i32_1 = arith.constant 0 : i32
    return %c0_i32, %c0_i32_0 : i32, i32
  }
  func.func @transform_27(%arg0: i32) -> (i32, i32) {
    %c0_i32 = arith.constant 0 : i32
    %c0_i32_0 = arith.constant 0 : i32
    %c0_i32_1 = arith.constant 0 : i32
    return %c0_i32, %c0_i32_0 : i32, i32
  }
  func.func @transform_28(%arg0: i32) -> (i32, i32) {
    %c0_i32 = arith.constant 0 : i32
    %c0_i32_0 = arith.constant 0 : i32
    %c0_i32_1 = arith.constant 0 : i32
    return %c0_i32, %c0_i32_0 : i32, i32
  }
  func.func @transform_29(%arg0: i32) -> (i32, i32) {
    %c0_i32 = arith.constant 0 : i32
    %c0_i32_0 = arith.constant 0 : i32
    %c0_i32_1 = arith.constant 0 : i32
    return %c0_i32, %c0_i32_0 : i32, i32
  }
  func.func @transform_30(%arg0: i32) -> (i32, i32) {
    %c0_i32 = arith.constant 0 : i32
    %c0_i32_0 = arith.constant 0 : i32
    %c0_i32_1 = arith.constant 0 : i32
    return %c0_i32, %c0_i32_0 : i32, i32
  }
  func.func @transform_31(%arg0: i32) -> (i32, i32) {
    %c0_i32 = arith.constant 0 : i32
    %c0_i32_0 = arith.constant 0 : i32
    %c0_i32_1 = arith.constant 0 : i32
    return %c0_i32, %c0_i32_0 : i32, i32
  }
  func.func @transform_32(%arg0: i32) -> (i32, i32) {
    %c0_i32 = arith.constant 0 : i32
    %c0_i32_0 = arith.constant 0 : i32
    %c0_i32_1 = arith.constant 0 : i32
    return %c0_i32, %c0_i32_0 : i32, i32
  }
  func.func @transform_33(%arg0: i32) -> (i32, i32) {
    %c0_i32 = arith.constant 0 : i32
    %c0_i32_0 = arith.constant 0 : i32
    %c0_i32_1 = arith.constant 0 : i32
    return %c0_i32, %c0_i32_0 : i32, i32
  }
  func.func @transform_34(%arg0: i32) -> (i32, i32) {
    %c0_i32 = arith.constant 0 : i32
    %c0_i32_0 = arith.constant 0 : i32
    %c0_i32_1 = arith.constant 0 : i32
    return %c0_i32, %c0_i32_0 : i32, i32
  }
  func.func @transform_35(%arg0: i32) -> (i32, i32) {
    %c0_i32 = arith.constant 0 : i32
    %c0_i32_0 = arith.constant 0 : i32
    %c0_i32_1 = arith.constant 0 : i32
    return %c0_i32, %c0_i32_0 : i32, i32
  }
  func.func @transform_36(%arg0: i32) -> (i32, i32) {
    %c0_i32 = arith.constant 0 : i32
    %c0_i32_0 = arith.constant 0 : i32
    %c0_i32_1 = arith.constant 0 : i32
    return %c0_i32, %c0_i32_0 : i32, i32
  }
}

</mosaic_0001>

<bundles_post_ra>
// kernel: video_model_forward.2
= control target key start
LH: loop header
LB: loop body
LE: loop exit
PB: predicated region body
PF: predicated region fallthrough
CT: control target
= control target key end

     0   :  { %s6877_s1 = inlined_call_operand.vmem [shape: bf16[2048,512], index: 1, kind: input, shape index: {}]   ;;  %s6878_s0 = inlined_call_operand.vmem [shape: bf16[8,2048], index: 0, kind: input, shape index: {}]   ;;  %s6879_s2 = inlined_call_operand.vmem [shape: f32[1,512], index: 2, kind: input, shape index: {}]   ;;  %s6880_s3 = inlined_call_operand.vmem [shape: f32[8,512], index: 3, kind: output, shape index: {}]  }
   0x1   :  { %v4364_v0 = vld [vmem:[%s6877_s1 + $0xe4] ss:$16 sps:$4 sm:$0xff]   ;;  %v4368_v2 = vld [vmem:[%s6877_s1 + $0xe0] ss:$16 sps:$4 sm:$0xff]   ;;  %v15_v48 = vld [vmem:[%s6878_s0 + $0x8] sm:$0xff] }
   0x2   :  { %v4366_v1 = vld [vmem:[%s6877_s1 + $0x2e4] ss:$16 sps:$4 sm:$0xff]   ;;  %3172 = vmatprep.subr.bf16.mxu0 %v4364_v0  ;;  %v4369_v3 = vld [vmem:[%s6877_s1 + $0x2e0] ss:$16 sps:$4 sm:$0xff]   ;;  %v5321_v51 = vcombine.high %v15_v48, %v15_v48 }
   0x3   :  { %3213 = vmatprep.subr.bf16.mxu1 %v4366_v1  ;;  %v4370_v4 = vld [vmem:[%s6877_s1 + $0xc4] ss:$16 sps:$4 sm:$0xff]   ;;  %3173 = vmatpush1.bf16.msra.mxu0 %v4368_v2  ;;  %v4374_v6 = vld [vmem:[%s6877_s1 + $0xc0] ss:$16 sps:$4 sm:$0xff]  }
   0x4   :  { %3214 = vmatpush1.bf16.msra.mxu1 %v4369_v3  ;;  %v4372_v5 = vld [vmem:[%s6877_s1 + $0x2c4] ss:$16 sps:$4 sm:$0xff]   ;;  %3174 = vmatprep.subr.bf16.mxu0 %v4370_v4  ;;  %v4375_v7 = vld [vmem:[%s6877_s1 + $0x2c0] ss:$16 sps:$4 sm:$0xff]  }
   0x5   :  { %3215 = vmatprep.subr.bf16.mxu1 %v4372_v5  ;;  %v4376_v8 = vld [vmem:[%s6877_s1 + $0xa4] ss:$16 sps:$4 sm:$0xff]   ;;  %v4380_v10 = vld [vmem:[%s6877_s1 + $0xa0] ss:$16 sps:$4 sm:$0xff]   ;;  %3245 = vmatprep.mubr.bf16.mxu1 %v5321_v51 }
   0x6   :  { %v4378_v9 = vld [vmem:[%s6877_s1 + $0x2a4] ss:$16 sps:$4 sm:$0xff]   ;;  %v4381_v11 = vld [vmem:[%s6877_s1 + $0x2a0] ss:$16 sps:$4 sm:$0xff]  }
   0x7   :  { %3175 = vmatpush1.bf16.msra.mxu0 %v4374_v6  ;;  %v4382_v12 = vld [vmem:[%s6877_s1 + $0x84] ss:$16 sps:$4 sm:$0xff]   ;;  %v4386_v14 = vld [vmem:[%s6877_s1 + $0x80] ss:$16 sps:$4 sm:$0xff]  }
   0x8   :  { %3216 = vmatpush1.bf16.msra.mxu1 %v4375_v7  ;;  %3176 = vmatprep.subr.bf16.mxu0 %v4376_v8  ;;  %v4384_v13 = vld [vmem:[%s6877_s1 + $0x284] ss:$16 sps:$4 sm:$0xff]   ;;  %v4387_v15 = vld [vmem:[%s6877_s1 + $0x280] ss:$16 sps:$4 sm:$0xff]   ;;  %v5381_v7 = vcombine.low %v15_v48, %v15_v48 }
   0x9   :  { %3217 = vmatprep.subr.bf16.mxu1 %v4378_v9  ;;  %v4388_v16 = vld [vmem:[%s6877_s1 + $0x64] ss:$16 sps:$4 sm:$0xff]   ;;  %v4392_v18 = vld [vmem:[%s6877_s1 + $0x60] ss:$16 sps:$4 sm:$0xff]  }
   0xa   :  { %v4390_v17 = vld [vmem:[%s6877_s1 + $0x264] ss:$16 sps:$4 sm:$0xff]   ;;  %v4393_v19 = vld [vmem:[%s6877_s1 + $0x260] ss:$16 sps:$4 sm:$0xff]  }
   0xb   :  { %3177 = vmatpush1.bf16.msra.mxu0 %v4380_v10  ;;  %v4394_v20 = vld [vmem:[%s6877_s1 + $0x44] ss:$16 sps:$4 sm:$0xff]   ;;  %v4398_v22 = vld [vmem:[%s6877_s1 + $0x40] ss:$16 sps:$4 sm:$0xff]  }
   0xc   :  { %3218 = vmatpush1.bf16.msra.mxu1 %v4381_v11  ;;  %3178 = vmatprep.subr.bf16.mxu0 %v4382_v12  ;;  %v4396_v21 = vld [vmem:[%s6877_s1 + $0x244] ss:$16 sps:$4 sm:$0xff]   ;;  %v4399_v23 = vld [vmem:[%s6877_s1 + $0x240] ss:$16 sps:$4 sm:$0xff]  }
   0xd   :  { %3219 = vmatprep.subr.bf16.mxu1 %v4384_v13  ;;  %v4400_v24 = vld [vmem:[%s6877_s1 + $0x24] ss:$16 sps:$4 sm:$0xff]   ;;  %v4404_v26 = vld [vmem:[%s6877_s1 + $0x20] ss:$16 sps:$4 sm:$0xff]  }
   0xe   :  { %v4402_v25 = vld [vmem:[%s6877_s1 + $0x224] ss:$16 sps:$4 sm:$0xff]   ;;  %v4405_v27 = vld [vmem:[%s6877_s1 + $0x220] ss:$16 sps:$4 sm:$0xff]  }
   0xf   :  { %3179 = vmatpush1.bf16.msra.mxu0 %v4386_v14  ;;  %v4406_v28 = vld [vmem:[%s6877_s1 + $0x4] ss:$16 sps:$4 sm:$0xff]   ;;  %v4410_v30 = vld [vmem:[%s6877_s1] ss:$16 sps:$4 sm:$0xff]  }
  0x10   :  { %3220 = vmatpush1.bf16.msra.mxu1 %v4387_v15  ;;  %3180 = vmatprep.subr.bf16.mxu0 %v4388_v16  ;;  %v4408_v29 = vld [vmem:[%s6877_s1 + $0x204] ss:$16 sps:$4 sm:$0xff]   ;;  %v4411_v31 = vld [vmem:[%s6877_s1 + $0x200] ss:$16 sps:$4 sm:$0xff]  }
  0x11   :  { %3221 = vmatprep.subr.bf16.mxu1 %v4390_v17  ;;  %v4412_v32 = vld [vmem:[%s6877_s1 + $0x1e4] ss:$16 sps:$4 sm:$0xff]   ;;  %v4416_v34 = vld [vmem:[%s6877_s1 + $0x1e0] ss:$16 sps:$4 sm:$0xff]  }
  0x12   :  { %v4414_v33 = vld [vmem:[%s6877_s1 + $0x3e4] ss:$16 sps:$4 sm:$0xff]   ;;  %v4417_v35 = vld [vmem:[%s6877_s1 + $0x3e0] ss:$16 sps:$4 sm:$0xff]  }
  0x13   :  { %3181 = vmatpush1.bf16.msra.mxu0 %v4392_v18  ;;  %v4418_v36 = vld [vmem:[%s6877_s1 + $0x1c4] ss:$16 sps:$4 sm:$0xff]   ;;  %v4422_v38 = vld [vmem:[%s6877_s1 + $0x1c0] ss:$16 sps:$4 sm:$0xff]  }
  0x14   :  { %3222 = vmatpush1.bf16.msra.mxu1 %v4393_v19  ;;  %3182 = vmatprep.subr.bf16.mxu0 %v4394_v20  ;;  %v4420_v37 = vld [vmem:[%s6877_s1 + $0x3c4] ss:$16 sps:$4 sm:$0xff]   ;;  %v4423_v39 = vld [vmem:[%s6877_s1 + $0x3c0] ss:$16 sps:$4 sm:$0xff]  }
  0x15   :  { %3223 = vmatprep.subr.bf16.mxu1 %v4396_v21  ;;  %v4424_v40 = vld [vmem:[%s6877_s1 + $0x1a4] ss:$16 sps:$4 sm:$0xff]   ;;  %v4428_v42 = vld [vmem:[%s6877_s1 + $0x1a0] ss:$16 sps:$4 sm:$0xff]  }
  0x16   :  { %v4426_v41 = vld [vmem:[%s6877_s1 + $0x3a4] ss:$16 sps:$4 sm:$0xff]   ;;  %v4429_v43 = vld [vmem:[%s6877_s1 + $0x3a0] ss:$16 sps:$4 sm:$0xff]  }
  0x17   :  { %3183 = vmatpush1.bf16.msra.mxu0 %v4398_v22  ;;  %v4430_v44 = vld [vmem:[%s6877_s1 + $0x184] ss:$16 sps:$4 sm:$0xff]   ;;  %v4434_v49 = vld [vmem:[%s6877_s1 + $0x180] ss:$16 sps:$4 sm:$0xff]  }
  0x18   :  { %3224 = vmatpush1.bf16.msra.mxu1 %v4399_v23  ;;  %3184 = vmatprep.subr.bf16.mxu0 %v4400_v24  ;;  %v4432_v45 = vld [vmem:[%s6877_s1 + $0x384] ss:$16 sps:$4 sm:$0xff]   ;;  %v4435_v50 = vld [vmem:[%s6877_s1 + $0x380] ss:$16 sps:$4 sm:$0xff]  }
  0x19   :  { %3225 = vmatprep.subr.bf16.mxu1 %v4402_v25  ;;  %v14_v46 = vld [vmem:[%s6878_s0] sm:$0xff] }
  0x1a   :  { %v5310_v47 = vcombine.high %v14_v46, %v14_v46  ;;  %v4436_v52 = vld [vmem:[%s6877_s1 + $0x164] ss:$16 sps:$4 sm:$0xff]   ;;  %v4440_v54 = vld [vmem:[%s6877_s1 + $0x160] ss:$16 sps:$4 sm:$0xff]   ;;  %v5379_v6 = vcombine.low %v14_v46, %v14_v46 }
  0x1b   :  { %3185 = vmatpush1.bf16.msra.mxu0 %v4404_v26  ;;  %v4438_v53 = vld [vmem:[%s6877_s1 + $0x364] ss:$16 sps:$4 sm:$0xff]   ;;  %v4441_v55 = vld [vmem:[%s6877_s1 + $0x360] ss:$16 sps:$4 sm:$0xff]  }
  0x1c   :  { %3226 = vmatpush1.bf16.msra.mxu1 %v4405_v27  ;;  %3186 = vmatprep.subr.bf16.mxu0 %v4406_v28  ;;  %v4442_v56 = vld [vmem:[%s6877_s1 + $0x144] ss:$16 sps:$4 sm:$0xff]   ;;  %v4446_v58 = vld [vmem:[%s6877_s1 + $0x140] ss:$16 sps:$4 sm:$0xff]  }
  0x1d   :  { %3227 = vmatprep.subr.bf16.mxu1 %v4408_v29  ;;  %3204 = vmatprep.mubr.bf16.mxu0 %v5310_v47  ;;  %v4444_v57 = vld [vmem:[%s6877_s1 + $0x344] ss:$16 sps:$4 sm:$0xff]   ;;  %v4447_v59 = vld [vmem:[%s6877_s1 + $0x340] ss:$16 sps:$4 sm:$0xff]  }
  0x1e   :  { %v4448_v60 = vld [vmem:[%s6877_s1 + $0x124] ss:$16 sps:$4 sm:$0xff]   ;;  %v4452_v62 = vld [vmem:[%s6877_s1 + $0x120] ss:$16 sps:$4 sm:$0xff]  }
  0x1f   :  { %3187 = vmatpush1.bf16.msra.mxu0 %v4410_v30  ;;  %v4450_v61 = vld [vmem:[%s6877_s1 + $0x324] ss:$16 sps:$4 sm:$0xff]   ;;  %v4453_v63 = vld [vmem:[%s6877_s1 + $0x320] ss:$16 sps:$4 sm:$0xff]  }
  0x20   :  { %3228 = vmatpush1.bf16.msra.mxu1 %v4411_v31  ;;  %3188 = vmatprep.subr.bf16.mxu0 %v4412_v32  ;;  %v4454_v0 = vld [vmem:[%s6877_s1 + $0x104] ss:$16 sps:$4 sm:$0xff]   ;;  %v4458_v2 = vld [vmem:[%s6877_s1 + $0x100] ss:$16 sps:$4 sm:$0xff]  }
  0x21   :  { %3229 = vmatprep.subr.bf16.mxu1 %v4414_v33  ;;  %v4456_v1 = vld [vmem:[%s6877_s1 + $0x304] ss:$16 sps:$4 sm:$0xff]   ;;  %v4459_v3 = vld [vmem:[%s6877_s1 + $0x300] ss:$16 sps:$4 sm:$0xff]   ;;  %v5465_v33 = vld [vmem:[%s6878_s0 + $0x18] sm:$0xff] }
  0x22   :  { %v4466_v4 = vld [vmem:[%s6877_s1 + $0x4e4] ss:$16 sps:$4 sm:$0xff]   ;;  %v4464_v8 = vld [vmem:[%s6877_s1 + $0x4e0] ss:$16 sps:$4 sm:$0xff]  }
  0x23   :  { %3189 = vmatpush2.bf16.msra.mxu0 %v4416_v34  ;;  %v4469_v5 = vld [vmem:[%s6877_s1 + $0x6e4] ss:$16 sps:$4 sm:$0xff]   ;;  %v4467_v9 = vld [vmem:[%s6877_s1 + $0x6e0] ss:$16 sps:$4 sm:$0xff]  }
  0x24   :  { %3230 = vmatpush2.bf16.msra.mxu1 %v4417_v35  ;;  %3190 = vmatprep.subr.bf16.mxu0 %v4418_v36  ;;  %v4472_v10 = vld [vmem:[%s6877_s1 + $0x4c4] ss:$16 sps:$4 sm:$0xff]   ;;  %v4470_v12 = vld [vmem:[%s6877_s1 + $0x4c0] ss:$16 sps:$4 sm:$0xff]  }
  0x25   :  { %3231 = vmatprep.subr.bf16.mxu1 %v4420_v37  ;;  %v4475_v11 = vld [vmem:[%s6877_s1 + $0x6c4] ss:$16 sps:$4 sm:$0xff]   ;;  %v4473_v13 = vld [vmem:[%s6877_s1 + $0x6c0] ss:$16 sps:$4 sm:$0xff]   ;;  %v5479_v37 = vcombine.high %v5465_v33, %v5465_v33 }
  0x26   :  { %v4478_v14 = vld [vmem:[%s6877_s1 + $0x4a4] ss:$16 sps:$4 sm:$0xff]   ;;  %v4476_v16 = vld [vmem:[%s6877_s1 + $0x4a0] ss:$16 sps:$4 sm:$0xff]  }
  0x27   :  { %3191 = vmatpush2.bf16.msra.mxu0 %v4422_v38  ;;  %v4481_v15 = vld [vmem:[%s6877_s1 + $0x6a4] ss:$16 sps:$4 sm:$0xff]   ;;  %v4479_v17 = vld [vmem:[%s6877_s1 + $0x6a0] ss:$16 sps:$4 sm:$0xff]  }
  0x28   :  { %3232 = vmatpush2.bf16.msra.mxu1 %v4423_v39  ;;  %3192 = vmatprep.subr.bf16.mxu0 %v4424_v40  ;;  %v4484_v18 = vld [vmem:[%s6877_s1 + $0x484] ss:$16 sps:$4 sm:$0xff]   ;;  %v4482_v20 = vld [vmem:[%s6877_s1 + $0x480] ss:$16 sps:$4 sm:$0xff]  }
  0x29   :  { %3233 = vmatprep.subr.bf16.mxu1 %v4426_v41  ;;  %v4487_v19 = vld [vmem:[%s6877_s1 + $0x684] ss:$16 sps:$4 sm:$0xff]   ;;  %v4485_v21 = vld [vmem:[%s6877_s1 + $0x680] ss:$16 sps:$4 sm:$0xff]  }
  0x2a   :  { %v4490_v22 = vld [vmem:[%s6877_s1 + $0x464] ss:$16 sps:$4 sm:$0xff]   ;;  %v4488_v24 = vld [vmem:[%s6877_s1 + $0x460] ss:$16 sps:$4 sm:$0xff]  }
  0x2b   :  { %3193 = vmatpush2.bf16.msra.mxu0 %v4428_v42  ;;  %v4493_v23 = vld [vmem:[%s6877_s1 + $0x664] ss:$16 sps:$4 sm:$0xff]   ;;  %v4491_v25 = vld [vmem:[%s6877_s1 + $0x660] ss:$16 sps:$4 sm:$0xff]  }
  0x2c   :  { %3234 = vmatpush2.bf16.msra.mxu1 %v4429_v43  ;;  %3194 = vmatprep.subr.bf16.mxu0 %v4430_v44  ;;  %v4496_v26 = vld [vmem:[%s6877_s1 + $0x444] ss:$16 sps:$4 sm:$0xff]   ;;  %v4494_v28 = vld [vmem:[%s6877_s1 + $0x440] ss:$16 sps:$4 sm:$0xff]  }
  0x2d   :  { %3235 = vmatprep.subr.bf16.mxu1 %v4432_v45  ;;  %v4499_v27 = vld [vmem:[%s6877_s1 + $0x644] ss:$16 sps:$4 sm:$0xff]   ;;  %v4497_v29 = vld [vmem:[%s6877_s1 + $0x640] ss:$16 sps:$4 sm:$0xff]  }
  0x2e   :  { %v4502_v30 = vld [vmem:[%s6877_s1 + $0x424] ss:$16 sps:$4 sm:$0xff]   ;;  %v4500_v34 = vld [vmem:[%s6877_s1 + $0x420] ss:$16 sps:$4 sm:$0xff]  }
  0x2f   :  { %3195 = vmatpush2.bf16.msra.mxu0 %v4434_v49  ;;  %v4505_v31 = vld [vmem:[%s6877_s1 + $0x624] ss:$16 sps:$4 sm:$0xff]   ;;  %v4503_v35 = vld [vmem:[%s6877_s1 + $0x620] ss:$16 sps:$4 sm:$0xff]  }
  0x30   :  { %3236 = vmatpush2.bf16.msra.mxu1 %v4435_v50  ;;  %3196 = vmatprep.subr.bf16.mxu0 %v4436_v52  ;;  %v5460_v32 = vld [vmem:[%s6878_s0 + $0x10] sm:$0xff] }
  0x31   :  { %3237 = vmatprep.subr.bf16.mxu1 %v4438_v53  ;;  %v5475_v36 = vcombine.high %v5460_v32, %v5460_v32  ;;  %v4508_v38 = vld [vmem:[%s6877_s1 + $0x404] ss:$16 sps:$4 sm:$0xff]   ;;  %v4506_v40 = vld [vmem:[%s6877_s1 + $0x400] ss:$16 sps:$4 sm:$0xff]  }
  0x32   :  { %v4511_v39 = vld [vmem:[%s6877_s1 + $0x604] ss:$16 sps:$4 sm:$0xff]   ;;  %v4509_v41 = vld [vmem:[%s6877_s1 + $0x600] ss:$16 sps:$4 sm:$0xff]  }
  0x33   :  { %3197 = vmatpush2.bf16.msra.mxu0 %v4440_v54  ;;  %v4514_v42 = vld [vmem:[%s6877_s1 + $0x5e4] ss:$16 sps:$4 sm:$0xff]   ;;  %v4512_v44 = vld [vmem:[%s6877_s1 + $0x5e0] ss:$16 sps:$4 sm:$0xff]  }
  0x34   :  { %3238 = vmatpush2.bf16.msra.mxu1 %v4441_v55  ;;  %3198 = vmatprep.subr.bf16.mxu0 %v4442_v56  ;;  %v4517_v43 = vld [vmem:[%s6877_s1 + $0x7e4] ss:$16 sps:$4 sm:$0xff]   ;;  %v4515_v45 = vld [vmem:[%s6877_s1 + $0x7e0] ss:$16 sps:$4 sm:$0xff]  }
  0x35   :  { %3239 = vmatprep.subr.bf16.mxu1 %v4444_v57  ;;  %v4520_v46 = vld [vmem:[%s6877_s1 + $0x5c4] ss:$16 sps:$4 sm:$0xff]   ;;  %v4518_v49 = vld [vmem:[%s6877_s1 + $0x5c0] ss:$16 sps:$4 sm:$0xff]  }
  0x36   :  { %v4523_v48 = vld [vmem:[%s6877_s1 + $0x7c4] ss:$16 sps:$4 sm:$0xff]   ;;  %v4521_v50 = vld [vmem:[%s6877_s1 + $0x7c0] ss:$16 sps:$4 sm:$0xff]  }
  0x37   :  { %3199 = vmatpush2.bf16.msra.mxu0 %v4446_v58  ;;  %v4526_v52 = vld [vmem:[%s6877_s1 + $0x5a4] ss:$16 sps:$4 sm:$0xff]   ;;  %v4524_v54 = vld [vmem:[%s6877_s1 + $0x5a0] ss:$16 sps:$4 sm:$0xff]  }
  0x38   :  { %3240 = vmatpush2.bf16.msra.mxu1 %v4447_v59  ;;  %3200 = vmatprep.subr.bf16.mxu0 %v4448_v60  ;;  %v4529_v53 = vld [vmem:[%s6877_s1 + $0x7a4] ss:$16 sps:$4 sm:$0xff]   ;;  %v4527_v55 = vld [vmem:[%s6877_s1 + $0x7a0] ss:$16 sps:$4 sm:$0xff]  }
  0x39   :  { %3241 = vmatprep.subr.bf16.mxu1 %v4450_v61  ;;  %v4532_v56 = vld [vmem:[%s6877_s1 + $0x584] ss:$16 sps:$4 sm:$0xff]   ;;  %v4530_v58 = vld [vmem:[%s6877_s1 + $0x580] ss:$16 sps:$4 sm:$0xff]  }
  0x3a   :  { %v4535_v57 = vld [vmem:[%s6877_s1 + $0x784] ss:$16 sps:$4 sm:$0xff]   ;;  %v4533_v59 = vld [vmem:[%s6877_s1 + $0x780] ss:$16 sps:$4 sm:$0xff]  }
  0x3b   :  { %3201 = vmatpush2.bf16.msra.mxu0 %v4452_v62  ;;  %v4538_v60 = vld [vmem:[%s6877_s1 + $0x564] ss:$16 sps:$4 sm:$0xff]   ;;  %v4536_v62 = vld [vmem:[%s6877_s1 + $0x560] ss:$16 sps:$4 sm:$0xff]  }
  0x3c   :  { %3242 = vmatpush2.bf16.msra.mxu1 %v4453_v63  ;;  %3202 = vmatprep.subr.bf16.mxu0 %v4454_v0  ;;  %v4541_v61 = vld [vmem:[%s6877_s1 + $0x764] ss:$16 sps:$4 sm:$0xff]   ;;  %v4539_v63 = vld [vmem:[%s6877_s1 + $0x760] ss:$16 sps:$4 sm:$0xff]  }
  0x3d   :  { %3243 = vmatprep.subr.bf16.mxu1 %v4456_v1  ;;  %v4544_v0 = vld [vmem:[%s6877_s1 + $0x544] ss:$16 sps:$4 sm:$0xff]  }
  0x3e   :  { %v4547_v1 = vld [vmem:[%s6877_s1 + $0x744] ss:$16 sps:$4 sm:$0xff]  }
  0x3f   :  { %3203 = vmatpush2.bf16.msra.mxu0 %v4458_v2  ;;  %v4542_v2 = vld [vmem:[%s6877_s1 + $0x540] ss:$16 sps:$4 sm:$0xff]  }
  0x40   :  { %3244 = vmatpush2.bf16.msra.mxu1 %v4459_v3  ;;  %3254 = vmatprep.subr.bf16.mxu0 %v4466_v4  ;;  %v4545_v3 = vld [vmem:[%s6877_s1 + $0x740] ss:$16 sps:$4 sm:$0xff]   ;;  %v4550_v4 = vld [vmem:[%s6877_s1 + $0x524] ss:$16 sps:$4 sm:$0xff]  }
  0x41   :  { %3295 = vmatprep.subr.bf16.mxu1 %v4469_v5  ;;  %v4553_v5 = vld [vmem:[%s6877_s1 + $0x724] ss:$16 sps:$4 sm:$0xff]  }
  0x42   :  { %3205 = vmatmul.mubr.bf16.vlgmr.msra.gmra.mxu0 %v5379_v6 }
  0x43   :  { %3246 = vmatmul.mubr.bf16.vlgmr.msra.gmra.mxu1 %v5381_v7  ;;  %3255 = vmatpush1.bf16.msra.mxu0 %v4464_v8  ;;  %v4548_v8 = vld [vmem:[%s6877_s1 + $0x520] ss:$16 sps:$4 sm:$0xff]  }
  0x44   :  { %3296 = vmatpush1.bf16.msra.mxu1 %v4467_v9  ;;  %3256 = vmatprep.subr.bf16.mxu0 %v4472_v10  ;;  %v4551_v9 = vld [vmem:[%s6877_s1 + $0x720] ss:$16 sps:$4 sm:$0xff]   ;;  %v4556_v10 = vld [vmem:[%s6877_s1 + $0x504] ss:$16 sps:$4 sm:$0xff]  }
  0x45   :  { %3297 = vmatprep.subr.bf16.mxu1 %v4475_v11  ;;  %3286 = vmatprep.mubr.bf16.mxu0 %v5475_v36  ;;  %v4559_v11 = vld [vmem:[%s6877_s1 + $0x704] ss:$16 sps:$4 sm:$0xff]  }
  0x46   :  { %3327 = vmatprep.mubr.bf16.mxu1 %v5479_v37 }
  0x47   :  { %3257 = vmatpush1.bf16.msra.mxu0 %v4470_v12  ;;  %v4554_v12 = vld [vmem:[%s6877_s1 + $0x500] ss:$16 sps:$4 sm:$0xff]  }
  0x48   :  { %3298 = vmatpush1.bf16.msra.mxu1 %v4473_v13  ;;  %3258 = vmatprep.subr.bf16.mxu0 %v4478_v14  ;;  %v4557_v13 = vld [vmem:[%s6877_s1 + $0x700] ss:$16 sps:$4 sm:$0xff]   ;;  %v4566_v14 = vld [vmem:[%s6877_s1 + $0x8e4] ss:$16 sps:$4 sm:$0xff]  }
  0x49   :  { %3299 = vmatprep.subr.bf16.mxu1 %v4481_v15  ;;  %v4569_v15 = vld [vmem:[%s6877_s1 + $0xae4] ss:$16 sps:$4 sm:$0xff]  }
  0x4b   :  { %3259 = vmatpush1.bf16.msra.mxu0 %v4476_v16  ;;  %v5599_v16 = vcombine.low %v5460_v32, %v5460_v32  ;;  %v4584_v32 = vld [vmem:[%s6877_s1 + $0x884] ss:$16 sps:$4 sm:$0xff]  }
  0x4c   :  { %3300 = vmatpush1.bf16.msra.mxu1 %v4479_v17  ;;  %3260 = vmatprep.subr.bf16.mxu0 %v4484_v18  ;;  %v5603_v17 = vcombine.low %v5465_v33, %v5465_v33  ;;  %v4564_v18 = vld [vmem:[%s6877_s1 + $0x8e0] ss:$16 sps:$4 sm:$0xff]   ;;  %v4587_v33 = vld [vmem:[%s6877_s1 + $0xa84] ss:$16 sps:$4 sm:$0xff]  }
  0x4d   :  { %3301 = vmatprep.subr.bf16.mxu1 %v4487_v19  ;;  %v4567_v19 = vld [vmem:[%s6877_s1 + $0xae0] ss:$16 sps:$4 sm:$0xff]  }
  0x4f   :  { %3261 = vmatpush1.bf16.msra.mxu0 %v4482_v20  ;;  %v4572_v20 = vld [vmem:[%s6877_s1 + $0x8c4] ss:$16 sps:$4 sm:$0xff]  }
  0x50   :  { %3302 = vmatpush1.bf16.msra.mxu1 %v4485_v21  ;;  %3262 = vmatprep.subr.bf16.mxu0 %v4490_v22  ;;  %v4575_v21 = vld [vmem:[%s6877_s1 + $0xac4] ss:$16 sps:$4 sm:$0xff]  }
  0x51   :  { %3303 = vmatprep.subr.bf16.mxu1 %v4493_v23  ;;  %v5620_v22 = vld [vmem:[%s6878_s0 + $0x20] sm:$0xff]  ;;  %v5625_v23 = vld [vmem:[%s6878_s0 + $0x28] sm:$0xff] }
  0x53   :  { %3263 = vmatpush1.bf16.msra.mxu0 %v4488_v24  ;;  %v5629_v24 = vcombine.high %v5620_v22, %v5620_v22 }
  0x54   :  { %3304 = vmatpush1.bf16.msra.mxu1 %v4491_v25  ;;  %3264 = vmatprep.subr.bf16.mxu0 %v4496_v26  ;;  %v5633_v25 = vcombine.high %v5625_v23, %v5625_v23  ;;  %v4570_v26 = vld [vmem:[%s6877_s1 + $0x8c0] ss:$16 sps:$4 sm:$0xff]  }
  0x55   :  { %3305 = vmatprep.subr.bf16.mxu1 %v4499_v27  ;;  %v4573_v27 = vld [vmem:[%s6877_s1 + $0xac0] ss:$16 sps:$4 sm:$0xff]  }
  0x57   :  { %3265 = vmatpush1.bf16.msra.mxu0 %v4494_v28  ;;  %v4578_v28 = vld [vmem:[%s6877_s1 + $0x8a4] ss:$16 sps:$4 sm:$0xff]  }
  0x58   :  { %3306 = vmatpush1.bf16.msra.mxu1 %v4497_v29  ;;  %3266 = vmatprep.subr.bf16.mxu0 %v4502_v30  ;;  %v4581_v29 = vld [vmem:[%s6877_s1 + $0xaa4] ss:$16 sps:$4 sm:$0xff]   ;;  %v4576_v30 = vld [vmem:[%s6877_s1 + $0x8a0] ss:$16 sps:$4 sm:$0xff]  }
  0x59   :  { %3307 = vmatprep.subr.bf16.mxu1 %v4505_v31  ;;  %v4579_v31 = vld [vmem:[%s6877_s1 + $0xaa0] ss:$16 sps:$4 sm:$0xff]  }
  0x5b   :  { %3267 = vmatpush1.bf16.msra.mxu0 %v4500_v34  ;;  %v4582_v34 = vld [vmem:[%s6877_s1 + $0x880] ss:$16 sps:$4 sm:$0xff]  }
  0x5c   :  { %3308 = vmatpush1.bf16.msra.mxu1 %v4503_v35  ;;  %3268 = vmatprep.subr.bf16.mxu0 %v4508_v38  ;;  %v4585_v35 = vld [vmem:[%s6877_s1 + $0xa80] ss:$16 sps:$4 sm:$0xff]   ;;  %v4590_v38 = vld [vmem:[%s6877_s1 + $0x864] ss:$16 sps:$4 sm:$0xff]  }
  0x5d   :  { %3309 = vmatprep.subr.bf16.mxu1 %v4511_v39  ;;  %v4593_v39 = vld [vmem:[%s6877_s1 + $0xa64] ss:$16 sps:$4 sm:$0xff]  }
  0x5f   :  { %3269 = vmatpush1.bf16.msra.mxu0 %v4506_v40  ;;  %v4588_v40 = vld [vmem:[%s6877_s1 + $0x860] ss:$16 sps:$4 sm:$0xff]  }
  0x60   :  { %3310 = vmatpush1.bf16.msra.mxu1 %v4509_v41  ;;  %3270 = vmatprep.subr.bf16.mxu0 %v4514_v42  ;;  %v4591_v41 = vld [vmem:[%s6877_s1 + $0xa60] ss:$16 sps:$4 sm:$0xff]   ;;  %v4596_v42 = vld [vmem:[%s6877_s1 + $0x844] ss:$16 sps:$4 sm:$0xff]  }
  0x61   :  { %3311 = vmatprep.subr.bf16.mxu1 %v4517_v43  ;;  %v4599_v43 = vld [vmem:[%s6877_s1 + $0xa44] ss:$16 sps:$4 sm:$0xff]  }
  0x63   :  { %3271 = vmatpush2.bf16.msra.mxu0 %v4512_v44  ;;  %v4594_v44 = vld [vmem:[%s6877_s1 + $0x840] ss:$16 sps:$4 sm:$0xff]  }
  0x64   :  { %3312 = vmatpush2.bf16.msra.mxu1 %v4515_v45  ;;  %3272 = vmatprep.subr.bf16.mxu0 %v4520_v46  ;;  %v4597_v45 = vld [vmem:[%s6877_s1 + $0xa40] ss:$16 sps:$4 sm:$0xff]   ;;  %v4602_v46 = vld [vmem:[%s6877_s1 + $0x824] ss:$16 sps:$4 sm:$0xff]  }
  0x65   :  { %3313 = vmatprep.subr.bf16.mxu1 %v4523_v48  ;;  %v4605_v48 = vld [vmem:[%s6877_s1 + $0xa24] ss:$16 sps:$4 sm:$0xff]  }
  0x67   :  { %3273 = vmatpush2.bf16.msra.mxu0 %v4518_v49  ;;  %v4600_v49 = vld [vmem:[%s6877_s1 + $0x820] ss:$16 sps:$4 sm:$0xff]  }
  0x68   :  { %3314 = vmatpush2.bf16.msra.mxu1 %v4521_v50  ;;  %3274 = vmatprep.subr.bf16.mxu0 %v4526_v52  ;;  %v4603_v50 = vld [vmem:[%s6877_s1 + $0xa20] ss:$16 sps:$4 sm:$0xff]   ;;  %v4608_v52 = vld [vmem:[%s6877_s1 + $0x804] ss:$16 sps:$4 sm:$0xff]  }
  0x69   :  { %3315 = vmatprep.subr.bf16.mxu1 %v4529_v53  ;;  %v4611_v53 = vld [vmem:[%s6877_s1 + $0xa04] ss:$16 sps:$4 sm:$0xff]  }
  0x6b   :  { %3275 = vmatpush2.bf16.msra.mxu0 %v4524_v54  ;;  %v4606_v54 = vld [vmem:[%s6877_s1 + $0x800] ss:$16 sps:$4 sm:$0xff]  }
  0x6c   :  { %3316 = vmatpush2.bf16.msra.mxu1 %v4527_v55  ;;  %3276 = vmatprep.subr.bf16.mxu0 %v4532_v56  ;;  %v4609_v55 = vld [vmem:[%s6877_s1 + $0xa00] ss:$16 sps:$4 sm:$0xff]   ;;  %v4614_v56 = vld [vmem:[%s6877_s1 + $0x9e4] ss:$16 sps:$4 sm:$0xff]  }
  0x6d   :  { %3317 = vmatprep.subr.bf16.mxu1 %v4535_v57  ;;  %v4617_v57 = vld [vmem:[%s6877_s1 + $0xbe4] ss:$16 sps:$4 sm:$0xff]  }
  0x6f   :  { %3277 = vmatpush2.bf16.msra.mxu0 %v4530_v58  ;;  %v4612_v58 = vld [vmem:[%s6877_s1 + $0x9e0] ss:$16 sps:$4 sm:$0xff]  }
  0x70   :  { %3318 = vmatpush2.bf16.msra.mxu1 %v4533_v59  ;;  %3278 = vmatprep.subr.bf16.mxu0 %v4538_v60  ;;  %v4615_v59 = vld [vmem:[%s6877_s1 + $0xbe0] ss:$16 sps:$4 sm:$0xff]   ;;  %v4620_v60 = vld [vmem:[%s6877_s1 + $0x9c4] ss:$16 sps:$4 sm:$0xff]  }
  0x71   :  { %3319 = vmatprep.subr.bf16.mxu1 %v4541_v61  ;;  %v4623_v61 = vld [vmem:[%s6877_s1 + $0xbc4] ss:$16 sps:$4 sm:$0xff]  }
  0x73   :  { %3279 = vmatpush2.bf16.msra.mxu0 %v4536_v62  ;;  %v4618_v62 = vld [vmem:[%s6877_s1 + $0x9c0] ss:$16 sps:$4 sm:$0xff]  }
  0x74   :  { %3320 = vmatpush2.bf16.msra.mxu1 %v4539_v63  ;;  %3280 = vmatprep.subr.bf16.mxu0 %v4544_v0  ;;  %v4621_v63 = vld [vmem:[%s6877_s1 + $0xbc0] ss:$16 sps:$4 sm:$0xff]   ;;  %v4626_v0 = vld [vmem:[%s6877_s1 + $0x9a4] ss:$16 sps:$4 sm:$0xff]  }
  0x75   :  { %3321 = vmatprep.subr.bf16.mxu1 %v4547_v1  ;;  %v4629_v1 = vld [vmem:[%s6877_s1 + $0xba4] ss:$16 sps:$4 sm:$0xff]  }
  0x77   :  { %3281 = vmatpush2.bf16.msra.mxu0 %v4542_v2  ;;  %v4624_v2 = vld [vmem:[%s6877_s1 + $0x9a0] ss:$16 sps:$4 sm:$0xff]  }
  0x78   :  { %3322 = vmatpush2.bf16.msra.mxu1 %v4545_v3  ;;  %3282 = vmatprep.subr.bf16.mxu0 %v4550_v4  ;;  %v4627_v3 = vld [vmem:[%s6877_s1 + $0xba0] ss:$16 sps:$4 sm:$0xff]   ;;  %v4632_v4 = vld [vmem:[%s6877_s1 + $0x984] ss:$16 sps:$4 sm:$0xff]  }
  0x79   :  { %3323 = vmatprep.subr.bf16.mxu1 %v4553_v5  ;;  %v4635_v5 = vld [vmem:[%s6877_s1 + $0xb84] ss:$16 sps:$4 sm:$0xff]  }
  0x7b   :  { %3283 = vmatpush2.bf16.msra.mxu0 %v4548_v8  ;;  %v4630_v8 = vld [vmem:[%s6877_s1 + $0x980] ss:$16 sps:$4 sm:$0xff]  }
  0x7c   :  { %3324 = vmatpush2.bf16.msra.mxu1 %v4551_v9  ;;  %3284 = vmatprep.subr.bf16.mxu0 %v4556_v10  ;;  %v4633_v9 = vld [vmem:[%s6877_s1 + $0xb80] ss:$16 sps:$4 sm:$0xff]   ;;  %v4638_v10 = vld [vmem:[%s6877_s1 + $0x964] ss:$16 sps:$4 sm:$0xff]  }
  0x7d   :  { %3325 = vmatprep.subr.bf16.mxu1 %v4559_v11  ;;  %v4641_v11 = vld [vmem:[%s6877_s1 + $0xb64] ss:$16 sps:$4 sm:$0xff]  }
  0x7f   :  { %3285 = vmatpush2.bf16.msra.mxu0 %v4554_v12  ;;  %v4636_v12 = vld [vmem:[%s6877_s1 + $0x960] ss:$16 sps:$4 sm:$0xff]  }
  0x80   :  { %3326 = vmatpush2.bf16.msra.mxu1 %v4557_v13  ;;  %3336 = vmatprep.subr.bf16.mxu0 %v4566_v14  ;;  %v4639_v13 = vld [vmem:[%s6877_s1 + $0xb60] ss:$16 sps:$4 sm:$0xff]   ;;  %v4644_v14 = vld [vmem:[%s6877_s1 + $0x944] ss:$16 sps:$4 sm:$0xff]  }
  0x81   :  { %3377 = vmatprep.subr.bf16.mxu1 %v4569_v15  ;;  %v4647_v15 = vld [vmem:[%s6877_s1 + $0xb44] ss:$16 sps:$4 sm:$0xff]  }
  0x82   :  { %3287 = vmatmul.mubr.bf16.vlgmr.msra.gmra.mxu0 %v5599_v16 }
  0x83   :  { %3328 = vmatmul.mubr.bf16.vlgmr.msra.gmra.mxu1 %v5603_v17  ;;  %3337 = vmatpush1.bf16.msra.mxu0 %v4564_v18  ;;  %v4642_v18 = vld [vmem:[%s6877_s1 + $0x940] ss:$16 sps:$4 sm:$0xff]  }
  0x84   :  { %3378 = vmatpush1.bf16.msra.mxu1 %v4567_v19  ;;  %3338 = vmatprep.subr.bf16.mxu0 %v4572_v20  ;;  %v4645_v19 = vld [vmem:[%s6877_s1 + $0xb40] ss:$16 sps:$4 sm:$0xff]   ;;  %v4650_v20 = vld [vmem:[%s6877_s1 + $0x924] ss:$16 sps:$4 sm:$0xff]  }
  0x85   :  { %3379 = vmatprep.subr.bf16.mxu1 %v4575_v21  ;;  %3368 = vmatprep.mubr.bf16.mxu0 %v5629_v24  ;;  %v4653_v21 = vld [vmem:[%s6877_s1 + $0xb24] ss:$16 sps:$4 sm:$0xff]  }
  0x86   :  { %3409 = vmatprep.mubr.bf16.mxu1 %v5633_v25 }
  0x87   :  { %3339 = vmatpush1.bf16.msra.mxu0 %v4570_v26  ;;  %v4648_v26 = vld [vmem:[%s6877_s1 + $0x920] ss:$16 sps:$4 sm:$0xff]  }
  0x88   :  { %3380 = vmatpush1.bf16.msra.mxu1 %v4573_v27  ;;  %3340 = vmatprep.subr.bf16.mxu0 %v4578_v28  ;;  %v4651_v27 = vld [vmem:[%s6877_s1 + $0xb20] ss:$16 sps:$4 sm:$0xff]   ;;  %v4656_v28 = vld [vmem:[%s6877_s1 + $0x904] ss:$16 sps:$4 sm:$0xff]  }
  0x89   :  { %3381 = vmatprep.subr.bf16.mxu1 %v4581_v29  ;;  %v4659_v29 = vld [vmem:[%s6877_s1 + $0xb04] ss:$16 sps:$4 sm:$0xff]  }
  0x8b   :  { %3341 = vmatpush1.bf16.msra.mxu0 %v4576_v30  ;;  %v4654_v30 = vld [vmem:[%s6877_s1 + $0x900] ss:$16 sps:$4 sm:$0xff]  }
  0x8c   :  { %3382 = vmatpush1.bf16.msra.mxu1 %v4579_v31  ;;  %3342 = vmatprep.subr.bf16.mxu0 %v4584_v32  ;;  %v4657_v31 = vld [vmem:[%s6877_s1 + $0xb00] ss:$16 sps:$4 sm:$0xff]   ;;  %v4666_v32 = vld [vmem:[%s6877_s1 + $0xce4] ss:$16 sps:$4 sm:$0xff]  }
  0x8d   :  { %3383 = vmatprep.subr.bf16.mxu1 %v4587_v33  ;;  %v4669_v33 = vld [vmem:[%s6877_s1 + $0xee4] ss:$16 sps:$4 sm:$0xff]  }
  0x8f   :  { %3343 = vmatpush1.bf16.msra.mxu0 %v4582_v34  ;;  %v4664_v34 = vld [vmem:[%s6877_s1 + $0xce0] ss:$16 sps:$4 sm:$0xff]  }
  0x90   :  { %3384 = vmatpush1.bf16.msra.mxu1 %v4585_v35  ;;  %3344 = vmatprep.subr.bf16.mxu0 %v4590_v38  ;;  %v5825_v35 = vld [vmem:[%s6878_s0 + $0x30] sm:$0xff]  ;;  %v5829_v38 = vcombine.low %v5620_v22, %v5620_v22 }
  0x91   :  { %3385 = vmatprep.subr.bf16.mxu1 %v4593_v39  ;;  %v5833_v39 = vcombine.low %v5625_v23, %v5625_v23  ;;  %v4672_v22 = vld [vmem:[%s6877_s1 + $0xcc4] ss:$16 sps:$4 sm:$0xff]  }
  0x92   :  { %v4675_v23 = vld [vmem:[%s6877_s1 + $0xec4] ss:$16 sps:$4 sm:$0xff]  }
  0x93   :  { %3345 = vmatpush1.bf16.msra.mxu0 %v4588_v40  ;;  %v5838_v40 = vld [vmem:[%s6878_s0 + $0x38] sm:$0xff] }
  0x94   :  { %3386 = vmatpush1.bf16.msra.mxu1 %v4591_v41  ;;  %3346 = vmatprep.subr.bf16.mxu0 %v4596_v42  ;;  %v4667_v41 = vld [vmem:[%s6877_s1 + $0xee0] ss:$16 sps:$4 sm:$0xff]   ;;  %v5851_v42 = vcombine.high %v5825_v35, %v5825_v35 }
  0x95   :  { %3387 = vmatprep.subr.bf16.mxu1 %v4599_v43  ;;  %v5855_v43 = vcombine.high %v5838_v40, %v5838_v40 }
  0x97   :  { %3347 = vmatpush1.bf16.msra.mxu0 %v4594_v44  ;;  %v4670_v44 = vld [vmem:[%s6877_s1 + $0xcc0] ss:$16 sps:$4 sm:$0xff]  }
  0x98   :  { %3388 = vmatpush1.bf16.msra.mxu1 %v4597_v45  ;;  %3348 = vmatprep.subr.bf16.mxu0 %v4602_v46  ;;  %v4673_v45 = vld [vmem:[%s6877_s1 + $0xec0] ss:$16 sps:$4 sm:$0xff]   ;;  %v4678_v46 = vld [vmem:[%s6877_s1 + $0xca4] ss:$16 sps:$4 sm:$0xff]  }
  0x99   :  { %3389 = vmatprep.subr.bf16.mxu1 %v4605_v48  ;;  %v4681_v48 = vld [vmem:[%s6877_s1 + $0xea4] ss:$16 sps:$4 sm:$0xff]  }
  0x9b   :  { %3349 = vmatpush1.bf16.msra.mxu0 %v4600_v49  ;;  %v4676_v49 = vld [vmem:[%s6877_s1 + $0xca0] ss:$16 sps:$4 sm:$0xff]  }
  0x9c   :  { %3390 = vmatpush1.bf16.msra.mxu1 %v4603_v50  ;;  %3350 = vmatprep.subr.bf16.mxu0 %v4608_v52  ;;  %v4679_v50 = vld [vmem:[%s6877_s1 + $0xea0] ss:$16 sps:$4 sm:$0xff]   ;;  %v4684_v52 = vld [vmem:[%s6877_s1 + $0xc84] ss:$16 sps:$4 sm:$0xff]  }
  0x9d   :  { %3391 = vmatprep.subr.bf16.mxu1 %v4611_v53  ;;  %v4687_v53 = vld [vmem:[%s6877_s1 + $0xe84] ss:$16 sps:$4 sm:$0xff]  }
  0x9f   :  { %3351 = vmatpush1.bf16.msra.mxu0 %v4606_v54  ;;  %v4682_v54 = vld [vmem:[%s6877_s1 + $0xc80] ss:$16 sps:$4 sm:$0xff]  }
  0xa0   :  { %3392 = vmatpush1.bf16.msra.mxu1 %v4609_v55  ;;  %3352 = vmatprep.subr.bf16.mxu0 %v4614_v56  ;;  %v4685_v55 = vld [vmem:[%s6877_s1 + $0xe80] ss:$16 sps:$4 sm:$0xff]   ;;  %v4690_v56 = vld [vmem:[%s6877_s1 + $0xc64] ss:$16 sps:$4 sm:$0xff]  }
  0xa1   :  { %3393 = vmatprep.subr.bf16.mxu1 %v4617_v57  ;;  %v4693_v57 = vld [vmem:[%s6877_s1 + $0xe64] ss:$16 sps:$4 sm:$0xff]  }
  0xa3   :  { %3353 = vmatpush2.bf16.msra.mxu0 %v4612_v58  ;;  %v4688_v58 = vld [vmem:[%s6877_s1 + $0xc60] ss:$16 sps:$4 sm:$0xff]  }
  0xa4   :  { %3394 = vmatpush2.bf16.msra.mxu1 %v4615_v59  ;;  %3354 = vmatprep.subr.bf16.mxu0 %v4620_v60  ;;  %v4691_v59 = vld [vmem:[%s6877_s1 + $0xe60] ss:$16 sps:$4 sm:$0xff]   ;;  %v4696_v60 = vld [vmem:[%s6877_s1 + $0xc44] ss:$16 sps:$4 sm:$0xff]  }
  0xa5   :  { %3395 = vmatprep.subr.bf16.mxu1 %v4623_v61  ;;  %v4699_v61 = vld [vmem:[%s6877_s1 + $0xe44] ss:$16 sps:$4 sm:$0xff]  }
  0xa7   :  { %3355 = vmatpush2.bf16.msra.mxu0 %v4618_v62  ;;  %v4694_v62 = vld [vmem:[%s6877_s1 + $0xc40] ss:$16 sps:$4 sm:$0xff]  }
  0xa8   :  { %3396 = vmatpush2.bf16.msra.mxu1 %v4621_v63  ;;  %3356 = vmatprep.subr.bf16.mxu0 %v4626_v0  ;;  %v4697_v63 = vld [vmem:[%s6877_s1 + $0xe40] ss:$16 sps:$4 sm:$0xff]   ;;  %v4702_v0 = vld [vmem:[%s6877_s1 + $0xc24] ss:$16 sps:$4 sm:$0xff]  }
  0xa9   :  { %3397 = vmatprep.subr.bf16.mxu1 %v4629_v1  ;;  %v4705_v1 = vld [vmem:[%s6877_s1 + $0xe24] ss:$16 sps:$4 sm:$0xff]  }
  0xab   :  { %3357 = vmatpush2.bf16.msra.mxu0 %v4624_v2  ;;  %v4700_v2 = vld [vmem:[%s6877_s1 + $0xc20] ss:$16 sps:$4 sm:$0xff]  }
  0xac   :  { %3398 = vmatpush2.bf16.msra.mxu1 %v4627_v3  ;;  %3358 = vmatprep.subr.bf16.mxu0 %v4632_v4  ;;  %v4703_v3 = vld [vmem:[%s6877_s1 + $0xe20] ss:$16 sps:$4 sm:$0xff]   ;;  %v4708_v4 = vld [vmem:[%s6877_s1 + $0xc04] ss:$16 sps:$4 sm:$0xff]  }
  0xad   :  { %3399 = vmatprep.subr.bf16.mxu1 %v4635_v5  ;;  %v4711_v5 = vld [vmem:[%s6877_s1 + $0xe04] ss:$16 sps:$4 sm:$0xff]  }
  0xaf   :  { %3359 = vmatpush2.bf16.msra.mxu0 %v4630_v8  ;;  %v4706_v8 = vld [vmem:[%s6877_s1 + $0xc00] ss:$16 sps:$4 sm:$0xff]  }
  0xb0   :  { %3400 = vmatpush2.bf16.msra.mxu1 %v4633_v9  ;;  %3360 = vmatprep.subr.bf16.mxu0 %v4638_v10  ;;  %v4709_v9 = vld [vmem:[%s6877_s1 + $0xe00] ss:$16 sps:$4 sm:$0xff]   ;;  %v4714_v10 = vld [vmem:[%s6877_s1 + $0xde4] ss:$16 sps:$4 sm:$0xff]  }
  0xb1   :  { %3401 = vmatprep.subr.bf16.mxu1 %v4641_v11  ;;  %v4717_v11 = vld [vmem:[%s6877_s1 + $0xfe4] ss:$16 sps:$4 sm:$0xff]  }
  0xb3   :  { %3361 = vmatpush2.bf16.msra.mxu0 %v4636_v12  ;;  %v4712_v12 = vld [vmem:[%s6877_s1 + $0xde0] ss:$16 sps:$4 sm:$0xff]  }
  0xb4   :  { %3402 = vmatpush2.bf16.msra.mxu1 %v4639_v13  ;;  %3362 = vmatprep.subr.bf16.mxu0 %v4644_v14  ;;  %v4715_v13 = vld [vmem:[%s6877_s1 + $0xfe0] ss:$16 sps:$4 sm:$0xff]   ;;  %v4720_v14 = vld [vmem:[%s6877_s1 + $0xdc4] ss:$16 sps:$4 sm:$0xff]  }
  0xb5   :  { %3403 = vmatprep.subr.bf16.mxu1 %v4647_v15  ;;  %v4723_v15 = vld [vmem:[%s6877_s1 + $0xfc4] ss:$16 sps:$4 sm:$0xff]  }
  0xb7   :  { %3363 = vmatpush2.bf16.msra.mxu0 %v4642_v18  ;;  %v4718_v18 = vld [vmem:[%s6877_s1 + $0xdc0] ss:$16 sps:$4 sm:$0xff]  }
  0xb8   :  { %3404 = vmatpush2.bf16.msra.mxu1 %v4645_v19  ;;  %3364 = vmatprep.subr.bf16.mxu0 %v4650_v20  ;;  %v4721_v19 = vld [vmem:[%s6877_s1 + $0xfc0] ss:$16 sps:$4 sm:$0xff]   ;;  %v4726_v20 = vld [vmem:[%s6877_s1 + $0xda4] ss:$16 sps:$4 sm:$0xff]  }
  0xb9   :  { %3405 = vmatprep.subr.bf16.mxu1 %v4653_v21  ;;  %v4729_v21 = vld [vmem:[%s6877_s1 + $0xfa4] ss:$16 sps:$4 sm:$0xff]  }
  0xbb   :  { %3365 = vmatpush2.bf16.msra.mxu0 %v4648_v26  ;;  %v4724_v26 = vld [vmem:[%s6877_s1 + $0xda0] ss:$16 sps:$4 sm:$0xff]  }
  0xbc   :  { %3406 = vmatpush2.bf16.msra.mxu1 %v4651_v27  ;;  %3366 = vmatprep.subr.bf16.mxu0 %v4656_v28  ;;  %v4727_v27 = vld [vmem:[%s6877_s1 + $0xfa0] ss:$16 sps:$4 sm:$0xff]   ;;  %v4732_v28 = vld [vmem:[%s6877_s1 + $0xd84] ss:$16 sps:$4 sm:$0xff]  }
  0xbd   :  { %3407 = vmatprep.subr.bf16.mxu1 %v4659_v29  ;;  %v4735_v29 = vld [vmem:[%s6877_s1 + $0xf84] ss:$16 sps:$4 sm:$0xff]  }
  0xbf   :  { %3367 = vmatpush2.bf16.msra.mxu0 %v4654_v30  ;;  %v4730_v30 = vld [vmem:[%s6877_s1 + $0xd80] ss:$16 sps:$4 sm:$0xff]  }
  0xc0   :  { %3408 = vmatpush2.bf16.msra.mxu1 %v4657_v31  ;;  %3418 = vmatprep.subr.bf16.mxu0 %v4666_v32  ;;  %v4733_v31 = vld [vmem:[%s6877_s1 + $0xf80] ss:$16 sps:$4 sm:$0xff]   ;;  %v4738_v32 = vld [vmem:[%s6877_s1 + $0xd64] ss:$16 sps:$4 sm:$0xff]  }
  0xc1   :  { %3459 = vmatprep.subr.bf16.mxu1 %v4669_v33  ;;  %v4741_v33 = vld [vmem:[%s6877_s1 + $0xf64] ss:$16 sps:$4 sm:$0xff]  }
  0xc2   :  { %3369 = vmatmul.mubr.bf16.vlgmr.msra.gmra.mxu0 %v5829_v38 }
  0xc3   :  { %3410 = vmatmul.mubr.bf16.vlgmr.msra.gmra.mxu1 %v5833_v39  ;;  %3419 = vmatpush1.bf16.msra.mxu0 %v4664_v34  ;;  %v4736_v34 = vld [vmem:[%s6877_s1 + $0xd60] ss:$16 sps:$4 sm:$0xff]  }
  0xc4   :  { %3460 = vmatpush1.bf16.msra.mxu1 %v4667_v41  ;;  %3420 = vmatprep.subr.bf16.mxu0 %v4672_v22  ;;  %v4739_v41 = vld [vmem:[%s6877_s1 + $0xf60] ss:$16 sps:$4 sm:$0xff]   ;;  %v4744_v22 = vld [vmem:[%s6877_s1 + $0xd44] ss:$16 sps:$4 sm:$0xff]  }
  0xc5   :  { %3461 = vmatprep.subr.bf16.mxu1 %v4675_v23  ;;  %3450 = vmatprep.mubr.bf16.mxu0 %v5851_v42  ;;  %v4747_v23 = vld [vmem:[%s6877_s1 + $0xf44] ss:$16 sps:$4 sm:$0xff]  }
  0xc6   :  { %3491 = vmatprep.mubr.bf16.mxu1 %v5855_v43 }
  0xc7   :  { %3421 = vmatpush1.bf16.msra.mxu0 %v4670_v44  ;;  %v4742_v44 = vld [vmem:[%s6877_s1 + $0xd40] ss:$16 sps:$4 sm:$0xff]  }
  0xc8   :  { %3462 = vmatpush1.bf16.msra.mxu1 %v4673_v45  ;;  %3422 = vmatprep.subr.bf16.mxu0 %v4678_v46  ;;  %v4745_v45 = vld [vmem:[%s6877_s1 + $0xf40] ss:$16 sps:$4 sm:$0xff]   ;;  %v536_v46 = vlaneseq }
  0xc9   :  { %3463 = vmatprep.subr.bf16.mxu1 %v4681_v48  ;;  %v4750_v48 = vld [vmem:[%s6877_s1 + $0xd24] ss:$16 sps:$4 sm:$0xff]  }
  0xcb   :  { %3423 = vmatpush1.bf16.msra.mxu0 %v4676_v49  ;;  %v4753_v49 = vld [vmem:[%s6877_s1 + $0xf24] ss:$16 sps:$4 sm:$0xff]  }
  0xcc   :  { %3464 = vmatpush1.bf16.msra.mxu1 %v4679_v50  ;;  %3424 = vmatprep.subr.bf16.mxu0 %v4684_v52  ;;  %v4748_v50 = vld [vmem:[%s6877_s1 + $0xd20] ss:$16 sps:$4 sm:$0xff]  }
  0xcd   :  { %3465 = vmatprep.subr.bf16.mxu1 %v4687_v53  ;;  %v4751_v52 = vld [vmem:[%s6877_s1 + $0xf20] ss:$16 sps:$4 sm:$0xff]   ;;  %v6023_v53 = vshrl.u32 %v536_v46, 7  ;;  %v4797_v46 = vld [vmem:[%s6877_s1 + $0x248] ss:$16 sps:$4 sm:$0xff]  }
  0xcf   :  { %3425 = vmatpush1.bf16.msra.mxu0 %v4682_v54  ;;  %v4756_v54 = vld [vmem:[%s6877_s1 + $0xd04] ss:$16 sps:$4 sm:$0xff]  }
  0xd0   :  { %3466 = vmatpush1.bf16.msra.mxu1 %v4685_v55  ;;  %3426 = vmatprep.subr.bf16.mxu0 %v4690_v56  ;;  %v4759_v55 = vld [vmem:[%s6877_s1 + $0xf04] ss:$16 sps:$4 sm:$0xff]   ;;  %v4754_v56 = vld [vmem:[%s6877_s1 + $0xd00] ss:$16 sps:$4 sm:$0xff]  }
  0xd1   :  { %3467 = vmatprep.subr.bf16.mxu1 %v4693_v57  ;;  %v4757_v57 = vld [vmem:[%s6877_s1 + $0xf00] ss:$16 sps:$4 sm:$0xff]  }
  0xd3   :  { %3427 = vmatpush1.bf16.msra.mxu0 %v4688_v58  ;;  %v534_v58 = vld [vmem:[%s6879_s2] sm:$0xf] }
  0xd4   :  { %3468 = vmatpush1.bf16.msra.mxu1 %v4691_v59  ;;  %3428 = vmatprep.subr.bf16.mxu0 %v4696_v60  ;;  %v538_v59 = vsub.s32 0, %v6023_v53  ;;  %v4766_v60 = vld [vmem:[%s6877_s1 + $0xec] ss:$16 sps:$4 sm:$0xff]  }
  0xd5   :  { %3469 = vmatprep.subr.bf16.mxu1 %v4699_v61  ;;  %v4769_v61 = vld [vmem:[%s6877_s1 + $0x2ec] ss:$16 sps:$4 sm:$0xff]  }
  0xd7   :  { %3429 = vmatpush1.bf16.msra.mxu0 %v4694_v62  ;;  %v542_v62 = vsub.s32 1, %v6023_v53 }
  0xd8   :  { %3470 = vmatpush1.bf16.msra.mxu1 %v4697_v63  ;;  %3430 = vmatprep.subr.bf16.mxu0 %v4702_v0  ;;  %v6050_v63 = vcombine.low %v5825_v35, %v5825_v35  ;;  %v6054_v0 = vcombine.low %v5838_v40, %v5838_v40  ;;  %v4772_v35 = vld [vmem:[%s6877_s1 + $0xcc] ss:$16 sps:$4 sm:$0xff]  }
  0xd9   :  { %3471 = vmatprep.subr.bf16.mxu1 %v4705_v1  ;;  %v4764_v1 = vld [vmem:[%s6877_s1 + $0xe8] ss:$16 sps:$4 sm:$0xff]   ;;  %v4775_v40 = vld [vmem:[%s6877_s1 + $0x2cc] ss:$16 sps:$4 sm:$0xff]  }
  0xdb   :  { %3431 = vmatpush1.bf16.msra.mxu0 %v4700_v2  ;;  %v539_v2 = vrot.slane %v534_v58, %v538_v59  ;;  %v4817_v59 = vld [vmem:[%s6877_s1 + $0x3ec] ss:$16 sps:$4 sm:$0xff]  }
  0xdc   :  { %3472 = vmatpush1.bf16.msra.mxu1 %v4703_v3  ;;  %3432 = vmatprep.subr.bf16.mxu0 %v4708_v4  ;;  %v4767_v3 = vld [vmem:[%s6877_s1 + $0x2e8] ss:$16 sps:$4 sm:$0xff]   ;;  %v543_v4 = vrot.slane %v534_v58, %v542_v62  ;;  %v4814_v58 = vld [vmem:[%s6877_s1 + $0x1ec] ss:$16 sps:$4 sm:$0xff]  }
  0xdd   :  { %3473 = vmatprep.subr.bf16.mxu1 %v4711_v5  ;;  %v4820_v62 = vld [vmem:[%s6877_s1 + $0x1cc] ss:$16 sps:$4 sm:$0xff]  }
  0xdf   :  { %3433 = vmatpush1.bf16.msra.mxu0 %v4706_v8 }
  0xe0   :  { %3474 = vmatpush1.bf16.msra.mxu1 %v4709_v9  ;;  %3434 = vmatprep.subr.bf16.mxu0 %v4714_v10  ;;  %v4770_v9 = vld [vmem:[%s6877_s1 + $0xc8] ss:$16 sps:$4 sm:$0xff]  }
  0xe1   :  { %3475 = vmatprep.subr.bf16.mxu1 %v4717_v11  ;;  %v4773_v11 = vld [vmem:[%s6877_s1 + $0x2c8] ss:$16 sps:$4 sm:$0xff]  }
  0xe3   :  { %3435 = vmatpush2.bf16.msra.mxu0 %v4712_v12 }
  0xe4   :  { %3476 = vmatpush2.bf16.msra.mxu1 %v4715_v13  ;;  %3436 = vmatprep.subr.bf16.mxu0 %v4720_v14  ;;  %v4778_v14 = vld [vmem:[%s6877_s1 + $0xac] ss:$16 sps:$4 sm:$0xff]  }
  0xe5   :  { %3477 = vmatprep.subr.bf16.mxu1 %v4723_v15  ;;  %v4781_v15 = vld [vmem:[%s6877_s1 + $0x2ac] ss:$16 sps:$4 sm:$0xff]  }
  0xe7   :  { %3437 = vmatpush2.bf16.msra.mxu0 %v4718_v18 }
  0xe8   :  { %3478 = vmatpush2.bf16.msra.mxu1 %v4721_v19  ;;  %3438 = vmatprep.subr.bf16.mxu0 %v4726_v20 }
  0xe9   :  { %3479 = vmatprep.subr.bf16.mxu1 %v4729_v21 }
  0xeb   :  { %3439 = vmatpush2.bf16.msra.mxu0 %v4724_v26  ;;  %v4776_v26 = vld [vmem:[%s6877_s1 + $0xa8] ss:$16 sps:$4 sm:$0xff]  }
  0xec   :  { %3480 = vmatpush2.bf16.msra.mxu1 %v4727_v27  ;;  %3440 = vmatprep.subr.bf16.mxu0 %v4732_v28  ;;  %v4779_v28 = vld [vmem:[%s6877_s1 + $0x2a8] ss:$16 sps:$4 sm:$0xff]  }
  0xed   :  { %3481 = vmatprep.subr.bf16.mxu1 %v4735_v29 }
  0xef   :  { %3441 = vmatpush2.bf16.msra.mxu0 %v4730_v30 }
  0xf0   :  { %3482 = vmatpush2.bf16.msra.mxu1 %v4733_v31  ;;  %3442 = vmatprep.subr.bf16.mxu0 %v4738_v32  ;;  %v4782_v31 = vld [vmem:[%s6877_s1 + $0x88] ss:$16 sps:$4 sm:$0xff]  }
  0xf1   :  { %3483 = vmatprep.subr.bf16.mxu1 %v4741_v33  ;;  %v4785_v32 = vld [vmem:[%s6877_s1 + $0x288] ss:$16 sps:$4 sm:$0xff]   ;;  %v4790_v33 = vld [vmem:[%s6877_s1 + $0x6c] ss:$16 sps:$4 sm:$0xff]  }
  0xf3   :  { %3443 = vmatpush2.bf16.msra.mxu0 %v4736_v34  ;;  %v4793_v34 = vld [vmem:[%s6877_s1 + $0x26c] ss:$16 sps:$4 sm:$0xff]  }
  0xf4   :  { %3484 = vmatpush2.bf16.msra.mxu1 %v4739_v41  ;;  %3444 = vmatprep.subr.bf16.mxu0 %v4744_v22  ;;  %v4788_v41 = vld [vmem:[%s6877_s1 + $0x68] ss:$16 sps:$4 sm:$0xff]  }
  0xf5   :  { %3485 = vmatprep.subr.bf16.mxu1 %v4747_v23  ;;  %v4791_v22 = vld [vmem:[%s6877_s1 + $0x268] ss:$16 sps:$4 sm:$0xff]   ;;  %v4796_v23 = vld [vmem:[%s6877_s1 + $0x4c] ss:$16 sps:$4 sm:$0xff]  }
  0xf7   :  { %3445 = vmatpush2.bf16.msra.mxu0 %v4742_v44  ;;  %v4799_v44 = vld [vmem:[%s6877_s1 + $0x24c] ss:$16 sps:$4 sm:$0xff]  }
  0xf8   :  { %3486 = vmatpush2.bf16.msra.mxu1 %v4745_v45  ;;  %3446 = vmatprep.subr.bf16.mxu0 %v4750_v48  ;;  %v4794_v45 = vld [vmem:[%s6877_s1 + $0x48] ss:$16 sps:$4 sm:$0xff]   ;;  %v4802_v48 = vld [vmem:[%s6877_s1 + $0x2c] ss:$16 sps:$4 sm:$0xff]  }
  0xf9   :  { %3487 = vmatprep.subr.bf16.mxu1 %v4753_v49  ;;  %v4805_v49 = vld [vmem:[%s6877_s1 + $0x22c] ss:$16 sps:$4 sm:$0xff]  }
  0xfb   :  { %3447 = vmatpush2.bf16.msra.mxu0 %v4748_v50  ;;  %v4800_v50 = vld [vmem:[%s6877_s1 + $0x28] ss:$16 sps:$4 sm:$0xff]  }
  0xfc   :  { %3488 = vmatpush2.bf16.msra.mxu1 %v4751_v52  ;;  %3448 = vmatprep.subr.bf16.mxu0 %v4756_v54  ;;  %v4803_v52 = vld [vmem:[%s6877_s1 + $0x228] ss:$16 sps:$4 sm:$0xff]   ;;  %v4808_v54 = vld [vmem:[%s6877_s1 + $0xc] ss:$16 sps:$4 sm:$0xff]  }
  0xfd   :  { %3489 = vmatprep.subr.bf16.mxu1 %v4759_v55  ;;  %v4811_v55 = vld [vmem:[%s6877_s1 + $0x20c] ss:$16 sps:$4 sm:$0xff]  }
  0xff   :  { %3449 = vmatpush2.bf16.msra.mxu0 %v4754_v56  ;;  %v4806_v56 = vld [vmem:[%s6877_s1 + $0x8] ss:$16 sps:$4 sm:$0xff]  }
 0x100   :  { %3490 = vmatpush2.bf16.msra.mxu1 %v4757_v57  ;;  %3500 = vmatprep.subr.bf16.mxu0 %v4766_v60  ;;  %v4809_v57 = vld [vmem:[%s6877_s1 + $0x208] ss:$16 sps:$4 sm:$0xff]  }
 0x101   :  { %3541 = vmatprep.subr.bf16.mxu1 %v4769_v61  ;;  %v4812_v60 = vld [vmem:[%s6877_s1 + $0x1e8] ss:$16 sps:$4 sm:$0xff]  }
 0x102   :  { %v3206_v5 = vpop.f32.mrf.mxu0  ;;  %3451 = vmatmul.mubr.bf16.vlgmr.msra.gmra.mxu0 %v6050_v63  ;;  %v4815_v61 = vld [vmem:[%s6877_s1 + $0x3e8] ss:$16 sps:$4 sm:$0xff]  }
 0x103   :  { %v3247_v8 = vpop.f32.mrf.mxu1  ;;  %3492 = vmatmul.mubr.bf16.vlgmr.msra.gmra.mxu1 %v6054_v0  ;;  %v3207_v10 = vadd.f32 %v3206_v5, %v539_v2  ;;  %3501 = vmatpush1.bf16.msra.mxu0 %v4764_v1  ;;  %v4823_v1 = vld [vmem:[%s6877_s1 + $0x3cc] ss:$16 sps:$4 sm:$0xff]   ;;  %v4818_v2 = vld [vmem:[%s6877_s1 + $0x1c8] ss:$16 sps:$4 sm:$0xff]  }
 0x104   :  { %3542 = vmatpush1.bf16.msra.mxu1 %v4767_v3  ;;  %v3208_v12 = vpop.f32.mrf.mxu0  ;;  %3502 = vmatprep.subr.bf16.mxu0 %v4772_v35  ;;  %v4821_v3 = vld [vmem:[%s6877_s1 + $0x3c8] ss:$16 sps:$4 sm:$0xff]   ;;  %v4826_v35 = vld [vmem:[%s6877_s1 + $0x1ac] ss:$16 sps:$4 sm:$0xff]  }
 0x105   :  { %v3249_v13 = vpop.f32.mrf.mxu1  ;;  %3543 = vmatprep.subr.bf16.mxu1 %v4775_v40  ;;  %v6082_v18 = vadd.f32 %v3247_v8, %v3207_v10  ;;  %v3209_v19 = vadd.f32 %v3208_v12, %v543_v4  ;;  %3532 = vmatprep.mubr.bf16.mxu0 %v5310_v47  ;;  %v4784_v47 = vld [vmem:[%s6877_s1 + $0x8c] ss:$16 sps:$4 sm:$0xff]   ;;  %v4824_v4 = vld [vmem:[%s6877_s1 + $0x1a8] ss:$16 sps:$4 sm:$0xff]  }
 0x106   :  { %3573 = vmatprep.mubr.bf16.mxu1 %v5321_v51  ;;  %v3210_v20 = vpop.f32.mrf.mxu0  ;;  %v4787_v51 = vld [vmem:[%s6877_s1 + $0x28c] ss:$16 sps:$4 sm:$0xff]   ;;  %v4827_v5 = vld [vmem:[%s6877_s1 + $0x3a8] ss:$16 sps:$4 sm:$0xff]  }
 0x107   :  { %v3251_v21 = vpop.f32.mrf.mxu1  ;;  %v6089_v27 = vadd.f32 %v3249_v13, %v3209_v19  ;;  %3503 = vmatpush1.bf16.msra.mxu0 %v4770_v9  ;;  %v4829_v40 = vld [vmem:[%s6877_s1 + $0x3ac] ss:$16 sps:$4 sm:$0xff]   ;;  %v4830_v10 = vld [vmem:[%s6877_s1 + $0x188] ss:$16 sps:$4 sm:$0xff]  }
 0x108   :  { %3544 = vmatpush1.bf16.msra.mxu1 %v4773_v11  ;;  %v3211_v29 = vpop.f32.mrf.mxu0  ;;  %3504 = vmatprep.subr.bf16.mxu0 %v4778_v14  ;;  %v4832_v8 = vld [vmem:[%s6877_s1 + $0x18c] ss:$16 sps:$4 sm:$0xff]   ;;  %v4833_v11 = vld [vmem:[%s6877_s1 + $0x388] ss:$16 sps:$4 sm:$0xff]  }
 0x109   :  { %v3252_v30 = vpop.f32.mrf.mxu1  ;;  %3545 = vmatprep.subr.bf16.mxu1 %v4781_v15  ;;  %v4835_v9 = vld [vmem:[%s6877_s1 + $0x38c] ss:$16 sps:$4 sm:$0xff]   ;;  %v4836_v14 = vld [vmem:[%s6877_s1 + $0x168] ss:$16 sps:$4 sm:$0xff]  }
 0x10a   :  { %v4838_v12 = vld [vmem:[%s6877_s1 + $0x16c] ss:$16 sps:$4 sm:$0xff]   ;;  %v4839_v15 = vld [vmem:[%s6877_s1 + $0x368] ss:$16 sps:$4 sm:$0xff]  }
 0x10b   :  { %3505 = vmatpush1.bf16.msra.mxu0 %v4776_v26  ;;  %v4841_v13 = vld [vmem:[%s6877_s1 + $0x36c] ss:$16 sps:$4 sm:$0xff]   ;;  %v4842_v21 = vld [vmem:[%s6877_s1 + $0x148] ss:$16 sps:$4 sm:$0xff]  }
 0x10c   :  { %3546 = vmatpush1.bf16.msra.mxu1 %v4779_v28  ;;  %3506 = vmatprep.subr.bf16.mxu0 %v4784_v47  ;;  %v4844_v19 = vld [vmem:[%s6877_s1 + $0x14c] ss:$16 sps:$4 sm:$0xff]   ;;  %v4845_v26 = vld [vmem:[%s6877_s1 + $0x348] ss:$16 sps:$4 sm:$0xff]  }
 0x10d   :  { %3547 = vmatprep.subr.bf16.mxu1 %v4787_v51  ;;  %v4847_v20 = vld [vmem:[%s6877_s1 + $0x34c] ss:$16 sps:$4 sm:$0xff]   ;;  %v4848_v30 = vld [vmem:[%s6877_s1 + $0x128] ss:$16 sps:$4 sm:$0xff]  }
 0x10e   :  { %v4850_v28 = vld [vmem:[%s6877_s1 + $0x12c] ss:$16 sps:$4 sm:$0xff]   ;;  %v4851_v47 = vld [vmem:[%s6877_s1 + $0x328] ss:$16 sps:$4 sm:$0xff]  }
 0x10f   :  { %3507 = vmatpush1.bf16.msra.mxu0 %v4782_v31  ;;  %v4853_v29 = vld [vmem:[%s6877_s1 + $0x32c] ss:$16 sps:$4 sm:$0xff]  }
 0x110   :  { %3548 = vmatpush1.bf16.msra.mxu1 %v4785_v32  ;;  %3508 = vmatprep.subr.bf16.mxu0 %v4790_v33  ;;  %v4856_v51 = vld [vmem:[%s6877_s1 + $0x10c] ss:$16 sps:$4 sm:$0xff]   ;;  %v4854_v32 = vld [vmem:[%s6877_s1 + $0x108] ss:$16 sps:$4 sm:$0xff]  }
 0x111   :  { %3549 = vmatprep.subr.bf16.mxu1 %v4793_v34  ;;  %v4859_v31 = vld [vmem:[%s6877_s1 + $0x30c] ss:$16 sps:$4 sm:$0xff]   ;;  %v4857_v33 = vld [vmem:[%s6877_s1 + $0x308] ss:$16 sps:$4 sm:$0xff]  }
 0x112   :  { %v4862_v34 = vld [vmem:[%s6877_s1 + $0x4ec] ss:$16 sps:$4 sm:$0xff]  }
 0x113   :  { %3509 = vmatpush1.bf16.msra.mxu0 %v4788_v41  ;;  %v4865_v41 = vld [vmem:[%s6877_s1 + $0x6ec] ss:$16 sps:$4 sm:$0xff]  }
 0x114   :  { %3550 = vmatpush1.bf16.msra.mxu1 %v4791_v22  ;;  %3510 = vmatprep.subr.bf16.mxu0 %v4796_v23  ;;  %v4860_v22 = vld [vmem:[%s6877_s1 + $0x4e8] ss:$16 sps:$4 sm:$0xff]  }
 0x115   :  { %3551 = vmatprep.subr.bf16.mxu1 %v4799_v44  ;;  %v4863_v23 = vld [vmem:[%s6877_s1 + $0x6e8] ss:$16 sps:$4 sm:$0xff]   ;;  %v4868_v44 = vld [vmem:[%s6877_s1 + $0x4cc] ss:$16 sps:$4 sm:$0xff]  }
 0x117   :  { %3511 = vmatpush1.bf16.msra.mxu0 %v4794_v45  ;;  %v4871_v45 = vld [vmem:[%s6877_s1 + $0x6cc] ss:$16 sps:$4 sm:$0xff]  }
 0x118   :  { %3552 = vmatpush1.bf16.msra.mxu1 %v4797_v46  ;;  %3512 = vmatprep.subr.bf16.mxu0 %v4802_v48 }
 0x119   :  { %3553 = vmatprep.subr.bf16.mxu1 %v4805_v49 }
 0x11b   :  { %3513 = vmatpush1.bf16.msra.mxu0 %v4800_v50  ;;  %v4866_v50 = vld [vmem:[%s6877_s1 + $0x4c8] ss:$16 sps:$4 sm:$0xff]  }
 0x11c   :  { %3554 = vmatpush1.bf16.msra.mxu1 %v4803_v52  ;;  %3514 = vmatprep.subr.bf16.mxu0 %v4808_v54  ;;  %v4869_v52 = vld [vmem:[%s6877_s1 + $0x6c8] ss:$16 sps:$4 sm:$0xff]  }
 0x11d   :  { %3555 = vmatprep.subr.bf16.mxu1 %v4811_v55 }
 0x11f   :  { %3515 = vmatpush1.bf16.msra.mxu0 %v4806_v56 }
 0x120   :  { %3556 = vmatpush1.bf16.msra.mxu1 %v4809_v57  ;;  %3516 = vmatprep.subr.bf16.mxu0 %v4814_v58 }
 0x121   :  { %3557 = vmatprep.subr.bf16.mxu1 %v4817_v59 }
 0x123   :  { %3517 = vmatpush2.bf16.msra.mxu0 %v4812_v60  ;;  %v4872_v60 = vld [vmem:[%s6877_s1 + $0x4a8] ss:$16 sps:$4 sm:$0xff]  }
 0x124   :  { %3558 = vmatpush2.bf16.msra.mxu1 %v4815_v61  ;;  %3518 = vmatprep.subr.bf16.mxu0 %v4820_v62  ;;  %v4875_v61 = vld [vmem:[%s6877_s1 + $0x6a8] ss:$16 sps:$4 sm:$0xff]  }
 0x125   :  { %3559 = vmatprep.subr.bf16.mxu1 %v4823_v1  ;;  %v4878_v1 = vld [vmem:[%s6877_s1 + $0x488] ss:$16 sps:$4 sm:$0xff]  }
 0x127   :  { %3519 = vmatpush2.bf16.msra.mxu0 %v4818_v2  ;;  %v4881_v2 = vld [vmem:[%s6877_s1 + $0x688] ss:$16 sps:$4 sm:$0xff]  }
 0x128   :  { %3560 = vmatpush2.bf16.msra.mxu1 %v4821_v3  ;;  %3520 = vmatprep.subr.bf16.mxu0 %v4826_v35  ;;  %v4886_v3 = vld [vmem:[%s6877_s1 + $0x46c] ss:$16 sps:$4 sm:$0xff]  }
 0x129   :  { %3561 = vmatprep.subr.bf16.mxu1 %v4829_v40  ;;  %v4889_v35 = vld [vmem:[%s6877_s1 + $0x66c] ss:$16 sps:$4 sm:$0xff]   ;;  %v4884_v40 = vld [vmem:[%s6877_s1 + $0x468] ss:$16 sps:$4 sm:$0xff]  }
 0x12b   :  { %3521 = vmatpush2.bf16.msra.mxu0 %v4824_v4  ;;  %v4887_v4 = vld [vmem:[%s6877_s1 + $0x668] ss:$16 sps:$4 sm:$0xff]  }
 0x12c   :  { %3562 = vmatpush2.bf16.msra.mxu1 %v4827_v5  ;;  %3522 = vmatprep.subr.bf16.mxu0 %v4832_v8  ;;  %v4892_v5 = vld [vmem:[%s6877_s1 + $0x44c] ss:$16 sps:$4 sm:$0xff]  }
 0x12d   :  { %3563 = vmatprep.subr.bf16.mxu1 %v4835_v9  ;;  %v4895_v8 = vld [vmem:[%s6877_s1 + $0x64c] ss:$16 sps:$4 sm:$0xff]   ;;  %v4890_v9 = vld [vmem:[%s6877_s1 + $0x448] ss:$16 sps:$4 sm:$0xff]  }
 0x12f   :  { %3523 = vmatpush2.bf16.msra.mxu0 %v4830_v10  ;;  %v4893_v10 = vld [vmem:[%s6877_s1 + $0x648] ss:$16 sps:$4 sm:$0xff]  }
 0x130   :  { %3564 = vmatpush2.bf16.msra.mxu1 %v4833_v11  ;;  %3524 = vmatprep.subr.bf16.mxu0 %v4838_v12  ;;  %v4898_v11 = vld [vmem:[%s6877_s1 + $0x42c] ss:$16 sps:$4 sm:$0xff]  }
 0x131   :  { %3565 = vmatprep.subr.bf16.mxu1 %v4841_v13  ;;  %v4901_v12 = vld [vmem:[%s6877_s1 + $0x62c] ss:$16 sps:$4 sm:$0xff]   ;;  %v4896_v13 = vld [vmem:[%s6877_s1 + $0x428] ss:$16 sps:$4 sm:$0xff]  }
 0x133   :  { %3525 = vmatpush2.bf16.msra.mxu0 %v4836_v14  ;;  %v4899_v14 = vld [vmem:[%s6877_s1 + $0x628] ss:$16 sps:$4 sm:$0xff]  }
 0x134   :  { %3566 = vmatpush2.bf16.msra.mxu1 %v4839_v15  ;;  %3526 = vmatprep.subr.bf16.mxu0 %v4844_v19  ;;  %v4904_v15 = vld [vmem:[%s6877_s1 + $0x40c] ss:$16 sps:$4 sm:$0xff]  }
 0x135   :  { %3567 = vmatprep.subr.bf16.mxu1 %v4847_v20  ;;  %v4907_v19 = vld [vmem:[%s6877_s1 + $0x60c] ss:$16 sps:$4 sm:$0xff]   ;;  %v4902_v20 = vld [vmem:[%s6877_s1 + $0x408] ss:$16 sps:$4 sm:$0xff]  }
 0x137   :  { %3527 = vmatpush2.bf16.msra.mxu0 %v4842_v21  ;;  %v4905_v21 = vld [vmem:[%s6877_s1 + $0x608] ss:$16 sps:$4 sm:$0xff]  }
 0x138   :  { %3568 = vmatpush2.bf16.msra.mxu1 %v4845_v26  ;;  %3528 = vmatprep.subr.bf16.mxu0 %v4850_v28  ;;  %v4910_v26 = vld [vmem:[%s6877_s1 + $0x5ec] ss:$16 sps:$4 sm:$0xff]  }
 0x139   :  { %3569 = vmatprep.subr.bf16.mxu1 %v4853_v29  ;;  %v4913_v28 = vld [vmem:[%s6877_s1 + $0x7ec] ss:$16 sps:$4 sm:$0xff]   ;;  %v4908_v29 = vld [vmem:[%s6877_s1 + $0x5e8] ss:$16 sps:$4 sm:$0xff]  }
 0x13b   :  { %3529 = vmatpush2.bf16.msra.mxu0 %v4848_v30  ;;  %v4911_v30 = vld [vmem:[%s6877_s1 + $0x7e8] ss:$16 sps:$4 sm:$0xff]  }
 0x13c   :  { %3570 = vmatpush2.bf16.msra.mxu1 %v4851_v47  ;;  %3530 = vmatprep.subr.bf16.mxu0 %v4856_v51  ;;  %v4916_v47 = vld [vmem:[%s6877_s1 + $0x5cc] ss:$16 sps:$4 sm:$0xff]  }
 0x13d   :  { %3571 = vmatprep.subr.bf16.mxu1 %v4859_v31  ;;  %v4919_v51 = vld [vmem:[%s6877_s1 + $0x7cc] ss:$16 sps:$4 sm:$0xff]   ;;  %v4914_v31 = vld [vmem:[%s6877_s1 + $0x5c8] ss:$16 sps:$4 sm:$0xff]  }
 0x13f   :  { %3531 = vmatpush2.bf16.msra.mxu0 %v4854_v32  ;;  %v4917_v32 = vld [vmem:[%s6877_s1 + $0x7c8] ss:$16 sps:$4 sm:$0xff]  }
 0x140   :  { %3572 = vmatpush2.bf16.msra.mxu1 %v4857_v33  ;;  %3582 = vmatprep.subr.bf16.mxu0 %v4862_v34  ;;  %v4922_v33 = vld [vmem:[%s6877_s1 + $0x5ac] ss:$16 sps:$4 sm:$0xff]  }
 0x141   :  { %3623 = vmatprep.subr.bf16.mxu1 %v4865_v41  ;;  %v4925_v34 = vld [vmem:[%s6877_s1 + $0x7ac] ss:$16 sps:$4 sm:$0xff]   ;;  %v4920_v41 = vld [vmem:[%s6877_s1 + $0x5a8] ss:$16 sps:$4 sm:$0xff]  }
 0x142   :  { %v3288_v46 = vpop.f32.mrf.mxu0  ;;  %3533 = vmatmul.mubr.bf16.vlgmr.msra.gmra.mxu0 %v5379_v6  ;;  %v4874_v6 = vld [vmem:[%s6877_s1 + $0x4ac] ss:$16 sps:$4 sm:$0xff]  }
 0x143   :  { %v3329_v48 = vpop.f32.mrf.mxu1  ;;  %3574 = vmatmul.mubr.bf16.vlgmr.msra.gmra.mxu1 %v5381_v7  ;;  %v3289_v49 = vadd.f32 %v3288_v46, %v6082_v18  ;;  %3583 = vmatpush1.bf16.msra.mxu0 %v4860_v22  ;;  %v4877_v7 = vld [vmem:[%s6877_s1 + $0x6ac] ss:$16 sps:$4 sm:$0xff]   ;;  %v4923_v22 = vld [vmem:[%s6877_s1 + $0x7a8] ss:$16 sps:$4 sm:$0xff]  }
 0x144   :  { %3624 = vmatpush1.bf16.msra.mxu1 %v4863_v23  ;;  %v3290_v54 = vpop.f32.mrf.mxu0  ;;  %3584 = vmatprep.subr.bf16.mxu0 %v4868_v44  ;;  %v4928_v23 = vld [vmem:[%s6877_s1 + $0x58c] ss:$16 sps:$4 sm:$0xff]   ;;  %v4929_v46 = vld [vmem:[%s6877_s1 + $0x788] ss:$16 sps:$4 sm:$0xff]  }
 0x145   :  { %v3331_v55 = vpop.f32.mrf.mxu1  ;;  %3625 = vmatprep.subr.bf16.mxu1 %v4871_v45  ;;  %v6283_v18 = vadd.f32 %v3329_v48, %v3289_v49  ;;  %v3291_v56 = vadd.f32 %v3290_v54, %v6089_v27  ;;  %3614 = vmatprep.mubr.bf16.mxu0 %v5475_v36  ;;  %v4880_v36 = vld [vmem:[%s6877_s1 + $0x48c] ss:$16 sps:$4 sm:$0xff]   ;;  %v4926_v45 = vld [vmem:[%s6877_s1 + $0x588] ss:$16 sps:$4 sm:$0xff]  }
 0x146   :  { %3655 = vmatprep.mubr.bf16.mxu1 %v5479_v37  ;;  %v3292_v57 = vpop.f32.mrf.mxu0  ;;  %v4883_v37 = vld [vmem:[%s6877_s1 + $0x68c] ss:$16 sps:$4 sm:$0xff]  }
 0x147   :  { %v3333_v58 = vpop.f32.mrf.mxu1  ;;  %v6288_v59 = vadd.f32 %v3331_v55, %v3291_v56  ;;  %3585 = vmatpush1.bf16.msra.mxu0 %v4866_v50  ;;  %v4931_v44 = vld [vmem:[%s6877_s1 + $0x78c] ss:$16 sps:$4 sm:$0xff]   ;;  %v4932_v50 = vld [vmem:[%s6877_s1 + $0x568] ss:$16 sps:$4 sm:$0xff]  }
 0x148   :  { %3626 = vmatpush1.bf16.msra.mxu1 %v4869_v52  ;;  %v3293_v62 = vpop.f32.mrf.mxu0  ;;  %3586 = vmatprep.subr.bf16.mxu0 %v4874_v6  ;;  %v4934_v48 = vld [vmem:[%s6877_s1 + $0x56c] ss:$16 sps:$4 sm:$0xff]   ;;  %v4935_v52 = vld [vmem:[%s6877_s1 + $0x768] ss:$16 sps:$4 sm:$0xff]  }
 0x149   :  { %v3334_v27 = vpop.f32.mrf.mxu1  ;;  %3627 = vmatprep.subr.bf16.mxu1 %v4877_v7  ;;  %v4937_v49 = vld [vmem:[%s6877_s1 + $0x76c] ss:$16 sps:$4 sm:$0xff]   ;;  %v4938_v6 = vld [vmem:[%s6877_s1 + $0x548] ss:$16 sps:$4 sm:$0xff]  }
 0x14a   :  { %v4940_v54 = vld [vmem:[%s6877_s1 + $0x54c] ss:$16 sps:$4 sm:$0xff]   ;;  %v4941_v7 = vld [vmem:[%s6877_s1 + $0x748] ss:$16 sps:$4 sm:$0xff]  }
 0x14b   :  { %3587 = vmatpush1.bf16.msra.mxu0 %v4872_v60  ;;  %v4943_v55 = vld [vmem:[%s6877_s1 + $0x74c] ss:$16 sps:$4 sm:$0xff]   ;;  %v4944_v58 = vld [vmem:[%s6877_s1 + $0x528] ss:$16 sps:$4 sm:$0xff]  }
 0x14c   :  { %3628 = vmatpush1.bf16.msra.mxu1 %v4875_v61  ;;  %3588 = vmatprep.subr.bf16.mxu0 %v4880_v36  ;;  %v4946_v56 = vld [vmem:[%s6877_s1 + $0x52c] ss:$16 sps:$4 sm:$0xff]   ;;  %v4947_v60 = vld [vmem:[%s6877_s1 + $0x728] ss:$16 sps:$4 sm:$0xff]  }
 0x14d   :  { %3629 = vmatprep.subr.bf16.mxu1 %v4883_v37  ;;  %v4949_v57 = vld [vmem:[%s6877_s1 + $0x72c] ss:$16 sps:$4 sm:$0xff]   ;;  %v4950_v27 = vld [vmem:[%s6877_s1 + $0x508] ss:$16 sps:$4 sm:$0xff]  }
 0x14e   :  { %v4952_v61 = vld [vmem:[%s6877_s1 + $0x50c] ss:$16 sps:$4 sm:$0xff]   ;;  %v4953_v36 = vld [vmem:[%s6877_s1 + $0x708] ss:$16 sps:$4 sm:$0xff]  }
 0x14f   :  { %3589 = vmatpush1.bf16.msra.mxu0 %v4878_v1  ;;  %v4955_v62 = vld [vmem:[%s6877_s1 + $0x70c] ss:$16 sps:$4 sm:$0xff]  }
 0x150   :  { %3630 = vmatpush1.bf16.msra.mxu1 %v4881_v2  ;;  %3590 = vmatprep.subr.bf16.mxu0 %v4886_v3  ;;  %v4958_v37 = vld [vmem:[%s6877_s1 + $0x8ec] ss:$16 sps:$4 sm:$0xff]   ;;  %v4956_v2 = vld [vmem:[%s6877_s1 + $0x8e8] ss:$16 sps:$4 sm:$0xff]  }
 0x151   :  { %3631 = vmatprep.subr.bf16.mxu1 %v4889_v35  ;;  %v4961_v1 = vld [vmem:[%s6877_s1 + $0xaec] ss:$16 sps:$4 sm:$0xff]   ;;  %v4959_v3 = vld [vmem:[%s6877_s1 + $0xae8] ss:$16 sps:$4 sm:$0xff]  }
 0x152   :  { %v4964_v35 = vld [vmem:[%s6877_s1 + $0x8cc] ss:$16 sps:$4 sm:$0xff]  }
 0x153   :  { %3591 = vmatpush1.bf16.msra.mxu0 %v4884_v40  ;;  %v4967_v40 = vld [vmem:[%s6877_s1 + $0xacc] ss:$16 sps:$4 sm:$0xff]  }
 0x154   :  { %3632 = vmatpush1.bf16.msra.mxu1 %v4887_v4  ;;  %3592 = vmatprep.subr.bf16.mxu0 %v4892_v5 }
 0x155   :  { %3633 = vmatprep.subr.bf16.mxu1 %v4895_v8  ;;  %v4962_v8 = vld [vmem:[%s6877_s1 + $0x8c8] ss:$16 sps:$4 sm:$0xff]  }
 0x157   :  { %3593 = vmatpush1.bf16.msra.mxu0 %v4890_v9  ;;  %v4965_v9 = vld [vmem:[%s6877_s1 + $0xac8] ss:$16 sps:$4 sm:$0xff]  }
 0x158   :  { %3634 = vmatpush1.bf16.msra.mxu1 %v4893_v10  ;;  %3594 = vmatprep.subr.bf16.mxu0 %v4898_v11 }
 0x159   :  { %3635 = vmatprep.subr.bf16.mxu1 %v4901_v12 }
 0x15b   :  { %3595 = vmatpush1.bf16.msra.mxu0 %v4896_v13 }
 0x15c   :  { %3636 = vmatpush1.bf16.msra.mxu1 %v4899_v14  ;;  %3596 = vmatprep.subr.bf16.mxu0 %v4904_v15  ;;  %v4968_v14 = vld [vmem:[%s6877_s1 + $0x8a8] ss:$16 sps:$4 sm:$0xff]  }
 0x15d   :  { %3637 = vmatprep.subr.bf16.mxu1 %v4907_v19  ;;  %v4971_v15 = vld [vmem:[%s6877_s1 + $0xaa8] ss:$16 sps:$4 sm:$0xff]  }
 0x15f   :  { %3597 = vmatpush1.bf16.msra.mxu0 %v4902_v20 }
 0x160   :  { %3638 = vmatpush1.bf16.msra.mxu1 %v4905_v21  ;;  %3598 = vmatprep.subr.bf16.mxu0 %v4910_v26  ;;  %v4974_v21 = vld [vmem:[%s6877_s1 + $0x888] ss:$16 sps:$4 sm:$0xff]  }
 0x161   :  { %3639 = vmatprep.subr.bf16.mxu1 %v4913_v28  ;;  %v4977_v26 = vld [vmem:[%s6877_s1 + $0xa88] ss:$16 sps:$4 sm:$0xff]   ;;  %v4982_v28 = vld [vmem:[%s6877_s1 + $0x86c] ss:$16 sps:$4 sm:$0xff]  }
 0x163   :  { %3599 = vmatpush2.bf16.msra.mxu0 %v4908_v29  ;;  %v4985_v29 = vld [vmem:[%s6877_s1 + $0xa6c] ss:$16 sps:$4 sm:$0xff]  }
 0x164   :  { %3640 = vmatpush2.bf16.msra.mxu1 %v4911_v30  ;;  %3600 = vmatprep.subr.bf16.mxu0 %v4916_v47  ;;  %v4980_v30 = vld [vmem:[%s6877_s1 + $0x868] ss:$16 sps:$4 sm:$0xff]  }
 0x165   :  { %3641 = vmatprep.subr.bf16.mxu1 %v4919_v51  ;;  %v4983_v47 = vld [vmem:[%s6877_s1 + $0xa68] ss:$16 sps:$4 sm:$0xff]   ;;  %v4988_v51 = vld [vmem:[%s6877_s1 + $0x84c] ss:$16 sps:$4 sm:$0xff]  }
 0x167   :  { %3601 = vmatpush2.bf16.msra.mxu0 %v4914_v31  ;;  %v4991_v31 = vld [vmem:[%s6877_s1 + $0xa4c] ss:$16 sps:$4 sm:$0xff]  }
 0x168   :  { %3642 = vmatpush2.bf16.msra.mxu1 %v4917_v32  ;;  %3602 = vmatprep.subr.bf16.mxu0 %v4922_v33  ;;  %v4986_v32 = vld [vmem:[%s6877_s1 + $0x848] ss:$16 sps:$4 sm:$0xff]  }
 0x169   :  { %3643 = vmatprep.subr.bf16.mxu1 %v4925_v34  ;;  %v4989_v33 = vld [vmem:[%s6877_s1 + $0xa48] ss:$16 sps:$4 sm:$0xff]   ;;  %v4994_v34 = vld [vmem:[%s6877_s1 + $0x82c] ss:$16 sps:$4 sm:$0xff]  }
 0x16b   :  { %3603 = vmatpush2.bf16.msra.mxu0 %v4920_v41  ;;  %v4997_v41 = vld [vmem:[%s6877_s1 + $0xa2c] ss:$16 sps:$4 sm:$0xff]  }
 0x16c   :  { %3644 = vmatpush2.bf16.msra.mxu1 %v4923_v22  ;;  %3604 = vmatprep.subr.bf16.mxu0 %v4928_v23  ;;  %v4992_v22 = vld [vmem:[%s6877_s1 + $0x828] ss:$16 sps:$4 sm:$0xff]  }
 0x16d   :  { %3645 = vmatprep.subr.bf16.mxu1 %v4931_v44  ;;  %v4995_v23 = vld [vmem:[%s6877_s1 + $0xa28] ss:$16 sps:$4 sm:$0xff]   ;;  %v5000_v44 = vld [vmem:[%s6877_s1 + $0x80c] ss:$16 sps:$4 sm:$0xff]  }
 0x16f   :  { %3605 = vmatpush2.bf16.msra.mxu0 %v4926_v45  ;;  %v5003_v45 = vld [vmem:[%s6877_s1 + $0xa0c] ss:$16 sps:$4 sm:$0xff]  }
 0x170   :  { %3646 = vmatpush2.bf16.msra.mxu1 %v4929_v46  ;;  %3606 = vmatprep.subr.bf16.mxu0 %v4934_v48  ;;  %v4998_v46 = vld [vmem:[%s6877_s1 + $0x808] ss:$16 sps:$4 sm:$0xff]  }
 0x171   :  { %3647 = vmatprep.subr.bf16.mxu1 %v4937_v49  ;;  %v5001_v48 = vld [vmem:[%s6877_s1 + $0xa08] ss:$16 sps:$4 sm:$0xff]   ;;  %v5006_v49 = vld [vmem:[%s6877_s1 + $0x9ec] ss:$16 sps:$4 sm:$0xff]  }
 0x173   :  { %3607 = vmatpush2.bf16.msra.mxu0 %v4932_v50  ;;  %v5009_v50 = vld [vmem:[%s6877_s1 + $0xbec] ss:$16 sps:$4 sm:$0xff]  }
 0x174   :  { %3648 = vmatpush2.bf16.msra.mxu1 %v4935_v52  ;;  %3608 = vmatprep.subr.bf16.mxu0 %v4940_v54  ;;  %v5004_v52 = vld [vmem:[%s6877_s1 + $0x9e8] ss:$16 sps:$4 sm:$0xff]  }
 0x175   :  { %3649 = vmatprep.subr.bf16.mxu1 %v4943_v55  ;;  %v5007_v54 = vld [vmem:[%s6877_s1 + $0xbe8] ss:$16 sps:$4 sm:$0xff]   ;;  %v5012_v55 = vld [vmem:[%s6877_s1 + $0x9cc] ss:$16 sps:$4 sm:$0xff]  }
 0x177   :  { %3609 = vmatpush2.bf16.msra.mxu0 %v4938_v6  ;;  %v5015_v6 = vld [vmem:[%s6877_s1 + $0xbcc] ss:$16 sps:$4 sm:$0xff]  }
 0x178   :  { %3650 = vmatpush2.bf16.msra.mxu1 %v4941_v7  ;;  %3610 = vmatprep.subr.bf16.mxu0 %v4946_v56  ;;  %v5010_v7 = vld [vmem:[%s6877_s1 + $0x9c8] ss:$16 sps:$4 sm:$0xff]  }
 0x179   :  { %3651 = vmatprep.subr.bf16.mxu1 %v4949_v57  ;;  %v5013_v56 = vld [vmem:[%s6877_s1 + $0xbc8] ss:$16 sps:$4 sm:$0xff]   ;;  %v5018_v57 = vld [vmem:[%s6877_s1 + $0x9ac] ss:$16 sps:$4 sm:$0xff]  }
 0x17b   :  { %3611 = vmatpush2.bf16.msra.mxu0 %v4944_v58  ;;  %v5021_v58 = vld [vmem:[%s6877_s1 + $0xbac] ss:$16 sps:$4 sm:$0xff]  }
 0x17c   :  { %3652 = vmatpush2.bf16.msra.mxu1 %v4947_v60  ;;  %3612 = vmatprep.subr.bf16.mxu0 %v4952_v61  ;;  %v5016_v60 = vld [vmem:[%s6877_s1 + $0x9a8] ss:$16 sps:$4 sm:$0xff]  }
 0x17d   :  { %3653 = vmatprep.subr.bf16.mxu1 %v4955_v62  ;;  %v5019_v61 = vld [vmem:[%s6877_s1 + $0xba8] ss:$16 sps:$4 sm:$0xff]   ;;  %v5024_v62 = vld [vmem:[%s6877_s1 + $0x98c] ss:$16 sps:$4 sm:$0xff]  }
 0x17f   :  { %3613 = vmatpush2.bf16.msra.mxu0 %v4950_v27  ;;  %v5027_v27 = vld [vmem:[%s6877_s1 + $0xb8c] ss:$16 sps:$4 sm:$0xff]  }
 0x180   :  { %3654 = vmatpush2.bf16.msra.mxu1 %v4953_v36  ;;  %3664 = vmatprep.subr.bf16.mxu0 %v4958_v37  ;;  %v5022_v36 = vld [vmem:[%s6877_s1 + $0x988] ss:$16 sps:$4 sm:$0xff]  }
 0x181   :  { %3705 = vmatprep.subr.bf16.mxu1 %v4961_v1  ;;  %v5025_v37 = vld [vmem:[%s6877_s1 + $0xb88] ss:$16 sps:$4 sm:$0xff]   ;;  %v5030_v1 = vld [vmem:[%s6877_s1 + $0x96c] ss:$16 sps:$4 sm:$0xff]  }
 0x182   :  { %v6470_v4 = vpop.f32.mrf.mxu0  ;;  %3615 = vmatmul.mubr.bf16.vlgmr.msra.gmra.mxu0 %v5599_v16  ;;  %v4970_v16 = vld [vmem:[%s6877_s1 + $0x8ac] ss:$16 sps:$4 sm:$0xff]  }
 0x183   :  { %v6472_v5 = vpop.f32.mrf.mxu1  ;;  %3656 = vmatmul.mubr.bf16.vlgmr.msra.gmra.mxu1 %v5603_v17  ;;  %3665 = vmatpush1.bf16.msra.mxu0 %v4956_v2  ;;  %v4973_v17 = vld [vmem:[%s6877_s1 + $0xaac] ss:$16 sps:$4 sm:$0xff]  }
 0x184   :  { %3706 = vmatpush1.bf16.msra.mxu1 %v4959_v3  ;;  %v6482_v10 = vpop.f32.mrf.mxu0  ;;  %3666 = vmatprep.subr.bf16.mxu0 %v4964_v35  ;;  %v5033_v2 = vld [vmem:[%s6877_s1 + $0xb6c] ss:$16 sps:$4 sm:$0xff]   ;;  %v5028_v3 = vld [vmem:[%s6877_s1 + $0x968] ss:$16 sps:$4 sm:$0xff]  }
 0x185   :  { %v6484_v11 = vpop.f32.mrf.mxu1  ;;  %3707 = vmatprep.subr.bf16.mxu1 %v4967_v40  ;;  %3696 = vmatprep.mubr.bf16.mxu0 %v5629_v24  ;;  %v4976_v24 = vld [vmem:[%s6877_s1 + $0x88c] ss:$16 sps:$4 sm:$0xff]   ;;  %v5031_v35 = vld [vmem:[%s6877_s1 + $0xb68] ss:$16 sps:$4 sm:$0xff]  }
 0x186   :  { %3737 = vmatprep.mubr.bf16.mxu1 %v5633_v25  ;;  %v3374_v12 = vpop.f32.mrf.mxu0  ;;  %v4979_v25 = vld [vmem:[%s6877_s1 + $0xa8c] ss:$16 sps:$4 sm:$0xff]  }
 0x187   :  { %v3415_v13 = vpop.f32.mrf.mxu1  ;;  %3667 = vmatpush1.bf16.msra.mxu0 %v4962_v8  ;;  %v5036_v40 = vld [vmem:[%s6877_s1 + $0x94c] ss:$16 sps:$4 sm:$0xff]  }
 0x188   :  { %3708 = vmatpush1.bf16.msra.mxu1 %v4965_v9  ;;  %v3375_v19 = vpop.f32.mrf.mxu0  ;;  %3668 = vmatprep.subr.bf16.mxu0 %v4970_v16  ;;  %v5039_v8 = vld [vmem:[%s6877_s1 + $0xb4c] ss:$16 sps:$4 sm:$0xff]   ;;  %v5034_v9 = vld [vmem:[%s6877_s1 + $0x948] ss:$16 sps:$4 sm:$0xff]  }
 0x189   :  { %v3416_v20 = vpop.f32.mrf.mxu1  ;;  %3709 = vmatprep.subr.bf16.mxu1 %v4973_v17  ;;  %v5037_v16 = vld [vmem:[%s6877_s1 + $0xb48] ss:$16 sps:$4 sm:$0xff]   ;;  %v5042_v17 = vld [vmem:[%s6877_s1 + $0x92c] ss:$16 sps:$4 sm:$0xff]  }
 0x18a   :  { %v5045_v12 = vld [vmem:[%s6877_s1 + $0xb2c] ss:$16 sps:$4 sm:$0xff]   ;;  %v5040_v13 = vld [vmem:[%s6877_s1 + $0x928] ss:$16 sps:$4 sm:$0xff]  }
 0x18b   :  { %3669 = vmatpush1.bf16.msra.mxu0 %v4968_v14  ;;  %v5043_v14 = vld [vmem:[%s6877_s1 + $0xb28] ss:$16 sps:$4 sm:$0xff]   ;;  %v5051_v19 = vld [vmem:[%s6877_s1 + $0xb0c] ss:$16 sps:$4 sm:$0xff]  }
 0x18c   :  { %3710 = vmatpush1.bf16.msra.mxu1 %v4971_v15  ;;  %3670 = vmatprep.subr.bf16.mxu0 %v4976_v24  ;;  %v5048_v15 = vld [vmem:[%s6877_s1 + $0x90c] ss:$16 sps:$4 sm:$0xff]   ;;  %v5046_v20 = vld [vmem:[%s6877_s1 + $0x908] ss:$16 sps:$4 sm:$0xff]  }
 0x18d   :  { %3711 = vmatprep.subr.bf16.mxu1 %v4979_v25  ;;  %v5049_v24 = vld [vmem:[%s6877_s1 + $0xb08] ss:$16 sps:$4 sm:$0xff]   ;;  %v5054_v25 = vld [vmem:[%s6877_s1 + $0xcec] ss:$16 sps:$4 sm:$0xff]  }
 0x18f   :  { %3671 = vmatpush1.bf16.msra.mxu0 %v4974_v21  ;;  %v5057_v21 = vld [vmem:[%s6877_s1 + $0xeec] ss:$16 sps:$4 sm:$0xff]  }
 0x190   :  { %3712 = vmatpush1.bf16.msra.mxu1 %v4977_v26  ;;  %3672 = vmatprep.subr.bf16.mxu0 %v4982_v28  ;;  %v3371_v26 = vadd.f32 %v6470_v4, %v6283_v18  ;;  %v3373_v28 = vadd.f32 %v6482_v10, %v6288_v59  ;;  %v5063_v18 = vld [vmem:[%s6877_s1 + $0xecc] ss:$16 sps:$4 sm:$0xff]  }
 0x191   :  { %3713 = vmatprep.subr.bf16.mxu1 %v4985_v29  ;;  %v5052_v29 = vld [vmem:[%s6877_s1 + $0xce8] ss:$16 sps:$4 sm:$0xff]  }
 0x192   :  { %v3412_v59 = vadd.f32 %v6472_v5, %v3371_v26  ;;  %v5121_v26 = vld [vmem:[%s6877_s1 + $0xf88] ss:$16 sps:$4 sm:$0xff]  }
 0x193   :  { %3673 = vmatpush1.bf16.msra.mxu0 %v4980_v30  ;;  %v5055_v30 = vld [vmem:[%s6877_s1 + $0xee8] ss:$16 sps:$4 sm:$0xff]  }
 0x194   :  { %3714 = vmatpush1.bf16.msra.mxu1 %v4983_v47  ;;  %3674 = vmatprep.subr.bf16.mxu0 %v4988_v51  ;;  %v5060_v47 = vld [vmem:[%s6877_s1 + $0xccc] ss:$16 sps:$4 sm:$0xff]   ;;  %v3414_v51 = vadd.f32 %v6484_v11, %v3373_v28 }
 0x195   :  { %3715 = vmatprep.subr.bf16.mxu1 %v4991_v31  ;;  %v5126_v28 = vld [vmem:[%s6877_s1 + $0xd6c] ss:$16 sps:$4 sm:$0xff]  }
 0x197   :  { %3675 = vmatpush1.bf16.msra.mxu0 %v4986_v32  ;;  %v5058_v32 = vld [vmem:[%s6877_s1 + $0xcc8] ss:$16 sps:$4 sm:$0xff]  }
 0x198   :  { %3716 = vmatpush1.bf16.msra.mxu1 %v4989_v33  ;;  %3676 = vmatprep.subr.bf16.mxu0 %v4994_v34  ;;  %v5061_v33 = vld [vmem:[%s6877_s1 + $0xec8] ss:$16 sps:$4 sm:$0xff]  }
 0x199   :  { %3717 = vmatprep.subr.bf16.mxu1 %v4997_v41 }
 0x19b   :  { %3677 = vmatpush1.bf16.msra.mxu0 %v4992_v22 }
 0x19c   :  { %3718 = vmatpush1.bf16.msra.mxu1 %v4995_v23  ;;  %3678 = vmatprep.subr.bf16.mxu0 %v5000_v44 }
 0x19d   :  { %3719 = vmatprep.subr.bf16.mxu1 %v5003_v45  ;;  %v5064_v45 = vld [vmem:[%s6877_s1 + $0xca8] ss:$16 sps:$4 sm:$0xff]  }
 0x19f   :  { %3679 = vmatpush1.bf16.msra.mxu0 %v4998_v46  ;;  %v5067_v46 = vld [vmem:[%s6877_s1 + $0xea8] ss:$16 sps:$4 sm:$0xff]  }
 0x1a0   :  { %3720 = vmatpush1.bf16.msra.mxu1 %v5001_v48  ;;  %3680 = vmatprep.subr.bf16.mxu0 %v5006_v49  ;;  %v5075_v49 = vld [vmem:[%s6877_s1 + $0xe8c] ss:$16 sps:$4 sm:$0xff]  }
 0x1a1   :  { %3721 = vmatprep.subr.bf16.mxu1 %v5009_v50  ;;  %v5070_v50 = vld [vmem:[%s6877_s1 + $0xc88] ss:$16 sps:$4 sm:$0xff]  }
 0x1a3   :  { %3681 = vmatpush2.bf16.msra.mxu0 %v5004_v52  ;;  %v5073_v52 = vld [vmem:[%s6877_s1 + $0xe88] ss:$16 sps:$4 sm:$0xff]  }
 0x1a4   :  { %3722 = vmatpush2.bf16.msra.mxu1 %v5007_v54  ;;  %3682 = vmatprep.subr.bf16.mxu0 %v5012_v55  ;;  %v5078_v54 = vld [vmem:[%s6877_s1 + $0xc6c] ss:$16 sps:$4 sm:$0xff]  }
 0x1a5   :  { %3723 = vmatprep.subr.bf16.mxu1 %v5015_v6  ;;  %v5081_v55 = vld [vmem:[%s6877_s1 + $0xe6c] ss:$16 sps:$4 sm:$0xff]   ;;  %v5076_v6 = vld [vmem:[%s6877_s1 + $0xc68] ss:$16 sps:$4 sm:$0xff]  }
 0x1a7   :  { %3683 = vmatpush2.bf16.msra.mxu0 %v5010_v7  ;;  %v5079_v7 = vld [vmem:[%s6877_s1 + $0xe68] ss:$16 sps:$4 sm:$0xff]  }
 0x1a8   :  { %3724 = vmatpush2.bf16.msra.mxu1 %v5013_v56  ;;  %3684 = vmatprep.subr.bf16.mxu0 %v5018_v57  ;;  %v5084_v56 = vld [vmem:[%s6877_s1 + $0xc4c] ss:$16 sps:$4 sm:$0xff]  }
 0x1a9   :  { %3725 = vmatprep.subr.bf16.mxu1 %v5021_v58  ;;  %v5087_v57 = vld [vmem:[%s6877_s1 + $0xe4c] ss:$16 sps:$4 sm:$0xff]   ;;  %v5082_v58 = vld [vmem:[%s6877_s1 + $0xc48] ss:$16 sps:$4 sm:$0xff]  }
 0x1ab   :  { %3685 = vmatpush2.bf16.msra.mxu0 %v5016_v60  ;;  %v5085_v60 = vld [vmem:[%s6877_s1 + $0xe48] ss:$16 sps:$4 sm:$0xff]  }
 0x1ac   :  { %3726 = vmatpush2.bf16.msra.mxu1 %v5019_v61  ;;  %3686 = vmatprep.subr.bf16.mxu0 %v5024_v62  ;;  %v5090_v61 = vld [vmem:[%s6877_s1 + $0xc2c] ss:$16 sps:$4 sm:$0xff]  }
 0x1ad   :  { %3727 = vmatprep.subr.bf16.mxu1 %v5027_v27  ;;  %v5093_v62 = vld [vmem:[%s6877_s1 + $0xe2c] ss:$16 sps:$4 sm:$0xff]   ;;  %v5088_v27 = vld [vmem:[%s6877_s1 + $0xc28] ss:$16 sps:$4 sm:$0xff]  }
 0x1af   :  { %3687 = vmatpush2.bf16.msra.mxu0 %v5022_v36  ;;  %v5091_v36 = vld [vmem:[%s6877_s1 + $0xe28] ss:$16 sps:$4 sm:$0xff]  }
 0x1b0   :  { %3728 = vmatpush2.bf16.msra.mxu1 %v5025_v37  ;;  %3688 = vmatprep.subr.bf16.mxu0 %v5030_v1  ;;  %v5096_v37 = vld [vmem:[%s6877_s1 + $0xc0c] ss:$16 sps:$4 sm:$0xff]  }
 0x1b1   :  { %3729 = vmatprep.subr.bf16.mxu1 %v5033_v2  ;;  %v5099_v1 = vld [vmem:[%s6877_s1 + $0xe0c] ss:$16 sps:$4 sm:$0xff]   ;;  %v5094_v2 = vld [vmem:[%s6877_s1 + $0xc08] ss:$16 sps:$4 sm:$0xff]  }
 0x1b3   :  { %3689 = vmatpush2.bf16.msra.mxu0 %v5028_v3  ;;  %v5097_v3 = vld [vmem:[%s6877_s1 + $0xe08] ss:$16 sps:$4 sm:$0xff]  }
 0x1b4   :  { %3730 = vmatpush2.bf16.msra.mxu1 %v5031_v35  ;;  %3690 = vmatprep.subr.bf16.mxu0 %v5036_v40  ;;  %v5102_v35 = vld [vmem:[%s6877_s1 + $0xdec] ss:$16 sps:$4 sm:$0xff]  }
 0x1b5   :  { %3731 = vmatprep.subr.bf16.mxu1 %v5039_v8  ;;  %v5105_v40 = vld [vmem:[%s6877_s1 + $0xfec] ss:$16 sps:$4 sm:$0xff]   ;;  %v5100_v8 = vld [vmem:[%s6877_s1 + $0xde8] ss:$16 sps:$4 sm:$0xff]  }
 0x1b7   :  { %3691 = vmatpush2.bf16.msra.mxu0 %v5034_v9  ;;  %v5103_v9 = vld [vmem:[%s6877_s1 + $0xfe8] ss:$16 sps:$4 sm:$0xff]  }
 0x1b8   :  { %3732 = vmatpush2.bf16.msra.mxu1 %v5037_v16  ;;  %3692 = vmatprep.subr.bf16.mxu0 %v5042_v17  ;;  %v5108_v16 = vld [vmem:[%s6877_s1 + $0xdcc] ss:$16 sps:$4 sm:$0xff]  }
 0x1b9   :  { %3733 = vmatprep.subr.bf16.mxu1 %v5045_v12  ;;  %v5111_v17 = vld [vmem:[%s6877_s1 + $0xfcc] ss:$16 sps:$4 sm:$0xff]   ;;  %v5106_v12 = vld [vmem:[%s6877_s1 + $0xdc8] ss:$16 sps:$4 sm:$0xff]  }
 0x1bb   :  { %3693 = vmatpush2.bf16.msra.mxu0 %v5040_v13  ;;  %v5109_v13 = vld [vmem:[%s6877_s1 + $0xfc8] ss:$16 sps:$4 sm:$0xff]  }
 0x1bc   :  { %3734 = vmatpush2.bf16.msra.mxu1 %v5043_v14  ;;  %3694 = vmatprep.subr.bf16.mxu0 %v5048_v15  ;;  %v5114_v14 = vld [vmem:[%s6877_s1 + $0xdac] ss:$16 sps:$4 sm:$0xff]  }
 0x1bd   :  { %3735 = vmatprep.subr.bf16.mxu1 %v5051_v19  ;;  %v5117_v15 = vld [vmem:[%s6877_s1 + $0xfac] ss:$16 sps:$4 sm:$0xff]   ;;  %v5112_v19 = vld [vmem:[%s6877_s1 + $0xda8] ss:$16 sps:$4 sm:$0xff]  }
 0x1bf   :  { %3695 = vmatpush2.bf16.msra.mxu0 %v5046_v20  ;;  %v5115_v20 = vld [vmem:[%s6877_s1 + $0xfa8] ss:$16 sps:$4 sm:$0xff]  }
 0x1c0   :  { %3736 = vmatpush2.bf16.msra.mxu1 %v5049_v24  ;;  %3746 = vmatprep.subr.bf16.mxu0 %v5054_v25  ;;  %v5120_v24 = vld [vmem:[%s6877_s1 + $0xd8c] ss:$16 sps:$4 sm:$0xff]  }
 0x1c1   :  { %3787 = vmatprep.subr.bf16.mxu1 %v5057_v21  ;;  %v5123_v25 = vld [vmem:[%s6877_s1 + $0xf8c] ss:$16 sps:$4 sm:$0xff]   ;;  %v5118_v21 = vld [vmem:[%s6877_s1 + $0xd88] ss:$16 sps:$4 sm:$0xff]  }
 0x1c2   :  { %v3452_v4 = vpop.f32.mrf.mxu0  ;;  %3697 = vmatmul.mubr.bf16.vlgmr.msra.gmra.mxu0 %v5829_v38  ;;  %v5066_v38 = vld [vmem:[%s6877_s1 + $0xcac] ss:$16 sps:$4 sm:$0xff]  }
 0x1c3   :  { %v3493_v10 = vpop.f32.mrf.mxu1  ;;  %3738 = vmatmul.mubr.bf16.vlgmr.msra.gmra.mxu1 %v5833_v39  ;;  %v3453_v31 = vadd.f32 %v3452_v4, %v3412_v59  ;;  %3747 = vmatpush1.bf16.msra.mxu0 %v5052_v29  ;;  %v5069_v39 = vld [vmem:[%s6877_s1 + $0xeac] ss:$16 sps:$4 sm:$0xff]   ;;  %v5130_v4 = vld [vmem:[%s6877_s1 + $0xd48] ss:$16 sps:$4 sm:$0xff]  }
 0x1c4   :  { %3788 = vmatpush1.bf16.msra.mxu1 %v5055_v30  ;;  %v3454_v5 = vpop.f32.mrf.mxu0  ;;  %3748 = vmatprep.subr.bf16.mxu0 %v5060_v47  ;;  %v5129_v29 = vld [vmem:[%s6877_s1 + $0xf6c] ss:$16 sps:$4 sm:$0xff]   ;;  %v5124_v30 = vld [vmem:[%s6877_s1 + $0xd68] ss:$16 sps:$4 sm:$0xff]  }
 0x1c5   :  { %v3495_v34 = vpop.f32.mrf.mxu1  ;;  %3789 = vmatprep.subr.bf16.mxu1 %v5063_v18  ;;  %v3494_v11 = vadd.f32 %v3493_v10, %v3453_v31  ;;  %v3455_v41 = vadd.f32 %v3454_v5, %v3414_v51  ;;  %3778 = vmatprep.mubr.bf16.mxu0 %v5851_v42  ;;  %v5127_v47 = vld [vmem:[%s6877_s1 + $0xf68] ss:$16 sps:$4 sm:$0xff]   ;;  %v5132_v18 = vld [vmem:[%s6877_s1 + $0xd4c] ss:$16 sps:$4 sm:$0xff]  }
 0x1c6   :  { %3819 = vmatprep.mubr.bf16.mxu1 %v5855_v43  ;;  %v3456_v22 = vpop.f32.mrf.mxu0  ;;  %v5072_v43 = vld [vmem:[%s6877_s1 + $0xc8c] ss:$16 sps:$4 sm:$0xff]   ;;  %v5133_v10 = vld [vmem:[%s6877_s1 + $0xf48] ss:$16 sps:$4 sm:$0xff]  }
 0x1c7   :  { %v3497_v23 = vpop.f32.mrf.mxu1  ;;  %3828 = vst [vmem:[%s6880_s3] sm:$0xff] %v3494_v11  ;;  %v3496_v44 = vadd.f32 %v3495_v34, %v3455_v41  ;;  %3749 = vmatpush1.bf16.msra.mxu0 %v5058_v32  ;;  %v5135_v59 = vld [vmem:[%s6877_s1 + $0xf4c] ss:$16 sps:$4 sm:$0xff]   ;;  %v5136_v32 = vld [vmem:[%s6877_s1 + $0xd28] ss:$16 sps:$4 sm:$0xff]   ;;  %v546_v11 = vsub.s32 2, %v6023_v53  ;;  %v550_v41 = vsub.s32 3, %v6023_v53 }
 0x1c8   :  { %3790 = vmatpush1.bf16.msra.mxu1 %v5061_v33  ;;  %v3457_v42 = vpop.f32.mrf.mxu0  ;;  %3750 = vmatprep.subr.bf16.mxu0 %v5066_v38  ;;  %v5138_v51 = vld [vmem:[%s6877_s1 + $0xd2c] ss:$16 sps:$4 sm:$0xff]   ;;  %v5139_v33 = vld [vmem:[%s6877_s1 + $0xf28] ss:$16 sps:$4 sm:$0xff]   ;;  %v5148_v22 = vld [vmem:[%s6879_s2] sm:$0xf] }
 0x1c9   :  { %v3498_v48 = vpop.f32.mrf.mxu1  ;;  %3791 = vmatprep.subr.bf16.mxu1 %v5069_v39  ;;  %3829 = vst [vmem:[%s6880_s3 + $0x8] sm:$0xff] %v3496_v44  ;;  %v5141_v31 = vld [vmem:[%s6877_s1 + $0xf2c] ss:$16 sps:$4 sm:$0xff]   ;;  %v5142_v38 = vld [vmem:[%s6877_s1 + $0xd08] ss:$16 sps:$4 sm:$0xff]   ;;  %v547_v23 = vrot.slane %v5148_v22, %v546_v11  ;;  %v551_v44 = vrot.slane %v5148_v22, %v550_v41 }
 0x1ca   :  { %v5144_v5 = vld [vmem:[%s6877_s1 + $0xd0c] ss:$16 sps:$4 sm:$0xff]   ;;  %v5145_v39 = vld [vmem:[%s6877_s1 + $0xf08] ss:$16 sps:$4 sm:$0xff]  }
 0x1cb   :  { %3751 = vmatpush1.bf16.msra.mxu0 %v5064_v45  ;;  %v5147_v34 = vld [vmem:[%s6877_s1 + $0xf0c] ss:$16 sps:$4 sm:$0xff]  }
 0x1cc   :  { %3792 = vmatpush1.bf16.msra.mxu1 %v5067_v46  ;;  %3752 = vmatprep.subr.bf16.mxu0 %v5072_v43 }
 0x1cd   :  { %3793 = vmatprep.subr.bf16.mxu1 %v5075_v49 }
 0x1cf   :  { %3753 = vmatpush1.bf16.msra.mxu0 %v5070_v50 }
 0x1d0   :  { %3794 = vmatpush1.bf16.msra.mxu1 %v5073_v52  ;;  %3754 = vmatprep.subr.bf16.mxu0 %v5078_v54 }
 0x1d1   :  { %3795 = vmatprep.subr.bf16.mxu1 %v5081_v55 }
 0x1d3   :  { %3755 = vmatpush1.bf16.msra.mxu0 %v5076_v6 }
 0x1d4   :  { %3796 = vmatpush1.bf16.msra.mxu1 %v5079_v7  ;;  %3756 = vmatprep.subr.bf16.mxu0 %v5084_v56 }
 0x1d5   :  { %3797 = vmatprep.subr.bf16.mxu1 %v5087_v57 }
 0x1d7   :  { %3757 = vmatpush1.bf16.msra.mxu0 %v5082_v58 }
 0x1d8   :  { %3798 = vmatpush1.bf16.msra.mxu1 %v5085_v60  ;;  %3758 = vmatprep.subr.bf16.mxu0 %v5090_v61 }
 0x1d9   :  { %3799 = vmatprep.subr.bf16.mxu1 %v5093_v62 }
 0x1db   :  { %3759 = vmatpush1.bf16.msra.mxu0 %v5088_v27 }
 0x1dc   :  { %3800 = vmatpush1.bf16.msra.mxu1 %v5091_v36  ;;  %3760 = vmatprep.subr.bf16.mxu0 %v5096_v37 }
 0x1dd   :  { %3801 = vmatprep.subr.bf16.mxu1 %v5099_v1 }
 0x1df   :  { %3761 = vmatpush1.bf16.msra.mxu0 %v5094_v2 }
 0x1e0   :  { %3802 = vmatpush1.bf16.msra.mxu1 %v5097_v3  ;;  %3762 = vmatprep.subr.bf16.mxu0 %v5102_v35 }
 0x1e1   :  { %3803 = vmatprep.subr.bf16.mxu1 %v5105_v40 }
 0x1e3   :  { %3763 = vmatpush2.bf16.msra.mxu0 %v5100_v8 }
 0x1e4   :  { %3804 = vmatpush2.bf16.msra.mxu1 %v5103_v9  ;;  %3764 = vmatprep.subr.bf16.mxu0 %v5108_v16 }
 0x1e5   :  { %3805 = vmatprep.subr.bf16.mxu1 %v5111_v17 }
 0x1e7   :  { %3765 = vmatpush2.bf16.msra.mxu0 %v5106_v12 }
 0x1e8   :  { %3806 = vmatpush2.bf16.msra.mxu1 %v5109_v13  ;;  %3766 = vmatprep.subr.bf16.mxu0 %v5114_v14 }
 0x1e9   :  { %3807 = vmatprep.subr.bf16.mxu1 %v5117_v15 }
 0x1eb   :  { %3767 = vmatpush2.bf16.msra.mxu0 %v5112_v19 }
 0x1ec   :  { %3808 = vmatpush2.bf16.msra.mxu1 %v5115_v20  ;;  %3768 = vmatprep.subr.bf16.mxu0 %v5120_v24 }
 0x1ed   :  { %3809 = vmatprep.subr.bf16.mxu1 %v5123_v25 }
 0x1ef   :  { %3769 = vmatpush2.bf16.msra.mxu0 %v5118_v21 }
 0x1f0   :  { %3810 = vmatpush2.bf16.msra.mxu1 %v5121_v26  ;;  %3770 = vmatprep.subr.bf16.mxu0 %v5126_v28 }
 0x1f1   :  { %3811 = vmatprep.subr.bf16.mxu1 %v5129_v29 }
 0x1f3   :  { %3771 = vmatpush2.bf16.msra.mxu0 %v5124_v30 }
 0x1f4   :  { %3812 = vmatpush2.bf16.msra.mxu1 %v5127_v47  ;;  %3772 = vmatprep.subr.bf16.mxu0 %v5132_v18 }
 0x1f5   :  { %3813 = vmatprep.subr.bf16.mxu1 %v5135_v59 }
 0x1f7   :  { %3773 = vmatpush2.bf16.msra.mxu0 %v5130_v4 }
 0x1f8   :  { %3814 = vmatpush2.bf16.msra.mxu1 %v5133_v10  ;;  %3774 = vmatprep.subr.bf16.mxu0 %v5138_v51 }
 0x1f9   :  { %3815 = vmatprep.subr.bf16.mxu1 %v5141_v31 }
 0x1fb   :  { %3775 = vmatpush2.bf16.msra.mxu0 %v5136_v32 }
 0x1fc   :  { %3816 = vmatpush2.bf16.msra.mxu1 %v5139_v33  ;;  %3776 = vmatprep.subr.bf16.mxu0 %v5144_v5 }
 0x1fd   :  { %3817 = vmatprep.subr.bf16.mxu1 %v5147_v34 }
 0x1ff   :  { %3777 = vmatpush2.bf16.msra.mxu0 %v5142_v38 }
 0x200   :  { %3818 = vmatpush2.bf16.msra.mxu1 %v5145_v39 }
 0x202   :  { %v3534_v45 = vpop.f32.mrf.mxu0  ;;  %3779 = vmatmul.mubr.bf16.vlgmr.msra.gmra.mxu0 %v6050_v63 }
 0x203   :  { %v3575_v46 = vpop.f32.mrf.mxu1  ;;  %3820 = vmatmul.mubr.bf16.vlgmr.msra.gmra.mxu1 %v6054_v0  ;;  %v3535_v42 = vadd.f32 %v3534_v45, %v547_v23 }
 0x204   :  { %v3536_v48 = vpop.f32.mrf.mxu0 }
 0x205   :  { %v3577_v43 = vpop.f32.mrf.mxu1  ;;  %v3576_v49 = vadd.f32 %v3575_v46, %v3535_v42  ;;  %v3537_v50 = vadd.f32 %v3536_v48, %v551_v44 }
 0x206   :  { %v3538_v53 = vpop.f32.mrf.mxu0 }
 0x207   :  { %v3579_v52 = vpop.f32.mrf.mxu1  ;;  %v3578_v54 = vadd.f32 %v3577_v43, %v3537_v50 }
 0x208   :  { %v3539_v55 = vpop.f32.mrf.mxu0 }
 0x209   :  { %v3580_v6 = vpop.f32.mrf.mxu1 }
 0x242   :  { %v3616_v7 = vpop.f32.mrf.mxu0 }
 0x243   :  { %v3657_v56 = vpop.f32.mrf.mxu1  ;;  %v3617_v57 = vadd.f32 %v3616_v7, %v3576_v49 }
 0x244   :  { %v3618_v58 = vpop.f32.mrf.mxu0 }
 0x245   :  { %v3659_v60 = vpop.f32.mrf.mxu1  ;;  %v3658_v61 = vadd.f32 %v3657_v56, %v3617_v57  ;;  %v3619_v62 = vadd.f32 %v3618_v58, %v3578_v54 }
 0x246   :  { %v3620_v63 = vpop.f32.mrf.mxu0 }
 0x247   :  { %v3661_v27 = vpop.f32.mrf.mxu1  ;;  %v3660_v0 = vadd.f32 %v3659_v60, %v3619_v62 }
 0x248   :  { %v3621_v36 = vpop.f32.mrf.mxu0 }
 0x249   :  { %v3662_v37 = vpop.f32.mrf.mxu1 }
 0x282   :  { %v3698_v1 = vpop.f32.mrf.mxu0 }
 0x283   :  { %v3739_v2 = vpop.f32.mrf.mxu1  ;;  %v3699_v17 = vadd.f32 %v3698_v1, %v3658_v61 }
 0x284   :  { %v3700_v3 = vpop.f32.mrf.mxu0 }
 0x285   :  { %v3741_v35 = vpop.f32.mrf.mxu1  ;;  %v3701_v12 = vadd.f32 %v3700_v3, %v3660_v0  ;;  %v3740_v13 = vadd.f32 %v3739_v2, %v3699_v17 }
 0x286   :  { %v3702_v40 = vpop.f32.mrf.mxu0 }
 0x287   :  { %v3743_v8 = vpop.f32.mrf.mxu1  ;;  %v3742_v19 = vadd.f32 %v3741_v35, %v3701_v12 }
 0x288   :  { %v3703_v9 = vpop.f32.mrf.mxu0 }
 0x289   :  { %v3744_v16 = vpop.f32.mrf.mxu1 }
 0x2c2   :  { %v3780_v14 = vpop.f32.mrf.mxu0 }
 0x2c3   :  { %v3821_v15 = vpop.f32.mrf.mxu1  ;;  %v3781_v20 = vadd.f32 %v3780_v14, %v3740_v13 }
 0x2c4   :  { %v3782_v24 = vpop.f32.mrf.mxu0 }
 0x2c5   :  { %v3823_v25 = vpop.f32.mrf.mxu1  ;;  %v3822_v21 = vadd.f32 %v3821_v15, %v3781_v20  ;;  %v3783_v26 = vadd.f32 %v3782_v24, %v3742_v19 }
 0x2c6   :  { %v3784_v28 = vpop.f32.mrf.mxu0 }
 0x2c7   :  { %v3825_v29 = vpop.f32.mrf.mxu1  ;;  %3830 = vst [vmem:[%s6880_s3 + $0x10] sm:$0xff] %v3822_v21  ;;  %v3824_v30 = vadd.f32 %v3823_v25, %v3783_v26 }
 0x2c8   :  { %v3785_v47 = vpop.f32.mrf.mxu0 }
 0x2c9   :  { %v3826_v18 = vpop.f32.mrf.mxu1  ;;  %3831 = vst [vmem:[%s6880_s3 + $0x18] sm:$0xff] %v3824_v30 }

// kernel: video_model_forward.3
= control target key start
LH: loop header
LB: loop body
LE: loop exit
PB: predicated region body
PF: predicated region fallthrough
CT: control target
= control target key end

     0   :  { %s3731_s6 = smov 1   ;;  %s3732_s10 = smov 2   ;;  %s4612_s0 = inlined_call_operand.smem [shape: u32[37], index: -1, kind: input, shape index: {}] }
   0x1   :  { %s3783_s5 = sld [smem:[%s4612_s0]]   ;;  %s3733_s14 = smov 3  }
   0x2   :  { %s3788_s9 = sld [smem:[%s4612_s0 + %s3731_s6]]   ;;  %s3734_s18 = smov 4  }
   0x3   :  { %s3793_s13 = sld [smem:[%s4612_s0 + %s3732_s10]]   ;;  %s3735_s22 = smov 5  }
   0x4   :  { %s3798_s17 = sld [smem:[%s4612_s0 + %s3733_s14]]   ;;  %s3736_s26 = smov 6  }
   0x5   :  { %s3803_s21 = sld [smem:[%s4612_s0 + %s3734_s18]]   ;;  %s3737_s30 = smov 7  }
   0x6   :  { %s3808_s25 = sld [smem:[%s4612_s0 + %s3735_s22]]   ;;  %s3738_s4 = smov 8  }
   0x7   :  { %s3813_s29 = sld [smem:[%s4612_s0 + %s3736_s26]]   ;;  %s3739_s10 = smov 9  }
   0x8   :  { %s3818_s3 = sld [smem:[%s4612_s0 + %s3737_s30]]   ;;  %s3740_s15 = smov 10  }
   0x9   :  { %4621 = sst [smem:[#allocation5_spill]] %s3793_s13  ;;  %s3741_s20 = smov 11  }
   0xa   :  { %s3823_s8 = sld [smem:[%s4612_s0 + %s3738_s4]]   ;;  %s3742_s26 = smov 12  }
   0xb   :  { %4622 = sst [smem:[#allocation6_spill]] %s3803_s21  ;;  %s3743_s1 = smov 13  }
   0xc   :  { %4623 = sst [smem:[#allocation7_spill]] %s3808_s25  ;;  %s3744_s7 = smov 14  }
   0xd   :  { %s3828_s14 = sld [smem:[%s4612_s0 + %s3739_s10]]   ;;  %s3746_s22 = smov 16  }
   0xe   :  { %s3833_s19 = sld [smem:[%s4612_s0 + %s3740_s15]]   ;;  %s3745_s15 = smov 15  }
   0xf   :  { %s3838_s24 = sld [smem:[%s4612_s0 + %s3741_s20]]   ;;  %s3747_s28 = smov 17  }
  0x10   :  { %s3843_s30 = sld [smem:[%s4612_s0 + %s3742_s26]]  }
  0x11   :  { %s3848_s6 = sld [smem:[%s4612_s0 + %s3743_s1]]  }
  0x12   :  { %s3853_s12 = sld [smem:[%s4612_s0 + %s3744_s7]]   ;;  %s3748_s7 = smov 18  }
  0x13   :  { %s3858_s20 = sld [smem:[%s4612_s0 + %s3745_s15]]   ;;  %s3749_s15 = smov 19  }
  0x14   :  { %s3863_s27 = sld [smem:[%s4612_s0 + %s3746_s22]]   ;;  %s3750_s22 = smov 20  }
  0x15   :  { %s3868_s4 = sld [smem:[%s4612_s0 + %s3747_s28]]   ;;  %s3751_s28 = smov 21  }
  0x16   :  { %s3873_s25 = sld [smem:[%s4612_s0 + %s3748_s7]]   ;;  %s3752_s7 = smov 22  }
  0x17   :  { %s3878_s13 = sld [smem:[%s4612_s0 + %s3749_s15]]   ;;  %s3753_s15 = smov 23  }
  0x18   :  { %s3883_s21 = sld [smem:[%s4612_s0 + %s3750_s22]]   ;;  %s3754_s22 = smov 24  }
  0x1a   :  { %4624 = sst [smem:[#allocation8_spill]] %s3863_s27 }
  0x1b   :  { %s3888_s27 = sld [smem:[%s4612_s0 + %s3751_s28]]   ;;  %s3755_s28 = smov 25  }
  0x1c   :  { %4625 = sst [smem:[#allocation9_spill]] %s3873_s25 }
  0x1d   :  { %4626 = sst [smem:[#allocation10_spill]] %s3878_s13 }
  0x1e   :  { %4627 = sst [smem:[#allocation11_spill]] %s3883_s21 }
  0x1f   :  { %s3893_s25 = sld [smem:[%s4612_s0 + %s3752_s7]]   ;;  %s3756_s7 = smov 26  }
  0x20   :  { %s3898_s13 = sld [smem:[%s4612_s0 + %s3753_s15]]   ;;  %s3757_s15 = smov 27  }
  0x21   :  { %4628 = sst [smem:[#allocation12_spill]] %s3888_s27 }
  0x22   :  { %s3903_s21 = sld [smem:[%s4612_s0 + %s3754_s22]]   ;;  %s3758_s22 = smov 28  }
  0x23   :  { %s3908_s27 = sld [smem:[%s4612_s0 + %s3755_s28]]   ;;  %s3759_s28 = smov 29  }
  0x25   :  { %4629 = sst [smem:[#allocation13_spill]] %s3893_s25 }
  0x26   :  { %4630 = sst [smem:[#allocation14_spill]] %s3898_s13 }
  0x27   :  { %s3913_s25 = sld [smem:[%s4612_s0 + %s3756_s7]]   ;;  %s3760_s7 = smov 30  }
  0x28   :  { %4631 = sst [smem:[#allocation15_spill]] %s3903_s21 }
  0x29   :  { %4632 = sst [smem:[#allocation16_spill]] %s3908_s27 }
  0x2a   :  { %s3918_s13 = sld [smem:[%s4612_s0 + %s3757_s15]]   ;;  %s3761_s15 = smov 31  }
  0x2b   :  { %s3923_s21 = sld [smem:[%s4612_s0 + %s3758_s22]]   ;;  %s3762_s22 = smov 32  }
  0x2c   :  { %s3928_s27 = sld [smem:[%s4612_s0 + %s3759_s28]]   ;;  %s3763_s28 = smov 33  }
  0x2d   :  { %4633 = sst [smem:[#allocation17_spill]] %s3913_s25 }
  0x2e   :  { %s3933_s25 = sld [smem:[%s4612_s0 + %s3760_s7]]   ;;  %s3764_s7 = smov 34  }
  0x30   :  { %4634 = sst [smem:[#allocation18_spill]] %s3918_s13 }
  0x31   :  { %4635 = sst [smem:[#allocation19_spill]] %s3923_s21 }
  0x32   :  { %4636 = sst [smem:[#allocation20_spill]] %s3928_s27 }
  0x33   :  { %s3938_s13 = sld [smem:[%s4612_s0 + %s3761_s15]]   ;;  %s3765_s15 = smov 35  }
  0x34   :  { %4637 = sst [smem:[#allocation21_spill]] %s3933_s25 }
  0x35   :  { %s3943_s21 = sld [smem:[%s4612_s0 + %s3762_s22]]   ;;  %s3766_s22 = smov 36  }
  0x36   :  { %s3948_s27 = sld [smem:[%s4612_s0 + %s3763_s28]]  }
  0x37   :  { %s3953_s25 = sld [smem:[%s4612_s0 + %s3764_s7]]  }
  0x39   :  { %4638 = sst [smem:[#allocation22_spill]] %s3938_s13 }
  0x3a   :  { %s3958_s13 = sld [smem:[%s4612_s0 + %s3765_s15]]  }
  0x3b   :  { %4639 = sst [smem:[#allocation23_spill]] %s3943_s21 }
  0x3c   :  { %s3963_s21 = sld [smem:[%s4612_s0 + %s3766_s22]]  }
  0x3d   :  { %v152_v0 = vld [vmem:[%s3783_s5 + $0x8] sm:$0xff]  ;;  %v151_v1 = vld [vmem:[%s3783_s5] sm:$0xff]  ;;  %v3767_v2 = vmov 0  }
  0x3e   :  { %3696 = vset.pattern.permute.xlu1 %v3767_v2  ;;  %3694 = vset.pattern.permute.xlu0 %v3767_v2 }
  0x3f   :  { %163 = vperm.xlu1 %3696, %v152_v0   ;;  %158 = vperm.xlu0 %3694, %v151_v1  }
  0x40   :  { %78 = vsyncpa [#allocation3], 0  ;;  %v3768_v3 = vmov 1   ;;  %v3769_v4 = vmov 2   ;;  %v3770_v5 = vmov 3   ;;  %v301_v6 = vld [vmem:[%s3828_s14 + $0x38] sm:$0xff]  ;;  %v176_v20 = vlaneseq }
  0x41   :  { %3181 = vmatprep.subr.mxu0 %v301_v6  ;;  %v300_v7 = vld [vmem:[%s3828_s14 + $0x30] sm:$0xff]  ;;  %v299_v9 = vld [vmem:[%s3828_s14 + $0x28] sm:$0xff]  ;;  %v298_v10 = vld [vmem:[%s3828_s14 + $0x20] sm:$0xff]  ;;  %vm302_vm0 = vcmask 523264   ;;  %vm666_vm1 = vcmask 261120   ;;  %s4640_s0 = sld [smem:[#allocation8_spill]] }
  0x42   :  { %v153_v8 = vld [vmem:[%s3783_s5 + $0x10] sm:$0xff]  ;;  %3182 = vmatpush3.msra.mxu0 %v301_v6  ;;  %v297_v11 = vld [vmem:[%s3828_s14 + $0x18] sm:$0xff]  ;;  %v295_v14 = vld [vmem:[%s3828_s14 + $0x8] sm:$0xff]  ;;  %v3981_v21 = vshrl.u32 %v176_v20, 7  ;;  %vm3772_vm2 = vmmov 0   ;;  %s4655_s28 = sld [smem:[#allocation7_spill]] }
  0x43   :  { %3697 = vset.pattern.permute.xlu1 %v3768_v3  ;;  %3695 = vset.pattern.permute.xlu0 %v3768_v3  ;;  %v296_v12 = vld [vmem:[%s3828_s14 + $0x10] sm:$0xff]  ;;  %v154_v13 = vld [vmem:[%s3783_s5 + $0x18] sm:$0xff]  ;;  %v294_v15 = vld [vmem:[%s3828_s14] sm:$0xff]  ;;  %s4641_s5 = sld [smem:[#allocation11_spill]]  ;;  %vm1882_vm3 = vcmask 64512  }
  0x44   :  { %189 = vperm.xlu1 %3697, %v152_v0   ;;  %185 = vperm.xlu0 %3695, %v151_v1   ;;  %v441_v16 = vld [vmem:[%s3843_s30 + $0x78] sm:$0xff]  ;;  %v452_v18 = vld [vmem:[%s3848_s6 + $0x30] sm:$0xff]  ;;  %v451_v19 = vld [vmem:[%s3848_s6 + $0x28] sm:$0xff]  ;;  %v178_v22 = vsub.s32 0, %v3981_v21  ;;  %v202_v26 = vsub.s32 1, %v3981_v21  ;;  %v230_v28 = vsub.s32 2, %v3981_v21 }
  0x45   :  { %3183 = vmatprep.subr.mxu0 %v300_v7  ;;  %v453_v17 = vld [vmem:[%s3848_s6 + $0x38] sm:$0xff]  ;;  %v155_v23 = vld [vmem:[%s3813_s29] sm:$0xf]  ;;  %v258_v29 = vsub.s32 3, %v3981_v21  ;;  %s4644_s29 = sld [smem:[#allocation14_spill]] }
  0x46   :  { %3184 = vmatpush3.msra.mxu0 %v300_v7  ;;  %3203 = vmatprep.subr.mxu1 %v453_v17  ;;  %v179_v27 = vrot.slane %v155_v23, %v178_v22  ;;  %v203_v30 = vrot.slane %v155_v23, %v202_v26  ;;  %v231_v35 = vrot.slane %v155_v23, %v230_v28  ;;  %v4000_v44 = vld [vmem:[%s3818_s3] ss:$0 sm:$0xff]  ;;  %s4645_s3 = sld [smem:[#allocation12_spill]] }
  0x47   :  { %3185 = vmatprep.subr.mxu0 %v299_v9  ;;  %3204 = vmatpush3.msra.mxu1 %v453_v17  ;;  %v3996_v36 = vrot.slane %v155_v23, %v258_v29  ;;  %v4003_v48 = vld [vmem:[%s3823_s8] ss:$0 sm:$0xff]  ;;  %s4646_s8 = sld [smem:[#allocation13_spill]] }
  0x48   :  { %3698 = vset.pattern.permute.xlu1 %v3769_v4  ;;  %3701 = vset.pattern.permute.xlu0 %v3770_v5  ;;  %v434_v23 = vld [vmem:[%s3843_s30 + $0x40] sm:$0xff]  ;;  %s4647_s14 = sld [smem:[#allocation6_spill]] }
  0x49   :  { %213 = vperm.xlu1 %3698, %v151_v1   ;;  %241 = vperm.xlu0 %3701, %v151_v1   ;;  %v440_v1 = vld [vmem:[%s3843_s30 + $0x70] sm:$0xff]  ;;  %s4656_s1 = sld [smem:[#allocation21_spill]] }
  0x4a   :  { %3186 = vmatpush3.msra.mxu0 %v299_v9  ;;  %3205 = vmatprep.subr.mxu1 %v452_v18  ;;  %v437_v9 = vld [vmem:[%s3843_s30 + $0x58] sm:$0xff]  ;;  %s4657_s2 = sld [smem:[#allocation23_spill]] }
  0x4b   :  { %3187 = vmatprep.subr.mxu0 %v298_v10  ;;  %3206 = vmatpush3.msra.mxu1 %v452_v18  ;;  %s4658_s7 = sld [smem:[#allocation22_spill]] }
  0x4c   :  { %3188 = vmatpush3.msra.mxu0 %v298_v10  ;;  %3207 = vmatprep.subr.mxu1 %v451_v19 }
  0x4d   :  { %3699 = vset.pattern.permute.xlu1 %v3767_v2  ;;  %245 = vperm.xlu0 %3701, %v152_v0  }
  0x4e   :  { %168 = vperm.xlu1 %3699, %v153_v8   ;;  %3189 = vmatprep.subr.mxu0 %v297_v11 }
  0x4f   :  { %3190 = vmatpush3.msra.mxu0 %v297_v11  ;;  %3208 = vmatpush3.msra.mxu1 %v451_v19  ;;  %v435_v19 = vld [vmem:[%s3843_s30 + $0x48] sm:$0xff] }
  0x50   :  { %3191 = vmatprep.subr.mxu0 %v296_v12 }
  0x51   :  { %3704 = vset.pattern.permute.xlu0 %v3769_v4  ;;  %3192 = vmatpush3.msra.mxu0 %v296_v12 }
  0x52   :  { %3700 = vset.pattern.permute.xlu1 %v3768_v3  ;;  %217 = vperm.xlu0 %3704, %v152_v0  }
  0x53   :  { %193 = vperm.xlu1 %3700, %v153_v8   ;;  %3193 = vmatprep.subr.mxu0 %v295_v14 }
  0x54   :  { %3194 = vmatpush3.msra.mxu0 %v295_v14 }
  0x55   :  { %3195 = vmatprep.subr.mxu0 %v294_v15 }
  0x56   :  { %225 = vperm.xlu0 %3704, %v154_v13   ;;  %3196 = vmatpush3.msra.mxu0 %v294_v15 }
  0x57   :  { %3702 = vset.pattern.permute.xlu1 %v3767_v2  ;;  %3225 = vmatprep.subr.mxu0 %v441_v16  ;;  %v439_v2 = vld [vmem:[%s3843_s30 + $0x68] sm:$0xff] }
  0x58   :  { %173 = vperm.xlu1 %3702, %v154_v13  }
  0x5a   :  { %3707 = vset.pattern.permute.xlu0 %v3770_v5 }
  0x5c   :  { %3703 = vset.pattern.permute.xlu1 %v3768_v3 }
  0x5d   :  { %197 = vperm.xlu1 %3703, %v154_v13  }
  0x61   :  { %3705 = vset.pattern.permute.xlu1 %v3769_v4 }
  0x62   :  { %221 = vperm.xlu1 %3705, %v153_v8  }
  0x66   :  { %3706 = vset.pattern.permute.xlu1 %v3770_v5  ;;  %v438_v5 = vld [vmem:[%s3843_s30 + $0x60] sm:$0xff] }
  0x67   :  { %249 = vperm.xlu1 %3706, %v153_v8  }
  0x6b   :  { %253 = vperm.xlu1 %3706, %v154_v13   ;;  %v436_v13 = vld [vmem:[%s3843_s30 + $0x50] sm:$0xff] }
  0xba   :  { %v164_v24 = vpop.permute.xlu1 %163  ;;  %v159_v25 = vpop.permute.xlu0 %158 }
  0xbb   :  { %v180_v31 = vmul.f32 %v179_v27, %v159_v25  ;;  %v181_v50 = vmul.f32 %v179_v27, %v164_v24 }
  0xbf   :  { %v190_v32 = vpop.permute.xlu1 %189  ;;  %v186_v33 = vpop.permute.xlu0 %185 }
  0xc0   :  { %v204_v34 = vmul.f32 %v203_v30, %v186_v33  ;;  %v205_v47 = vmul.f32 %v203_v30, %v190_v32 }
  0xc2   :  { %v208_v37 = vadd.f32 %v204_v34, %v180_v31  ;;  %v209_v53 = vadd.f32 %v205_v47, %v181_v50  ;;  %v433_v31 = vld [vmem:[%s3843_s30 + $0x38] sm:$0xff]  ;;  %v432_v34 = vld [vmem:[%s3843_s30 + $0x30] sm:$0xff]  ;;  %v427_v47 = vld [vmem:[%s3843_s30 + $0x8] sm:$0xff] }
  0xc3   :  { %v442_v50 = vld [vmem:[%s3788_s9] sm:$0xff] }
  0xc4   :  { %v214_v38 = vpop.permute.xlu1 %213  ;;  %v242_v39 = vpop.permute.xlu0 %241  ;;  %3219 = vmatprep.mubr.msk.f32.mxu1 %vm302_vm0, %v442_v50 }
  0xc5   :  { %v232_v40 = vmul.f32 %v231_v35, %v214_v38  ;;  %v260_v41 = vmul.f32 %v3996_v36, %v242_v39  ;;  %v431_v38 = vld [vmem:[%s3843_s30 + $0x28] sm:$0xff] }
  0xc7   :  { %v236_v42 = vadd.f32 %v232_v40, %v208_v37  ;;  %v450_v40 = vld [vmem:[%s3848_s6 + $0x20] sm:$0xff] }
  0xc8   :  { %v246_v43 = vpop.permute.xlu0 %245  ;;  %3209 = vmatprep.subr.mxu1 %v450_v40 }
  0xc9   :  { %v264_v45 = vadd.f32 %v260_v41, %v236_v42  ;;  %v169_v46 = vpop.permute.xlu1 %168  ;;  %v261_v54 = vmul.f32 %v3996_v36, %v246_v43  ;;  %v430_v41 = vld [vmem:[%s3843_s30 + $0x20] sm:$0xff]  ;;  %3210 = vmatpush3.msra.mxu1 %v450_v40  ;;  %v449_v42 = vld [vmem:[%s3848_s6 + $0x18] sm:$0xff] }
  0xca   :  { %v182_v6 = vmul.f32 %v179_v27, %v169_v46  ;;  %v429_v43 = vld [vmem:[%s3843_s30 + $0x18] sm:$0xff]  ;;  %3211 = vmatprep.subr.mxu1 %v449_v42  ;;  %v447_v46 = vld [vmem:[%s3848_s6 + $0x8] sm:$0xff] }
  0xcb   :  { %v275_v49 = vmul.f32 %v4000_v44, %v264_v45  ;;  %3212 = vmatpush3.msra.mxu1 %v449_v42  ;;  %v428_v45 = vld [vmem:[%s3843_s30 + $0x10] sm:$0xff] }
  0xcd   :  { %v218_v51 = vpop.permute.xlu0 %217  ;;  %v286_v52 = vadd.f32 %v4003_v48, %v275_v49  ;;  %v426_v49 = vld [vmem:[%s3843_s30] sm:$0xff]  ;;  %s4650_s30 = sld [smem:[#allocation16_spill]] }
  0xce   :  { %v233_v55 = vmul.f32 %v231_v35, %v218_v51  ;;  %v194_v56 = vpop.permute.xlu1 %193  ;;  %v443_v51 = vld [vmem:[%s3788_s9 + $0x8] sm:$0xff] }
  0xcf   :  { %v290_v57 = vmax.f32 %v286_v52, 0.0  ;;  %v206_v3 = vmul.f32 %v203_v30, %v194_v56  ;;  %v444_v52 = vld [vmem:[%s3788_s9 + $0x10] sm:$0xff] }
  0xd0   :  { %v237_v58 = vadd.f32 %v233_v55, %v209_v53  ;;  %v445_v53 = vld [vmem:[%s3788_s9 + $0x18] sm:$0xff]  ;;  %s4642_s9 = sld [smem:[#allocation9_spill]] }
  0xd1   :  { %3197 = vmatprep.mubr.msk.f32.mxu0 %vm302_vm0, %v290_v57  ;;  %v226_v10 = vpop.permute.xlu0 %225  ;;  %v210_v11 = vadd.f32 %v206_v3, %v182_v6  ;;  %v2779_v57 = vld [vmem:[%s3838_s24] ss:$0 sm:$0xff]  ;;  %s4649_s24 = sld [smem:[#allocation15_spill]] }
  0xd2   :  { %v265_v59 = vadd.f32 %v261_v54, %v237_v58  ;;  %v2778_v54 = vld [vmem:[%s3833_s19] ss:$0 sm:$0xff]  ;;  %s4648_s19 = sld [smem:[#allocation17_spill]] }
  0xd3   :  { %v174_v60 = vpop.permute.xlu1 %173 }
  0xd4   :  { %v276_v61 = vmul.f32 %v4000_v44, %v265_v59  ;;  %v183_v12 = vmul.f32 %v179_v27, %v174_v60 }
  0xd6   :  { %v287_v62 = vadd.f32 %v4003_v48, %v276_v61 }
  0xd8   :  { %v198_v63 = vpop.permute.xlu1 %197  ;;  %v291_v0 = vmax.f32 %v287_v62, 0.0 }
  0xd9   :  { %v207_v7 = vmul.f32 %v203_v30, %v198_v63 }
  0xda   :  { %3198 = vmatmul.mubr.msk.f32.vlgmr.msra.gmra.mxu0 %vm302_vm0, %v291_v0 }
  0xdb   :  { %3226 = vmatpush3.msra.mxu0 %v441_v16  ;;  %v211_v15 = vadd.f32 %v207_v7, %v183_v12  ;;  %v235_v16 = vmul.f32 %v231_v35, %v226_v10  ;;  %v794_v10 = vld [vmem:[%s3868_s4 + $0x70] sm:$0xff]  ;;  %v792_v12 = vld [vmem:[%s3868_s4 + $0x60] sm:$0xff] }
  0xdc   :  { %3227 = vmatprep.subr.mxu0 %v440_v1 }
  0xdd   :  { %v222_v4 = vpop.permute.xlu1 %221  ;;  %3228 = vmatpush3.msra.mxu0 %v440_v1  ;;  %v239_v25 = vadd.f32 %v235_v16, %v211_v15  ;;  %v789_v15 = vld [vmem:[%s3868_s4 + $0x48] sm:$0xff]  ;;  %v788_v16 = vld [vmem:[%s3868_s4 + $0x40] sm:$0xff] }
  0xde   :  { %3229 = vmatprep.subr.mxu0 %v439_v2  ;;  %v234_v8 = vmul.f32 %v231_v35, %v222_v4 }
  0xdf   :  { %3230 = vmatpush3.msra.mxu0 %v439_v2 }
  0xe0   :  { %3231 = vmatprep.subr.mxu0 %v438_v5  ;;  %v238_v17 = vadd.f32 %v234_v8, %v210_v11  ;;  %v662_v8 = vld [vmem:[%s3798_s17] sm:$0xff]  ;;  %v793_v11 = vld [vmem:[%s3868_s4 + $0x68] sm:$0xff] }
  0xe1   :  { %3232 = vmatpush3.msra.mxu0 %v438_v5 }
  0xe2   :  { %v250_v14 = vpop.permute.xlu1 %249  ;;  %3233 = vmatprep.subr.mxu0 %v437_v9 }
  0xe3   :  { %v262_v18 = vmul.f32 %v3996_v36, %v250_v14  ;;  %3234 = vmatpush3.msra.mxu0 %v437_v9  ;;  %v795_v9 = vld [vmem:[%s3868_s4 + $0x78] sm:$0xff]  ;;  %v790_v14 = vld [vmem:[%s3868_s4 + $0x50] sm:$0xff] }
  0xe4   :  { %3235 = vmatprep.subr.mxu0 %v436_v13 }
  0xe5   :  { %v266_v20 = vadd.f32 %v262_v18, %v238_v17  ;;  %3236 = vmatpush3.msra.mxu0 %v436_v13  ;;  %v791_v13 = vld [vmem:[%s3868_s4 + $0x58] sm:$0xff]  ;;  %v786_v18 = vld [vmem:[%s3868_s4 + $0x30] sm:$0xff] }
  0xe6   :  { %v254_v24 = vpop.permute.xlu1 %253  ;;  %3237 = vmatprep.subr.mxu0 %v435_v19  ;;  %v787_v17 = vld [vmem:[%s3868_s4 + $0x38] sm:$0xff] }
  0xe7   :  { %v277_v27 = vmul.f32 %v4000_v44, %v266_v20  ;;  %v263_v30 = vmul.f32 %v3996_v36, %v254_v24  ;;  %3238 = vmatpush3.msra.mxu0 %v435_v19  ;;  %v785_v19 = vld [vmem:[%s3868_s4 + $0x28] sm:$0xff]  ;;  %v784_v20 = vld [vmem:[%s3868_s4 + $0x20] sm:$0xff]  ;;  %v782_v24 = vld [vmem:[%s3868_s4 + $0x10] sm:$0xff] }
  0xe8   :  { %3239 = vmatprep.subr.mxu0 %v434_v23 }
  0xe9   :  { %v288_v32 = vadd.f32 %v4003_v48, %v277_v27  ;;  %v267_v33 = vadd.f32 %v263_v30, %v239_v25  ;;  %3240 = vmatpush3.msra.mxu0 %v434_v23  ;;  %v783_v23 = vld [vmem:[%s3868_s4 + $0x18] sm:$0xff] }
  0xea   :  { %3241 = vmatprep.subr.mxu0 %v433_v31 }
  0xeb   :  { %v292_v35 = vmax.f32 %v288_v32, 0.0  ;;  %v278_v37 = vmul.f32 %v4000_v44, %v267_v33  ;;  %3242 = vmatpush3.msra.mxu0 %v433_v31  ;;  %v448_v44 = vld [vmem:[%s3848_s6 + $0x10] sm:$0xff] }
  0xec   :  { %3243 = vmatprep.subr.mxu0 %v432_v34  ;;  %3213 = vmatprep.subr.mxu1 %v448_v44 }
  0xed   :  { %v289_v36 = vadd.f32 %v4003_v48, %v278_v37  ;;  %3200 = vmatprep.mubr.msk.f32.mxu0 %vm302_vm0, %v292_v35  ;;  %3244 = vmatpush3.msra.mxu0 %v432_v34  ;;  %v446_v48 = vld [vmem:[%s3848_s6] sm:$0xff]  ;;  %s4651_s6 = sld [smem:[#allocation20_spill]] }
  0xee   :  { %3245 = vmatprep.subr.mxu0 %v431_v38  ;;  %3214 = vmatpush3.msra.mxu1 %v448_v44  ;;  %v2784_v34 = vld [vmem:[%s3853_s12] ss:$0 sm:$0xff]  ;;  %s4652_s12 = sld [smem:[#allocation5_spill]] }
  0xef   :  { %v293_v39 = vmax.f32 %v289_v36, 0.0  ;;  %3246 = vmatpush3.msra.mxu0 %v431_v38  ;;  %3215 = vmatprep.subr.mxu1 %v447_v46 }
  0xf0   :  { %3247 = vmatprep.subr.mxu0 %v430_v41  ;;  %3216 = vmatpush3.msra.mxu1 %v447_v46 }
  0xf1   :  { %3201 = vmatmul.mubr.msk.f32.gmra.mxu0 %vm302_vm0, %v293_v39  ;;  %3217 = vmatprep.subr.mxu1 %v446_v48 }
  0xf2   :  { %3248 = vmatpush3.msra.mxu0 %v430_v41  ;;  %3218 = vmatpush3.msra.mxu1 %v446_v48 }
  0xf3   :  { %3249 = vmatprep.subr.mxu0 %v429_v43  ;;  %3220 = vmatmul.mubr.msk.f32.vlgmr.msra.gmra.mxu1 %vm302_vm0, %v443_v51 }
  0xf4   :  { %3250 = vmatpush3.msra.mxu0 %v429_v43  ;;  %3222 = vmatprep.mubr.msk.f32.mxu1 %vm302_vm0, %v444_v52  ;;  %v2785_v43 = vld [vmem:[%s3858_s20] ss:$0 sm:$0xff]  ;;  %s4653_s20 = sld [smem:[#allocation18_spill]] }
  0xf5   :  { %3251 = vmatprep.subr.mxu0 %v428_v45  ;;  %3277 = vmatprep.subr.mxu1 %v795_v9 }
  0xf6   :  { %3252 = vmatpush3.msra.mxu0 %v428_v45  ;;  %3278 = vmatpush3.msra.mxu1 %v795_v9  ;;  %v781_v9 = vld [vmem:[%s3868_s4 + $0x8] sm:$0xff] }
  0xf7   :  { %3253 = vmatprep.subr.mxu0 %v427_v47  ;;  %3223 = vmatmul.mubr.msk.f32.gmra.mxu1 %vm302_vm0, %v445_v53 }
  0xf8   :  { %3254 = vmatpush3.msra.mxu0 %v427_v47  ;;  %3279 = vmatprep.subr.mxu1 %v794_v10 }
  0xf9   :  { %3255 = vmatprep.subr.mxu0 %v426_v49  ;;  %3280 = vmatpush3.msra.mxu1 %v794_v10  ;;  %v780_v10 = vld [vmem:[%s3868_s4] sm:$0xff]  ;;  %s4654_s4 = sld [smem:[#allocation19_spill]] }
  0xfa   :  { %3256 = vmatpush3.msra.mxu0 %v426_v49  ;;  %3281 = vmatprep.subr.mxu1 %v793_v11 }
  0xfb   :  { %3282 = vmatpush3.msra.mxu1 %v793_v11  ;;  %v1007_v11 = vld [vmem:[%s4641_s5 + $0x78] sm:$0xff] }
  0xfc   :  { %3283 = vmatprep.subr.mxu1 %v792_v12 }
  0xfd   :  { %3284 = vmatpush3.msra.mxu1 %v792_v12 }
  0xfe   :  { %3285 = vmatprep.subr.mxu1 %v791_v13 }
  0xff   :  { %3286 = vmatpush3.msra.mxu1 %v791_v13 }
 0x100   :  { %3287 = vmatprep.subr.mxu1 %v790_v14 }
 0x101   :  { %3288 = vmatpush3.msra.mxu1 %v790_v14  ;;  %v1006_v14 = vld [vmem:[%s4641_s5 + $0x70] sm:$0xff] }
 0x102   :  { %3289 = vmatprep.subr.mxu1 %v789_v15 }
 0x103   :  { %3290 = vmatpush3.msra.mxu1 %v789_v15 }
 0x104   :  { %3291 = vmatprep.subr.mxu1 %v788_v16 }
 0x105   :  { %3292 = vmatpush3.msra.mxu1 %v788_v16  ;;  %v1005_v16 = vld [vmem:[%s4641_s5 + $0x68] sm:$0xff] }
 0x106   :  { %3293 = vmatprep.subr.mxu1 %v787_v17 }
 0x107   :  { %3294 = vmatpush3.msra.mxu1 %v787_v17 }
 0x108   :  { %3295 = vmatprep.subr.mxu1 %v786_v18 }
 0x109   :  { %3296 = vmatpush3.msra.mxu1 %v786_v18  ;;  %v1004_v18 = vld [vmem:[%s4641_s5 + $0x60] sm:$0xff] }
 0x10a   :  { %3297 = vmatprep.subr.mxu1 %v785_v19 }
 0x10b   :  { %3298 = vmatpush3.msra.mxu1 %v785_v19  ;;  %v1003_v19 = vld [vmem:[%s4641_s5 + $0x58] sm:$0xff] }
 0x10c   :  { %3299 = vmatprep.subr.mxu1 %v784_v20 }
 0x10d   :  { %3300 = vmatpush3.msra.mxu1 %v784_v20  ;;  %v1002_v20 = vld [vmem:[%s4641_s5 + $0x50] sm:$0xff] }
 0x10e   :  { %3301 = vmatprep.subr.mxu1 %v783_v23 }
 0x10f   :  { %3302 = vmatpush3.msra.mxu1 %v783_v23  ;;  %v1001_v23 = vld [vmem:[%s4641_s5 + $0x48] sm:$0xff] }
 0x110   :  { %3303 = vmatprep.subr.mxu1 %v782_v24 }
 0x111   :  { %3304 = vmatpush3.msra.mxu1 %v782_v24  ;;  %v1000_v24 = vld [vmem:[%s4641_s5 + $0x40] sm:$0xff] }
 0x112   :  { %3305 = vmatprep.subr.mxu1 %v781_v9 }
 0x113   :  { %3306 = vmatpush3.msra.mxu1 %v781_v9  ;;  %v1288_v9 = vld [vmem:[%s4644_s29 + $0xa8] sm:$0xff] }
 0x114   :  { %3307 = vmatprep.subr.mxu1 %v780_v10 }
 0x115   :  { %3308 = vmatpush3.msra.mxu1 %v780_v10  ;;  %v1287_v10 = vld [vmem:[%s4644_s29 + $0xa0] sm:$0xff] }
 0x116   :  { %3353 = vmatprep.subr.mxu1 %v1007_v11 }
 0x19a   :  { %v3199_v55 = vpop.f32.mrf.mxu0 }
 0x19b   :  { %v408_v56 = vmul.f32 %v3199_v55, %v2778_v54  ;;  %v779_v55 = vld [vmem:[%s4640_s0 + $0x78] sm:$0xff] }
 0x19c   :  { %v381_v58 = vpop.f32.mrf.mxu0 }
 0x19d   :  { %v407_v59 = vmul.f32 %v2778_v54, %v381_v58  ;;  %v419_v60 = vadd.f32 %v2779_v57, %v408_v56  ;;  %v664_v56 = vld [vmem:[%s3798_s17 + $0x10] sm:$0xff]  ;;  %v665_v58 = vld [vmem:[%s3798_s17 + $0x18] sm:$0xff] }
 0x19f   :  { %v418_v61 = vadd.f32 %v2779_v57, %v407_v59  ;;  %v423_v63 = vmax.f32 %v419_v60, 0.0  ;;  %v777_v59 = vld [vmem:[%s4640_s0 + $0x68] sm:$0xff]  ;;  %v776_v60 = vld [vmem:[%s4640_s0 + $0x60] sm:$0xff] }
 0x1a1   :  { %v422_v62 = vmax.f32 %v418_v61, 0.0  ;;  %v775_v61 = vld [vmem:[%s4640_s0 + $0x58] sm:$0xff] }
 0x1a3   :  { %3257 = vmatprep.mubr.f32.mxu0 %v422_v62  ;;  %v774_v62 = vld [vmem:[%s4640_s0 + $0x50] sm:$0xff] }
 0x1a4   :  { %3258 = vmatmul.mubr.f32.vlgmr.msra.gmra.mxu0 %v423_v63  ;;  %v773_v63 = vld [vmem:[%s4640_s0 + $0x48] sm:$0xff] }
 0x1b1   :  { %v3202_v0 = vpop.f32.mrf.mxu0 }
 0x1b2   :  { %v410_v1 = vmul.f32 %v3202_v0, %v2778_v54  ;;  %v772_v0 = vld [vmem:[%s4640_s0 + $0x40] sm:$0xff] }
 0x1b3   :  { %v391_v2 = vpop.f32.mrf.mxu0  ;;  %v3221_v25 = vpop.f32.mrf.mxu1 }
 0x1b4   :  { %v409_v3 = vmul.f32 %v2778_v54, %v391_v2  ;;  %v421_v4 = vadd.f32 %v2779_v57, %v410_v1  ;;  %v663_v54 = vld [vmem:[%s3798_s17 + $0x8] sm:$0xff]  ;;  %v771_v1 = vld [vmem:[%s4640_s0 + $0x38] sm:$0xff]  ;;  %v770_v2 = vld [vmem:[%s4640_s0 + $0x30] sm:$0xff]  ;;  %s4643_s17 = sld [smem:[#allocation10_spill]] }
 0x1b5   :  { %v532_v30 = vpop.f32.mrf.mxu1 }
 0x1b6   :  { %v420_v5 = vadd.f32 %v2779_v57, %v409_v3  ;;  %v425_v7 = vmax.f32 %v421_v4, 0.0  ;;  %v778_v57 = vld [vmem:[%s4640_s0 + $0x70] sm:$0xff]  ;;  %v769_v3 = vld [vmem:[%s4640_s0 + $0x28] sm:$0xff]  ;;  %v768_v4 = vld [vmem:[%s4640_s0 + $0x20] sm:$0xff] }
 0x1b7   :  { %v3224_v32 = vpop.f32.mrf.mxu1 }
 0x1b8   :  { %v424_v6 = vmax.f32 %v420_v5, 0.0  ;;  %v767_v5 = vld [vmem:[%s4640_s0 + $0x18] sm:$0xff] }
 0x1b9   :  { %v542_v36 = vpop.f32.mrf.mxu1 }
 0x1ba   :  { %3260 = vmatprep.mubr.f32.mxu0 %v424_v6  ;;  %v766_v6 = vld [vmem:[%s4640_s0 + $0x10] sm:$0xff] }
 0x1bb   :  { %3261 = vmatmul.mubr.f32.gmra.mxu0 %v425_v7  ;;  %v765_v7 = vld [vmem:[%s4640_s0 + $0x8] sm:$0xff] }
 0x1bc   :  { %3271 = vmatprep.mubr.msk.f32.mxu0 %vm666_vm1, %v662_v8  ;;  %v764_v8 = vld [vmem:[%s4640_s0] sm:$0xff] }
 0x264   :  { %v3259_v27 = vpop.f32.mrf.mxu0 }
 0x265   :  { %v623_v33 = vadd.f32 %v3259_v27, %v3221_v25  ;;  %v999_v25 = vld [vmem:[%s4641_s5 + $0x38] sm:$0xff]  ;;  %v998_v27 = vld [vmem:[%s4641_s5 + $0x30] sm:$0xff] }
 0x266   :  { %v617_v31 = vpop.f32.mrf.mxu0 }
 0x267   :  { %v618_v37 = vadd.f32 %v617_v31, %v532_v30  ;;  %v644_v40 = vmul.f32 %v2784_v34, %v623_v33  ;;  %v997_v30 = vld [vmem:[%s4641_s5 + $0x28] sm:$0xff]  ;;  %v996_v31 = vld [vmem:[%s4641_s5 + $0x20] sm:$0xff]  ;;  %v994_v33 = vld [vmem:[%s4641_s5 + $0x10] sm:$0xff] }
 0x269   :  { %v643_v44 = vmul.f32 %v2784_v34, %v618_v37  ;;  %v655_v49 = vadd.f32 %v2785_v43, %v644_v40 }
 0x26b   :  { %v654_v51 = vadd.f32 %v2785_v43, %v643_v44  ;;  %v659_v52 = vmax.f32 %v655_v49, 0.0  ;;  %v2791_v44 = vld [vmem:[%s4643_s17] ss:$0 sm:$0xff] }
 0x26d   :  { %v658_v53 = vmax.f32 %v654_v51, 0.0 }
 0x27b   :  { %v3262_v35 = vpop.f32.mrf.mxu0 }
 0x27c   :  { %v633_v38 = vadd.f32 %v3262_v35, %v3224_v32  ;;  %v995_v32 = vld [vmem:[%s4641_s5 + $0x18] sm:$0xff]  ;;  %v992_v35 = vld [vmem:[%s4641_s5] sm:$0xff] }
 0x27d   :  { %v627_v39 = vpop.f32.mrf.mxu0 }
 0x27e   :  { %v646_v41 = vmul.f32 %v2784_v34, %v633_v38  ;;  %v628_v42 = vadd.f32 %v627_v39, %v542_v36  ;;  %v2790_v39 = vld [vmem:[%s4642_s9] ss:$0 sm:$0xff] }
 0x280   :  { %v645_v45 = vmul.f32 %v2784_v34, %v628_v42  ;;  %v657_v46 = vadd.f32 %v2785_v43, %v646_v41  ;;  %v993_v34 = vld [vmem:[%s4641_s5 + $0x8] sm:$0xff] }
 0x282   :  { %v4068_v47 = vmax.f32 %v657_v46, 0.0  ;;  %v656_v48 = vadd.f32 %v2785_v43, %v645_v45 }
 0x284   :  { %3263 = vmatprep.subr.mxu0 %v4068_v47  ;;  %v4071_v50 = vmax.f32 %v656_v48, 0.0 }
 0x285   :  { %3264 = vmatpush3.msra.mxu0 %v4068_v47 }
 0x286   :  { %3265 = vmatprep.subr.mxu0 %v4071_v50 }
 0x287   :  { %3266 = vmatpush3.msra.mxu0 %v4071_v50 }
 0x288   :  { %3267 = vmatprep.subr.mxu0 %v659_v52 }
 0x289   :  { %3268 = vmatpush3.msra.mxu0 %v659_v52 }
 0x28a   :  { %3269 = vmatprep.subr.mxu0 %v658_v53 }
 0x28b   :  { %3270 = vmatpush3.msra.mxu0 %v658_v53 }
 0x28c   :  { %3272 = vmatmul.mubr.msk.f32.vlgmr.msra.gmra.mxu0 %vm666_vm1, %v663_v54  ;;  %3315 = vmatprep.subr.mxu0 %v779_v55 }
 0x28d   :  { %3316 = vmatpush3.msra.mxu0 %v779_v55  ;;  %3274 = vmatprep.mubr.msk.f32.mxu0 %vm666_vm1, %v664_v56 }
 0x28e   :  { %3317 = vmatprep.subr.mxu0 %v778_v57 }
 0x28f   :  { %3318 = vmatpush3.msra.mxu0 %v778_v57 }
 0x290   :  { %3275 = vmatmul.mubr.msk.f32.gmra.mxu0 %vm666_vm1, %v665_v58  ;;  %3319 = vmatprep.subr.mxu0 %v777_v59 }
 0x291   :  { %3320 = vmatpush3.msra.mxu0 %v777_v59  ;;  %3347 = vmatprep.mubr.f32.mxu0 %v658_v53 }
 0x292   :  { %3321 = vmatprep.subr.mxu0 %v776_v60 }
 0x293   :  { %3322 = vmatpush3.msra.mxu0 %v776_v60 }
 0x294   :  { %3323 = vmatprep.subr.mxu0 %v775_v61 }
 0x295   :  { %3324 = vmatpush3.msra.mxu0 %v775_v61 }
 0x296   :  { %3325 = vmatprep.subr.mxu0 %v774_v62 }
 0x297   :  { %3326 = vmatpush3.msra.mxu0 %v774_v62  ;;  %v3771_v62 = vmov 0.0  }
 0x298   :  { %3327 = vmatprep.subr.mxu0 %v773_v63 }
 0x299   :  { %3328 = vmatpush3.msra.mxu0 %v773_v63  ;;  %v1298_v63 = vld [vmem:[%s4644_s29 + $0xf8] sm:$0xff] }
 0x29a   :  { %3329 = vmatprep.subr.mxu0 %v772_v0 }
 0x29b   :  { %3330 = vmatpush3.msra.mxu0 %v772_v0  ;;  %v1297_v0 = vld [vmem:[%s4644_s29 + $0xf0] sm:$0xff] }
 0x29c   :  { %3331 = vmatprep.subr.mxu0 %v771_v1 }
 0x29d   :  { %3332 = vmatpush3.msra.mxu0 %v771_v1  ;;  %v1296_v1 = vld [vmem:[%s4644_s29 + $0xe8] sm:$0xff] }
 0x29e   :  { %3333 = vmatprep.subr.mxu0 %v770_v2 }
 0x29f   :  { %3334 = vmatpush3.msra.mxu0 %v770_v2  ;;  %v1295_v2 = vld [vmem:[%s4644_s29 + $0xe0] sm:$0xff] }
 0x2a0   :  { %3335 = vmatprep.subr.mxu0 %v769_v3 }
 0x2a1   :  { %3336 = vmatpush3.msra.mxu0 %v769_v3  ;;  %v1294_v3 = vld [vmem:[%s4644_s29 + $0xd8] sm:$0xff] }
 0x2a2   :  { %3337 = vmatprep.subr.mxu0 %v768_v4 }
 0x2a3   :  { %3338 = vmatpush3.msra.mxu0 %v768_v4  ;;  %v1293_v4 = vld [vmem:[%s4644_s29 + $0xd0] sm:$0xff] }
 0x2a4   :  { %3339 = vmatprep.subr.mxu0 %v767_v5 }
 0x2a5   :  { %3340 = vmatpush3.msra.mxu0 %v767_v5  ;;  %v1292_v5 = vld [vmem:[%s4644_s29 + $0xc8] sm:$0xff] }
 0x2a6   :  { %3341 = vmatprep.subr.mxu0 %v766_v6 }
 0x2a7   :  { %3342 = vmatpush3.msra.mxu0 %v766_v6  ;;  %v1291_v6 = vld [vmem:[%s4644_s29 + $0xc0] sm:$0xff] }
 0x2a8   :  { %3343 = vmatprep.subr.mxu0 %v765_v7 }
 0x2a9   :  { %3344 = vmatpush3.msra.mxu0 %v765_v7  ;;  %v1290_v7 = vld [vmem:[%s4644_s29 + $0xb8] sm:$0xff] }
 0x2aa   :  { %3345 = vmatprep.subr.mxu0 %v764_v8 }
 0x2ab   :  { %3346 = vmatpush3.msra.mxu0 %v764_v8  ;;  %v1289_v8 = vld [vmem:[%s4644_s29 + $0xb0] sm:$0xff] }
 0x2ac   :  { %3348 = vmatmul.mubr.f32.vlgmr.msra.gmra.mxu0 %v659_v52  ;;  %3391 = vmatprep.subr.mxu0 %v3771_v62 }
 0x2ad   :  { %3350 = vmatprep.mubr.f32.mxu0 %v4071_v50 }
 0x2b0   :  { %3351 = vmatmul.mubr.f32.gmra.mxu0 %v4068_v47 }
 0x2b1   :  { %3399 = vmatprep.mubr.msk.f32.mxu0 %vm3772_vm2, %v3771_v62 }
 0x34c   :  { %v3273_v12 = vpop.f32.mrf.mxu0 }
 0x34e   :  { %v745_v13 = vpop.f32.mrf.mxu0 }
 0x34f   :  { %3309 = vmatprep.mubr.f32.mxu1 %v745_v13 }
 0x350   :  { %v3276_v15 = vpop.f32.mrf.mxu0  ;;  %3310 = vmatmul.mubr.f32.vlgmr.msra.gmra.mxu1 %v3273_v12  ;;  %v2792_v12 = vld [vmem:[%s4645_s3] ss:$0 sm:$0xff] }
 0x351   :  { %3354 = vmatpush3.msra.mxu1 %v1007_v11 }
 0x352   :  { %v755_v17 = vpop.f32.mrf.mxu0  ;;  %3355 = vmatprep.subr.mxu1 %v1006_v14 }
 0x353   :  { %3312 = vmatprep.mubr.f32.mxu1 %v755_v17  ;;  %3356 = vmatpush3.msra.mxu1 %v1006_v14  ;;  %v2793_v17 = vld [vmem:[%s4646_s8] ss:$0 sm:$0xff] }
 0x354   :  { %3313 = vmatmul.mubr.f32.gmra.mxu1 %v3276_v15  ;;  %3357 = vmatprep.subr.mxu1 %v1005_v16 }
 0x355   :  { %3358 = vmatpush3.msra.mxu1 %v1005_v16 }
 0x356   :  { %3359 = vmatprep.subr.mxu1 %v1004_v18 }
 0x357   :  { %3360 = vmatpush3.msra.mxu1 %v1004_v18 }
 0x358   :  { %3361 = vmatprep.subr.mxu1 %v1003_v19 }
 0x359   :  { %3362 = vmatpush3.msra.mxu1 %v1003_v19 }
 0x35a   :  { %3363 = vmatprep.subr.mxu1 %v1002_v20 }
 0x35b   :  { %3364 = vmatpush3.msra.mxu1 %v1002_v20 }
 0x35c   :  { %3365 = vmatprep.subr.mxu1 %v1001_v23 }
 0x35d   :  { %3366 = vmatpush3.msra.mxu1 %v1001_v23 }
 0x35e   :  { %3367 = vmatprep.subr.mxu1 %v1000_v24 }
 0x35f   :  { %3368 = vmatpush3.msra.mxu1 %v1000_v24 }
 0x360   :  { %3369 = vmatprep.subr.mxu1 %v999_v25 }
 0x361   :  { %3370 = vmatpush3.msra.mxu1 %v999_v25 }
 0x362   :  { %3371 = vmatprep.subr.mxu1 %v998_v27 }
 0x363   :  { %3372 = vmatpush3.msra.mxu1 %v998_v27 }
 0x364   :  { %3373 = vmatprep.subr.mxu1 %v997_v30 }
 0x365   :  { %3374 = vmatpush3.msra.mxu1 %v997_v30 }
 0x366   :  { %3375 = vmatprep.subr.mxu1 %v996_v31 }
 0x367   :  { %3376 = vmatpush3.msra.mxu1 %v996_v31 }
 0x368   :  { %3377 = vmatprep.subr.mxu1 %v995_v32 }
 0x369   :  { %3378 = vmatpush3.msra.mxu1 %v995_v32 }
 0x36a   :  { %3379 = vmatprep.subr.mxu1 %v994_v33 }
 0x36b   :  { %3380 = vmatpush3.msra.mxu1 %v994_v33 }
 0x36c   :  { %3381 = vmatprep.subr.mxu1 %v993_v34  ;;  %v3349_v37 = vpop.f32.mrf.mxu0 }
 0x36d   :  { %3382 = vmatpush3.msra.mxu1 %v993_v34  ;;  %v1119_v34 = vld [vmem:[%s4647_s14] sm:$0xff] }
 0x36e   :  { %3383 = vmatprep.subr.mxu1 %v992_v35  ;;  %v947_v38 = vpop.f32.mrf.mxu0 }
 0x36f   :  { %3384 = vmatpush3.msra.mxu1 %v992_v35  ;;  %v1209_v35 = vld [vmem:[%s4647_s14 + $0x8] sm:$0xff] }
 0x370   :  { %v3352_v41 = vpop.f32.mrf.mxu0  ;;  %3413 = vmatprep.subr.mxu1 %v3771_v62 }
 0x372   :  { %v957_v49 = vpop.f32.mrf.mxu0 }
 0x410   :  { %v3311_v36 = vpop.f32.mrf.mxu1 }
 0x411   :  { %v953_v40 = vadd.f32 %v3349_v37, %v3311_v36  ;;  %v1208_v37 = vld [vmem:[%s4644_s29 + $0x78] sm:$0xff]  ;;  %v1206_v36 = vld [vmem:[%s4644_s29 + $0x68] sm:$0xff] }
 0x412   :  { %v862_v42 = vpop.f32.mrf.mxu1 }
 0x413   :  { %v974_v43 = vmul.f32 %v2790_v39, %v953_v40  ;;  %v948_v45 = vadd.f32 %v947_v38, %v862_v42  ;;  %v1207_v38 = vld [vmem:[%s4644_s29 + $0x70] sm:$0xff]  ;;  %v1204_v40 = vld [vmem:[%s4644_s29 + $0x58] sm:$0xff]  ;;  %v1202_v42 = vld [vmem:[%s4644_s29 + $0x48] sm:$0xff] }
 0x414   :  { %v3314_v46 = vpop.f32.mrf.mxu1 }
 0x415   :  { %v973_v47 = vmul.f32 %v2790_v39, %v948_v45  ;;  %v963_v48 = vadd.f32 %v3352_v41, %v3314_v46  ;;  %v985_v50 = vadd.f32 %v2791_v44, %v974_v43  ;;  %v1203_v41 = vld [vmem:[%s4644_s29 + $0x50] sm:$0xff]  ;;  %v1201_v43 = vld [vmem:[%s4644_s29 + $0x40] sm:$0xff]  ;;  %v1198_v46 = vld [vmem:[%s4644_s29 + $0x28] sm:$0xff] }
 0x416   :  { %v872_v51 = vpop.f32.mrf.mxu1  ;;  %v1199_v45 = vld [vmem:[%s4644_s29 + $0x30] sm:$0xff] }
 0x417   :  { %v976_v52 = vmul.f32 %v2790_v39, %v963_v48  ;;  %v958_v53 = vadd.f32 %v957_v49, %v872_v51  ;;  %v984_v54 = vadd.f32 %v2791_v44, %v973_v47  ;;  %v989_v57 = vmax.f32 %v985_v50, 0.0  ;;  %v1197_v47 = vld [vmem:[%s4644_s29 + $0x20] sm:$0xff]  ;;  %v1196_v48 = vld [vmem:[%s4644_s29 + $0x18] sm:$0xff]  ;;  %v1195_v49 = vld [vmem:[%s4644_s29 + $0x10] sm:$0xff] }
 0x418   :  { %v1194_v50 = vld [vmem:[%s4644_s29 + $0x8] sm:$0xff]  ;;  %v1193_v51 = vld [vmem:[%s4644_s29] sm:$0xff] }
 0x419   :  { %v975_v55 = vmul.f32 %v2790_v39, %v958_v53  ;;  %v988_v56 = vmax.f32 %v984_v54, 0.0  ;;  %v987_v58 = vadd.f32 %v2791_v44, %v976_v52  ;;  %v1205_v39 = vld [vmem:[%s4644_s29 + $0x60] sm:$0xff]  ;;  %v1286_v52 = vld [vmem:[%s4644_s29 + $0x98] sm:$0xff]  ;;  %v1285_v53 = vld [vmem:[%s4644_s29 + $0x90] sm:$0xff] }
 0x41a   :  { %v1284_v54 = vld [vmem:[%s4644_s29 + $0x88] sm:$0xff] }
 0x41b   :  { %3385 = vmatprep.mubr.f32.mxu1 %v988_v56  ;;  %v986_v59 = vadd.f32 %v2791_v44, %v975_v55  ;;  %v991_v61 = vmax.f32 %v987_v58, 0.0  ;;  %v1200_v44 = vld [vmem:[%s4644_s29 + $0x38] sm:$0xff]  ;;  %v1283_v55 = vld [vmem:[%s4644_s29 + $0x80] sm:$0xff]  ;;  %v1527_v58 = vld [vmem:[%s4644_s29 + $0x170] sm:$0xff] }
 0x41c   :  { %3386 = vmatmul.mubr.f32.vlgmr.msra.gmra.mxu1 %v989_v57  ;;  %v1528_v56 = vld [vmem:[%s4644_s29 + $0x178] sm:$0xff] }
 0x41d   :  { %v990_v60 = vmax.f32 %v986_v59, 0.0  ;;  %3414 = vmatpush3.msra.mxu1 %v1298_v63 }
 0x41e   :  { %3415 = vmatprep.subr.mxu1 %v3771_v62 }
 0x41f   :  { %3388 = vmatprep.mubr.f32.mxu1 %v990_v60  ;;  %3416 = vmatpush3.msra.mxu1 %v1297_v0  ;;  %v1526_v60 = vld [vmem:[%s4644_s29 + $0x168] sm:$0xff]  ;;  %v1524_v0 = vld [vmem:[%s4644_s29 + $0x158] sm:$0xff] }
 0x420   :  { %3389 = vmatmul.mubr.f32.gmra.mxu1 %v991_v61  ;;  %3417 = vmatprep.subr.mxu1 %v3771_v62  ;;  %v1525_v61 = vld [vmem:[%s4644_s29 + $0x160] sm:$0xff] }
 0x421   :  { %3445 = vmatprep.mubr.msk.f32.mxu1 %vm3772_vm2, %v3771_v62  ;;  %3418 = vmatpush3.msra.mxu1 %v1296_v1 }
 0x422   :  { %3419 = vmatprep.subr.mxu1 %v3771_v62 }
 0x423   :  { %3420 = vmatpush3.msra.mxu1 %v1295_v2  ;;  %v1523_v2 = vld [vmem:[%s4644_s29 + $0x150] sm:$0xff] }
 0x424   :  { %3421 = vmatprep.subr.mxu1 %v3771_v62 }
 0x425   :  { %3422 = vmatpush3.msra.mxu1 %v1294_v3  ;;  %v1522_v3 = vld [vmem:[%s4644_s29 + $0x148] sm:$0xff] }
 0x426   :  { %3423 = vmatprep.subr.mxu1 %v3771_v62 }
 0x427   :  { %3424 = vmatpush3.msra.mxu1 %v1293_v4  ;;  %v1439_v4 = vld [vmem:[%s4647_s14 + $0x10] sm:$0xff] }
 0x428   :  { %3425 = vmatprep.subr.mxu1 %v3771_v62 }
 0x429   :  { %3426 = vmatpush3.msra.mxu1 %v1292_v5  ;;  %v1521_v5 = vld [vmem:[%s4644_s29 + $0x140] sm:$0xff] }
 0x42a   :  { %3427 = vmatprep.subr.mxu1 %v3771_v62 }
 0x42b   :  { %3428 = vmatpush3.msra.mxu1 %v1291_v6  ;;  %v1600_v6 = vld [vmem:[%s4647_s14 + $0x18] sm:$0xff] }
 0x42c   :  { %3429 = vmatprep.subr.mxu1 %v3771_v62 }
 0x42d   :  { %3430 = vmatpush3.msra.mxu1 %v1290_v7  ;;  %v1689_v7 = vld [vmem:[%s4644_s29 + $0x1f8] sm:$0xff] }
 0x42e   :  { %3431 = vmatprep.subr.mxu1 %v3771_v62 }
 0x42f   :  { %3432 = vmatpush3.msra.mxu1 %v1289_v8  ;;  %v1688_v8 = vld [vmem:[%s4644_s29 + $0x1f0] sm:$0xff] }
 0x430   :  { %3433 = vmatprep.subr.mxu1 %v3771_v62 }
 0x431   :  { %3434 = vmatpush3.msra.mxu1 %v1288_v9  ;;  %v1687_v9 = vld [vmem:[%s4644_s29 + $0x1e8] sm:$0xff] }
 0x432   :  { %3435 = vmatprep.subr.mxu1 %v3771_v62 }
 0x433   :  { %3436 = vmatpush3.msra.mxu1 %v1287_v10  ;;  %v1686_v10 = vld [vmem:[%s4644_s29 + $0x1e0] sm:$0xff] }
 0x434   :  { %3437 = vmatprep.subr.mxu1 %v3771_v62 }
 0x435   :  { %3438 = vmatpush3.msra.mxu1 %v1286_v52  ;;  %v1786_v52 = vld [vmem:[%s4648_s19 + $0x40] sm:$0xff] }
 0x436   :  { %3439 = vmatprep.subr.mxu1 %v3771_v62 }
 0x437   :  { %3440 = vmatpush3.msra.mxu1 %v1285_v53  ;;  %v1785_v53 = vld [vmem:[%s4648_s19 + $0x38] sm:$0xff] }
 0x438   :  { %3441 = vmatprep.subr.mxu1 %v3771_v62 }
 0x439   :  { %3442 = vmatpush3.msra.mxu1 %v1284_v54  ;;  %v1784_v54 = vld [vmem:[%s4648_s19 + $0x30] sm:$0xff] }
 0x43a   :  { %3443 = vmatprep.subr.mxu1 %v3771_v62 }
 0x43b   :  { %3444 = vmatpush3.msra.mxu1 %v1283_v55  ;;  %v1783_v55 = vld [vmem:[%s4648_s19 + $0x28] sm:$0xff] }
 0x43c   :  { %3483 = vmatprep.subr.mxu1 %v3771_v62 }
 0x4dc   :  { %v3387_v11 = vpop.f32.mrf.mxu1 }
 0x4dd   :  { %v1101_v15 = vmul.f32 %v3387_v11, %v2792_v12  ;;  %v1520_v11 = vld [vmem:[%s4644_s29 + $0x138] sm:$0xff] }
 0x4de   :  { %v1074_v13 = vpop.f32.mrf.mxu1 }
 0x4df   :  { %v1100_v19 = vmul.f32 %v2792_v12, %v1074_v13  ;;  %v1112_v24 = vadd.f32 %v2793_v17, %v1101_v15  ;;  %v1519_v13 = vld [vmem:[%s4644_s29 + $0x130] sm:$0xff]  ;;  %v1518_v15 = vld [vmem:[%s4644_s29 + $0x128] sm:$0xff] }
 0x4e0   :  { %v3390_v14 = vpop.f32.mrf.mxu1 }
 0x4e1   :  { %v1103_v16 = vmul.f32 %v3390_v14, %v2792_v12  ;;  %v1111_v30 = vadd.f32 %v2793_v17, %v1100_v19  ;;  %v4158_v32 = vmax.f32 %v1112_v24, 0.0  ;;  %v1684_v14 = vld [vmem:[%s4644_s29 + $0x1d0] sm:$0xff]  ;;  %v1516_v19 = vld [vmem:[%s4644_s29 + $0x118] sm:$0xff] }
 0x4e2   :  { %v1084_v18 = vpop.f32.mrf.mxu1  ;;  %v1680_v24 = vld [vmem:[%s4644_s29 + $0x1b0] sm:$0xff] }
 0x4e3   :  { %v1114_v20 = vadd.f32 %v2793_v17, %v1103_v16  ;;  %v1102_v23 = vmul.f32 %v2792_v12, %v1084_v18  ;;  %v4162_v33 = vmax.f32 %v1111_v30, 0.0  ;;  %v1685_v12 = vld [vmem:[%s4644_s29 + $0x1d8] sm:$0xff]  ;;  %v1683_v16 = vld [vmem:[%s4644_s29 + $0x1c8] sm:$0xff]  ;;  %v1682_v18 = vld [vmem:[%s4644_s29 + $0x1c0] sm:$0xff] }
 0x4e4   :  { %v1513_v30 = vld [vmem:[%s4644_s29 + $0x100] sm:$0xff] }
 0x4e5   :  { %v4152_v25 = vmax.f32 %v1114_v20, 0.0  ;;  %v1113_v27 = vadd.f32 %v2793_v17, %v1102_v23  ;;  %v1517_v17 = vld [vmem:[%s4644_s29 + $0x120] sm:$0xff]  ;;  %v1681_v20 = vld [vmem:[%s4644_s29 + $0x1b8] sm:$0xff]  ;;  %v1515_v23 = vld [vmem:[%s4644_s29 + $0x110] sm:$0xff] }
 0x4e7   :  { %v4154_v31 = vmax.f32 %v1113_v27, 0.0  ;;  %3392 = vmatpush3.msra.mxu0 %v4152_v25  ;;  %v1679_v27 = vld [vmem:[%s4644_s29 + $0x1a8] sm:$0xff] }
 0x4e8   :  { %3393 = vmatprep.subr.mxu0 %v3771_v62 }
 0x4e9   :  { %3394 = vmatpush3.msra.mxu0 %v4154_v31 }
 0x4ea   :  { %3395 = vmatprep.subr.mxu0 %v3771_v62 }
 0x4eb   :  { %3396 = vmatpush3.msra.mxu0 %v4158_v32 }
 0x4ec   :  { %3397 = vmatprep.subr.mxu0 %v3771_v62 }
 0x4ed   :  { %3398 = vmatpush3.msra.mxu0 %v4162_v33 }
 0x4ee   :  { %3400 = vmatmul.mubr.msk.f32.vlgmr.msra.gmra.mxu0 %vm666_vm1, %v1119_v34  ;;  %3402 = vmatprep.subr.mxu0 %v3771_v62  ;;  %v1675_v34 = vld [vmem:[%s4644_s29 + $0x188] sm:$0xff] }
 0x4ef   :  { %3403 = vmatpush3.msra.mxu0 %v4152_v25  ;;  %3410 = vmatprep.mubr.msk.f32.mxu0 %vm3772_vm2, %v3771_v62 }
 0x4f0   :  { %3404 = vmatprep.subr.mxu0 %v3771_v62 }
 0x4f1   :  { %3405 = vmatpush3.msra.mxu0 %v4154_v31 }
 0x4f2   :  { %3406 = vmatprep.subr.mxu0 %v3771_v62 }
 0x4f3   :  { %3407 = vmatpush3.msra.mxu0 %v4158_v32 }
 0x4f4   :  { %3408 = vmatprep.subr.mxu0 %v3771_v62 }
 0x4f5   :  { %3409 = vmatpush3.msra.mxu0 %v4162_v33 }
 0x4f6   :  { %3411 = vmatmul.mubr.msk.f32.vlgmr.msra.gmra.mxu0 %vm666_vm1, %v1209_v35  ;;  %3448 = vmatprep.subr.mxu0 %v3771_v62  ;;  %v1674_v35 = vld [vmem:[%s4644_s29 + $0x180] sm:$0xff] }
 0x4f7   :  { %3449 = vmatpush3.msra.mxu0 %v1208_v37  ;;  %3480 = vmatprep.mubr.msk.f32.mxu0 %vm3772_vm2, %v3771_v62 }
 0x4f8   :  { %3450 = vmatprep.subr.mxu0 %v3771_v62 }
 0x4f9   :  { %3451 = vmatpush3.msra.mxu0 %v1207_v38 }
 0x4fa   :  { %3452 = vmatprep.subr.mxu0 %v3771_v62 }
 0x4fb   :  { %3453 = vmatpush3.msra.mxu0 %v1206_v36 }
 0x4fc   :  { %3454 = vmatprep.subr.mxu0 %v3771_v62 }
 0x4fd   :  { %3455 = vmatpush3.msra.mxu0 %v1205_v39 }
 0x4fe   :  { %3456 = vmatprep.subr.mxu0 %v3771_v62 }
 0x4ff   :  { %3457 = vmatpush3.msra.mxu0 %v1204_v40 }
 0x500   :  { %3458 = vmatprep.subr.mxu0 %v3771_v62 }
 0x501   :  { %3459 = vmatpush3.msra.mxu0 %v1203_v41  ;;  %v1793_v41 = vld [vmem:[%s4648_s19 + $0x78] sm:$0xff] }
 0x502   :  { %3460 = vmatprep.subr.mxu0 %v3771_v62 }
 0x503   :  { %3461 = vmatpush3.msra.mxu0 %v1202_v42 }
 0x504   :  { %3462 = vmatprep.subr.mxu0 %v3771_v62 }
 0x505   :  { %3463 = vmatpush3.msra.mxu0 %v1201_v43  ;;  %v1792_v43 = vld [vmem:[%s4648_s19 + $0x70] sm:$0xff] }
 0x506   :  { %3464 = vmatprep.subr.mxu0 %v3771_v62 }
 0x507   :  { %3465 = vmatpush3.msra.mxu0 %v1200_v44 }
 0x508   :  { %3466 = vmatprep.subr.mxu0 %v3771_v62 }
 0x509   :  { %3467 = vmatpush3.msra.mxu0 %v1199_v45  ;;  %v1791_v45 = vld [vmem:[%s4648_s19 + $0x68] sm:$0xff] }
 0x50a   :  { %3468 = vmatprep.subr.mxu0 %v3771_v62 }
 0x50b   :  { %3469 = vmatpush3.msra.mxu0 %v1198_v46  ;;  %v1790_v46 = vld [vmem:[%s4648_s19 + $0x60] sm:$0xff] }
 0x50c   :  { %3470 = vmatprep.subr.mxu0 %v3771_v62 }
 0x50d   :  { %3471 = vmatpush3.msra.mxu0 %v1197_v47  ;;  %v1789_v47 = vld [vmem:[%s4648_s19 + $0x58] sm:$0xff] }
 0x50e   :  { %3472 = vmatprep.subr.mxu0 %v3771_v62 }
 0x50f   :  { %3473 = vmatpush3.msra.mxu0 %v1196_v48 }
 0x510   :  { %3474 = vmatprep.subr.mxu0 %v3771_v62 }
 0x511   :  { %3475 = vmatpush3.msra.mxu0 %v1195_v49  ;;  %v1788_v49 = vld [vmem:[%s4648_s19 + $0x50] sm:$0xff] }
 0x512   :  { %3476 = vmatprep.subr.mxu0 %v3771_v62 }
 0x513   :  { %3477 = vmatpush3.msra.mxu0 %v1194_v50 }
 0x514   :  { %3478 = vmatprep.subr.mxu0 %v3771_v62 }
 0x515   :  { %3479 = vmatpush3.msra.mxu0 %v1193_v51  ;;  %v1787_v51 = vld [vmem:[%s4648_s19 + $0x48] sm:$0xff] }
 0x516   :  { %3494 = vmatprep.subr.mxu0 %v3771_v62 }
 0x5ae   :  { %v1189_v57 = vpop.f32.mrf.mxu0 }
 0x5af   :  { %3481 = vmatmul.mubr.f32.vlgmr.msra.gmra.mxu0 %v1189_v57  ;;  %v1781_v57 = vld [vmem:[%s4648_s19 + $0x18] sm:$0xff] }
 0x5b0   :  { %v3401_v59 = vpop.f32.mrf.mxu0  ;;  %3495 = vmatpush3.msra.mxu0 %v1528_v56  ;;  %3526 = vmatprep.mubr.msk.f32.mxu0 %vm3772_vm2, %v3771_v62  ;;  %v1782_v56 = vld [vmem:[%s4648_s19 + $0x20] sm:$0xff] }
 0x5b1   :  { %3496 = vmatprep.subr.mxu0 %v3771_v62  ;;  %v1779_v59 = vld [vmem:[%s4648_s19 + $0x8] sm:$0xff] }
 0x5b2   :  { %3497 = vmatpush3.msra.mxu0 %v1527_v58  ;;  %v1780_v58 = vld [vmem:[%s4648_s19 + $0x10] sm:$0xff] }
 0x5b3   :  { %3498 = vmatprep.subr.mxu0 %v3771_v62 }
 0x5b4   :  { %3499 = vmatpush3.msra.mxu0 %v1526_v60  ;;  %v1778_v60 = vld [vmem:[%s4648_s19] sm:$0xff] }
 0x5b5   :  { %3500 = vmatprep.subr.mxu0 %v3771_v62 }
 0x5b6   :  { %v1279_v63 = vpop.f32.mrf.mxu0  ;;  %3501 = vmatpush3.msra.mxu0 %v1525_v61 }
 0x5b7   :  { %3446 = vmatmul.mubr.f32.vlgmr.msra.gmra.mxu1 %v1279_v63  ;;  %3502 = vmatprep.subr.mxu0 %v3771_v62 }
 0x5b8   :  { %3484 = vmatpush3.msra.mxu1 %v4152_v25  ;;  %v3412_v1 = vpop.f32.mrf.mxu0  ;;  %3491 = vmatprep.mubr.msk.f32.mxu1 %vm3772_vm2, %v3771_v62 }
 0x5b9   :  { %3485 = vmatprep.subr.mxu1 %v3771_v62  ;;  %3503 = vmatpush3.msra.mxu0 %v1524_v0 }
 0x5ba   :  { %3486 = vmatpush3.msra.mxu1 %v4154_v31  ;;  %3504 = vmatprep.subr.mxu0 %v3771_v62 }
 0x5bb   :  { %3487 = vmatprep.subr.mxu1 %v3771_v62  ;;  %3505 = vmatpush3.msra.mxu0 %v1523_v2  ;;  %v2798_v2 = vld [vmem:[%s4649_s24] ss:$0 sm:$0xff] }
 0x5bc   :  { %3488 = vmatpush3.msra.mxu1 %v4158_v32  ;;  %3506 = vmatprep.subr.mxu0 %v3771_v62 }
 0x5bd   :  { %3489 = vmatprep.subr.mxu1 %v3771_v62  ;;  %3507 = vmatpush3.msra.mxu0 %v1522_v3 }
 0x5be   :  { %3490 = vmatpush3.msra.mxu1 %v4162_v33  ;;  %3508 = vmatprep.subr.mxu0 %v3771_v62 }
 0x5bf   :  { %3492 = vmatmul.mubr.msk.f32.vlgmr.msra.gmra.mxu1 %vm666_vm1, %v1439_v4  ;;  %3529 = vmatprep.subr.mxu1 %v3771_v62  ;;  %v2799_v4 = vld [vmem:[%s4650_s30] ss:$0 sm:$0xff] }
 0x5c0   :  { %3530 = vmatpush3.msra.mxu1 %v4152_v25  ;;  %3537 = vmatprep.mubr.msk.f32.mxu1 %vm3772_vm2, %v3771_v62  ;;  %v1514_v25 = vld [vmem:[%s4644_s29 + $0x108] sm:$0xff] }
 0x5c1   :  { %3531 = vmatprep.subr.mxu1 %v3771_v62  ;;  %3509 = vmatpush3.msra.mxu0 %v1521_v5 }
 0x5c2   :  { %3532 = vmatpush3.msra.mxu1 %v4154_v31  ;;  %3510 = vmatprep.subr.mxu0 %v3771_v62  ;;  %v1678_v31 = vld [vmem:[%s4644_s29 + $0x1a0] sm:$0xff] }
 0x5c3   :  { %3533 = vmatprep.subr.mxu1 %v3771_v62  ;;  %3511 = vmatpush3.msra.mxu0 %v1520_v11  ;;  %v1987_v11 = vld [vmem:[%s4651_s6 + $0xf0] sm:$0xff] }
 0x5c4   :  { %3534 = vmatpush3.msra.mxu1 %v4158_v32  ;;  %3512 = vmatprep.subr.mxu0 %v3771_v62  ;;  %v1677_v32 = vld [vmem:[%s4644_s29 + $0x198] sm:$0xff] }
 0x5c5   :  { %3535 = vmatprep.subr.mxu1 %v3771_v62  ;;  %3513 = vmatpush3.msra.mxu0 %v1519_v13  ;;  %v1986_v13 = vld [vmem:[%s4651_s6 + $0xe8] sm:$0xff] }
 0x5c6   :  { %3536 = vmatpush3.msra.mxu1 %v4162_v33  ;;  %3514 = vmatprep.subr.mxu0 %v3771_v62  ;;  %v1676_v33 = vld [vmem:[%s4644_s29 + $0x190] sm:$0xff] }
 0x5c7   :  { %3538 = vmatmul.mubr.msk.f32.vlgmr.msra.gmra.mxu1 %vm666_vm1, %v1600_v6  ;;  %3540 = vmatprep.subr.mxu1 %v3771_v62 }
 0x5c8   :  { %3541 = vmatpush3.msra.mxu1 %v1689_v7  ;;  %3572 = vmatprep.mubr.msk.f32.mxu1 %vm3772_vm2, %v3771_v62 }
 0x5c9   :  { %3542 = vmatprep.subr.mxu1 %v3771_v62  ;;  %3515 = vmatpush3.msra.mxu0 %v1518_v15  ;;  %v1985_v15 = vld [vmem:[%s4651_s6 + $0xe0] sm:$0xff] }
 0x5ca   :  { %3543 = vmatpush3.msra.mxu1 %v1688_v8  ;;  %3516 = vmatprep.subr.mxu0 %v3771_v62 }
 0x5cb   :  { %3544 = vmatprep.subr.mxu1 %v3771_v62  ;;  %3517 = vmatpush3.msra.mxu0 %v1517_v17  ;;  %v1984_v17 = vld [vmem:[%s4651_s6 + $0xd8] sm:$0xff] }
 0x5cc   :  { %3545 = vmatpush3.msra.mxu1 %v1687_v9  ;;  %3518 = vmatprep.subr.mxu0 %v3771_v62  ;;  %v1988_v9 = vld [vmem:[%s4651_s6 + $0xf8] sm:$0xff] }
 0x5cd   :  { %3546 = vmatprep.subr.mxu1 %v3771_v62  ;;  %3519 = vmatpush3.msra.mxu0 %v1516_v19  ;;  %v1983_v19 = vld [vmem:[%s4651_s6 + $0xd0] sm:$0xff] }
 0x5ce   :  { %3547 = vmatpush3.msra.mxu1 %v1686_v10  ;;  %3520 = vmatprep.subr.mxu0 %v3771_v62  ;;  %v1972_v10 = vld [vmem:[%s4651_s6 + $0x78] sm:$0xff] }
 0x5cf   :  { %3548 = vmatprep.subr.mxu1 %v3771_v62  ;;  %3521 = vmatpush3.msra.mxu0 %v1515_v23  ;;  %v1982_v23 = vld [vmem:[%s4651_s6 + $0xc8] sm:$0xff] }
 0x5d0   :  { %3549 = vmatpush3.msra.mxu1 %v1685_v12  ;;  %3522 = vmatprep.subr.mxu0 %v3771_v62  ;;  %v1971_v12 = vld [vmem:[%s4651_s6 + $0x70] sm:$0xff] }
 0x5d1   :  { %3550 = vmatprep.subr.mxu1 %v3771_v62  ;;  %3523 = vmatpush3.msra.mxu0 %v1514_v25  ;;  %v1981_v25 = vld [vmem:[%s4651_s6 + $0xc0] sm:$0xff] }
 0x5d2   :  { %3551 = vmatpush3.msra.mxu1 %v1684_v14  ;;  %3524 = vmatprep.subr.mxu0 %v3771_v62  ;;  %v1970_v14 = vld [vmem:[%s4651_s6 + $0x68] sm:$0xff] }
 0x5d3   :  { %3552 = vmatprep.subr.mxu1 %v3771_v62  ;;  %3525 = vmatpush3.msra.mxu0 %v1513_v30  ;;  %v1980_v30 = vld [vmem:[%s4651_s6 + $0xb8] sm:$0xff] }
 0x5d4   :  { %3553 = vmatpush3.msra.mxu1 %v1683_v16  ;;  %3575 = vmatprep.subr.mxu0 %v3771_v62  ;;  %v1969_v16 = vld [vmem:[%s4651_s6 + $0x60] sm:$0xff] }
 0x5d5   :  { %3554 = vmatprep.subr.mxu1 %v3771_v62 }
 0x5d6   :  { %3555 = vmatpush3.msra.mxu1 %v1682_v18  ;;  %v1968_v18 = vld [vmem:[%s4651_s6 + $0x58] sm:$0xff] }
 0x5d7   :  { %3556 = vmatprep.subr.mxu1 %v3771_v62 }
 0x5d8   :  { %3557 = vmatpush3.msra.mxu1 %v1681_v20  ;;  %v1967_v20 = vld [vmem:[%s4651_s6 + $0x50] sm:$0xff] }
 0x5d9   :  { %3558 = vmatprep.subr.mxu1 %v3771_v62 }
 0x5da   :  { %3559 = vmatpush3.msra.mxu1 %v1680_v24  ;;  %v1966_v24 = vld [vmem:[%s4651_s6 + $0x48] sm:$0xff] }
 0x5db   :  { %3560 = vmatprep.subr.mxu1 %v3771_v62 }
 0x5dc   :  { %3561 = vmatpush3.msra.mxu1 %v1679_v27  ;;  %v1965_v27 = vld [vmem:[%s4651_s6 + $0x40] sm:$0xff] }
 0x5dd   :  { %3562 = vmatprep.subr.mxu1 %v3771_v62 }
 0x5de   :  { %3563 = vmatpush3.msra.mxu1 %v1678_v31  ;;  %v1964_v31 = vld [vmem:[%s4651_s6 + $0x38] sm:$0xff] }
 0x5df   :  { %3564 = vmatprep.subr.mxu1 %v3771_v62 }
 0x5e0   :  { %3565 = vmatpush3.msra.mxu1 %v1677_v32  ;;  %v1979_v32 = vld [vmem:[%s4651_s6 + $0xb0] sm:$0xff] }
 0x5e1   :  { %3566 = vmatprep.subr.mxu1 %v3771_v62 }
 0x5e2   :  { %3567 = vmatpush3.msra.mxu1 %v1676_v33  ;;  %v1963_v33 = vld [vmem:[%s4651_s6 + $0x30] sm:$0xff] }
 0x5e3   :  { %3568 = vmatprep.subr.mxu1 %v3771_v62 }
 0x5e4   :  { %3569 = vmatpush3.msra.mxu1 %v1675_v34  ;;  %v1978_v34 = vld [vmem:[%s4651_s6 + $0xa8] sm:$0xff] }
 0x5e5   :  { %3570 = vmatprep.subr.mxu1 %v3771_v62 }
 0x5e6   :  { %3571 = vmatpush3.msra.mxu1 %v1674_v35  ;;  %v1962_v35 = vld [vmem:[%s4651_s6 + $0x28] sm:$0xff] }
 0x5e7   :  { %3610 = vmatprep.subr.mxu1 %v3771_v62 }
 0x66f   :  { %v1435_v37 = vpop.f32.mrf.mxu0 }
 0x671   :  { %v3482_v38 = vpop.f32.mrf.mxu0 }
 0x672   :  { %v1961_v38 = vld [vmem:[%s4651_s6 + $0x20] sm:$0xff] }
 0x677   :  { %v1365_v36 = vpop.f32.mrf.mxu1 }
 0x678   :  { %v1436_v39 = vadd.f32 %v1435_v37, %v1365_v36  ;;  %v1977_v37 = vld [vmem:[%s4651_s6 + $0xa0] sm:$0xff]  ;;  %v1976_v36 = vld [vmem:[%s4651_s6 + $0x98] sm:$0xff] }
 0x679   :  { %v3447_v40 = vpop.f32.mrf.mxu1 }
 0x67a   :  { %v1975_v40 = vld [vmem:[%s4651_s6 + $0x90] sm:$0xff] }
 0x67f   :  { %v1509_v42 = vpop.f32.mrf.mxu1 }
 0x680   :  { %3527 = vmatmul.mubr.f32.vlgmr.msra.gmra.mxu0 %v1509_v42  ;;  %v1974_v42 = vld [vmem:[%s4651_s6 + $0x88] sm:$0xff] }
 0x681   :  { %v3493_v44 = vpop.f32.mrf.mxu1  ;;  %3576 = vmatpush3.msra.mxu0 %v1793_v41  ;;  %3607 = vmatprep.mubr.msk.f32.mxu0 %vm3772_vm2, %v3771_v62  ;;  %v1959_v41 = vld [vmem:[%s4651_s6 + $0x10] sm:$0xff] }
 0x682   :  { %3577 = vmatprep.subr.mxu0 %v3771_v62  ;;  %v1973_v44 = vld [vmem:[%s4651_s6 + $0x80] sm:$0xff] }
 0x683   :  { %3578 = vmatpush3.msra.mxu0 %v1792_v43  ;;  %v1958_v43 = vld [vmem:[%s4651_s6 + $0x8] sm:$0xff] }
 0x684   :  { %3579 = vmatprep.subr.mxu0 %v3771_v62 }
 0x685   :  { %3580 = vmatpush3.msra.mxu0 %v1791_v45  ;;  %v1957_v45 = vld [vmem:[%s4651_s6] sm:$0xff] }
 0x686   :  { %3581 = vmatprep.subr.mxu0 %v3771_v62 }
 0x687   :  { %v1670_v48 = vpop.f32.mrf.mxu1  ;;  %3582 = vmatpush3.msra.mxu0 %v1790_v46  ;;  %v3773_v46 = vmov 1983009808  }
 0x688   :  { %3573 = vmatmul.mubr.f32.vlgmr.msra.gmra.mxu1 %v1670_v48  ;;  %3583 = vmatprep.subr.mxu0 %v3771_v62 }
 0x689   :  { %v3539_v50 = vpop.f32.mrf.mxu1  ;;  %3584 = vmatpush3.msra.mxu0 %v1789_v47  ;;  %3612 = vmatprep.mubr.msk.f32.mxu1 %vm3772_vm2, %v3771_v62  ;;  %v2110_v47 = vunpack.c.l.s4 %v3773_v46  ;;  %v2009_v46 = vld [vmem:[%s4651_s6 + $0x1a0] sm:$0xff] }
 0x68a   :  { %3585 = vmatprep.subr.mxu0 %v3771_v62 }
 0x68b   :  { %3586 = vmatpush3.msra.mxu0 %v1788_v49  ;;  %v2111_v48 = vunpack.c.0.s8 %v2110_v47  ;;  %v4386_v49 = vld [vmem:[%s4652_s12] sm:$0xff] }
 0x68c   :  { %3587 = vmatprep.subr.mxu0 %v3771_v62  ;;  %v1993_v47 = vld [vmem:[%s4651_s6 + $0x120] sm:$0xff] }
 0x68d   :  { %3588 = vmatpush3.msra.mxu0 %v1787_v51  ;;  %v4389_v50 = vsub.s32 %v2111_v48, %v3981_v21  ;;  %v2008_v48 = vld [vmem:[%s4651_s6 + $0x198] sm:$0xff] }
 0x68e   :  { %3589 = vmatprep.subr.mxu0 %v3771_v62 }
 0x68f   :  { %3590 = vmatpush3.msra.mxu0 %v1786_v52  ;;  %v2115_v51 = vrot.slane %v4386_v49, %v4389_v50 }
 0x690   :  { %3591 = vmatprep.subr.mxu0 %v3771_v62 }
 0x691   :  { %3592 = vmatpush3.msra.mxu0 %v1785_v53  ;;  %v2123_v52 = vcombine.high %v2115_v51, %v2115_v51  ;;  %v2800_v53 = vld [vmem:[%s4653_s20] ss:$0 sm:$0xff] }
 0x692   :  { %3593 = vmatprep.subr.mxu0 %v3771_v62 }
 0x693   :  { %3594 = vmatpush3.msra.mxu0 %v1784_v54 }
 0x694   :  { %3595 = vmatprep.subr.mxu0 %v3771_v62 }
 0x695   :  { %3596 = vmatpush3.msra.mxu0 %v1783_v55  ;;  %v2801_v55 = vld [vmem:[%s4654_s4] ss:$0 sm:$0xff] }
 0x696   :  { %3597 = vmatprep.subr.mxu0 %v3771_v62 }
 0x697   :  { %3598 = vmatpush3.msra.mxu0 %v1782_v56 }
 0x698   :  { %3599 = vmatprep.subr.mxu0 %v3771_v62 }
 0x699   :  { %3600 = vmatpush3.msra.mxu0 %v1781_v57 }
 0x69a   :  { %3601 = vmatprep.subr.mxu0 %v3771_v62 }
 0x69b   :  { %3602 = vmatpush3.msra.mxu0 %v1780_v58 }
 0x69c   :  { %3603 = vmatprep.subr.mxu0 %v3771_v62 }
 0x69d   :  { %3604 = vmatpush3.msra.mxu0 %v1779_v59 }
 0x69e   :  { %3605 = vmatprep.subr.mxu0 %v3771_v62 }
 0x69f   :  { %3606 = vmatpush3.msra.mxu0 %v1778_v60  ;;  %v1881_v60 = vld [vmem:[%s4655_s28] sm:$0x3] }
 0x6a0   :  { %3041 = vmatprep.subr.mxu0 %v1988_v9  ;;  %v2025_v9 = vld [vmem:[%s4656_s1 + $0x20] sm:$0xff] }
 0x740   :  { %v1595_v61 = vpop.f32.mrf.mxu0 }
 0x741   :  { %v1599_v0 = vadd.f32 %v1595_v61, %v1436_v39  ;;  %v1960_v39 = vld [vmem:[%s4651_s6 + $0x18] sm:$0xff] }
 0x742   :  { %v3528_v63 = vpop.f32.mrf.mxu0  ;;  %v2036_v61 = vld [vmem:[%s4656_s1 + $0x78] sm:$0xff] }
 0x743   :  { %v2035_v63 = vld [vmem:[%s4656_s1 + $0x70] sm:$0xff] }
 0x748   :  { %v1756_v1 = vpop.f32.mrf.mxu1 }
 0x749   :  { %v1760_v3 = vadd.f32 %v1756_v1, %v1599_v0  ;;  %v2034_v0 = vld [vmem:[%s4656_s1 + $0x68] sm:$0xff]  ;;  %v2033_v1 = vld [vmem:[%s4656_s1 + $0x60] sm:$0xff] }
 0x74a   :  { %v3574_v5 = vpop.f32.mrf.mxu1 }
 0x74b   :  { %v1768_v6 = vmul.f32 %v2798_v2, %v1760_v3  ;;  %v2032_v2 = vld [vmem:[%s4656_s1 + $0x58] sm:$0xff]  ;;  %v2031_v3 = vld [vmem:[%s4656_s1 + $0x50] sm:$0xff]  ;;  %v2029_v5 = vld [vmem:[%s4656_s1 + $0x40] sm:$0xff] }
 0x74d   :  { %v1776_v7 = vadd.f32 %v2799_v4, %v1768_v6  ;;  %v2030_v4 = vld [vmem:[%s4656_s1 + $0x48] sm:$0xff]  ;;  %v2028_v6 = vld [vmem:[%s4656_s1 + $0x38] sm:$0xff] }
 0x74f   :  { %v1777_v8 = vmax.f32 %v1776_v7, 0.0  ;;  %v2027_v7 = vld [vmem:[%s4656_s1 + $0x30] sm:$0xff] }
 0x751   :  { %3608 = vmatmul.mubr.f32.vlgmr.msra.gmra.mxu0 %v1777_v8  ;;  %v2026_v8 = vld [vmem:[%s4656_s1 + $0x28] sm:$0xff] }
 0x752   :  { %3042 = vmatpush3.msra.mxu0 %v1972_v10  ;;  %2193 = vmatprep.mubr.f32.mxu0 %v2123_v52  ;;  %v2024_v10 = vld [vmem:[%s4656_s1 + $0x18] sm:$0xff]  ;;  %v2006_v52 = vld [vmem:[%s4651_s6 + $0x188] sm:$0xff] }
 0x753   :  { %3043 = vmatprep.subr.mxu0 %v1987_v11  ;;  %v2023_v11 = vld [vmem:[%s4656_s1 + $0x10] sm:$0xff] }
 0x754   :  { %3044 = vmatpush3.msra.mxu0 %v1971_v12  ;;  %v2022_v12 = vld [vmem:[%s4656_s1 + $0x8] sm:$0xff] }
 0x755   :  { %3045 = vmatprep.subr.mxu0 %v1986_v13  ;;  %v2021_v13 = vld [vmem:[%s4656_s1] sm:$0xff] }
 0x756   :  { %3046 = vmatpush3.msra.mxu0 %v1970_v14  ;;  %v2020_v14 = vld [vmem:[%s4651_s6 + $0x1f8] sm:$0xff] }
 0x757   :  { %3047 = vmatprep.subr.mxu0 %v1985_v15  ;;  %v2108_v15 = vcombine.high %v4386_v49, %v4386_v49  ;;  %v1992_v49 = vld [vmem:[%s4651_s6 + $0x118] sm:$0xff] }
 0x758   :  { %3048 = vmatpush3.msra.mxu0 %v1969_v16 }
 0x759   :  { %3049 = vmatprep.subr.mxu0 %v1984_v17  ;;  %v4435_v16 = vrot.slane %v2108_v15, %v4389_v50  ;;  %v2007_v50 = vld [vmem:[%s4651_s6 + $0x190] sm:$0xff] }
 0x75a   :  { %3050 = vmatpush3.msra.mxu0 %v1968_v18  ;;  %v2004_v18 = vld [vmem:[%s4651_s6 + $0x178] sm:$0xff]  ;;  %v2320_v15 = vld [vmem:[%s4657_s2 + $0x150] sm:$0xff] }
 0x75b   :  { %3051 = vmatprep.subr.mxu0 %v1983_v19  ;;  %v2124_v17 = vcombine.high %v4435_v16, %v4435_v16 }
 0x75c   :  { %3052 = vmatpush3.msra.mxu0 %v1967_v20  ;;  %v2019_v20 = vld [vmem:[%s4651_s6 + $0x1f0] sm:$0xff] }
 0x75d   :  { %3053 = vmatprep.subr.mxu0 %v1982_v23  ;;  %v2003_v23 = vld [vmem:[%s4651_s6 + $0x170] sm:$0xff] }
 0x75e   :  { %3054 = vmatpush3.msra.mxu0 %v1966_v24 }
 0x75f   :  { %3055 = vmatprep.subr.mxu0 %v1981_v25  ;;  %v2018_v25 = vld [vmem:[%s4651_s6 + $0x1e8] sm:$0xff] }
 0x760   :  { %3056 = vmatpush3.msra.mxu0 %v1965_v27  ;;  %v2002_v27 = vld [vmem:[%s4651_s6 + $0x168] sm:$0xff] }
 0x761   :  { %3057 = vmatprep.subr.mxu0 %v1980_v30  ;;  %v2017_v30 = vld [vmem:[%s4651_s6 + $0x1e0] sm:$0xff] }
 0x762   :  { %3058 = vmatpush3.msra.mxu0 %v1964_v31  ;;  %v2001_v31 = vld [vmem:[%s4651_s6 + $0x160] sm:$0xff] }
 0x763   :  { %3059 = vmatprep.subr.mxu0 %v1979_v32  ;;  %v2016_v32 = vld [vmem:[%s4651_s6 + $0x1d8] sm:$0xff] }
 0x764   :  { %3060 = vmatpush3.msra.mxu0 %v1963_v33  ;;  %v2000_v33 = vld [vmem:[%s4651_s6 + $0x158] sm:$0xff] }
 0x765   :  { %3061 = vmatprep.subr.mxu0 %v1978_v34  ;;  %v2015_v34 = vld [vmem:[%s4651_s6 + $0x1d0] sm:$0xff] }
 0x766   :  { %3062 = vmatpush3.msra.mxu0 %v1962_v35  ;;  %v1999_v35 = vld [vmem:[%s4651_s6 + $0x150] sm:$0xff] }
 0x767   :  { %3063 = vmatprep.subr.mxu0 %v1977_v37  ;;  %v2014_v37 = vld [vmem:[%s4651_s6 + $0x1c8] sm:$0xff] }
 0x768   :  { %3064 = vmatpush3.msra.mxu0 %v1961_v38  ;;  %v1998_v38 = vld [vmem:[%s4651_s6 + $0x148] sm:$0xff] }
 0x769   :  { %3065 = vmatprep.subr.mxu0 %v1976_v36  ;;  %v2013_v36 = vld [vmem:[%s4651_s6 + $0x1c0] sm:$0xff] }
 0x76a   :  { %3066 = vmatpush3.msra.mxu0 %v1960_v39  ;;  %v1997_v39 = vld [vmem:[%s4651_s6 + $0x140] sm:$0xff] }
 0x76b   :  { %3067 = vmatprep.subr.mxu0 %v1975_v40  ;;  %v2012_v40 = vld [vmem:[%s4651_s6 + $0x1b8] sm:$0xff] }
 0x76c   :  { %3068 = vmatpush3.msra.mxu0 %v1959_v41  ;;  %v1996_v41 = vld [vmem:[%s4651_s6 + $0x138] sm:$0xff] }
 0x76d   :  { %3069 = vmatprep.subr.mxu0 %v1974_v42  ;;  %v2011_v42 = vld [vmem:[%s4651_s6 + $0x1b0] sm:$0xff] }
 0x76e   :  { %3070 = vmatpush3.msra.mxu0 %v1958_v43  ;;  %v1995_v43 = vld [vmem:[%s4651_s6 + $0x130] sm:$0xff] }
 0x76f   :  { %3071 = vmatprep.subr.mxu0 %v1973_v44  ;;  %v2010_v44 = vld [vmem:[%s4651_s6 + $0x1a8] sm:$0xff] }
 0x770   :  { %3072 = vmatpush3.msra.mxu0 %v1957_v45  ;;  %v1994_v45 = vld [vmem:[%s4651_s6 + $0x128] sm:$0xff] }
 0x771   :  { %2194 = vmatmul.mubr.f32.vlgmr.msra.gmra.mxu0 %v2115_v51  ;;  %v1991_v51 = vld [vmem:[%s4651_s6 + $0x110] sm:$0xff] }
 0x772   :  { %2428 = vmatprep.mubr.f32.mxu0 %v3771_v62 }
 0x811   :  { %v1860_v54 = vpop.f32.mrf.mxu0 }
 0x812   :  { %v1871_v56 = vmul.f32 %v2800_v53, %v1860_v54  ;;  %v1990_v53 = vld [vmem:[%s4651_s6 + $0x108] sm:$0xff]  ;;  %v2005_v54 = vld [vmem:[%s4651_s6 + $0x180] sm:$0xff] }
 0x813   :  { %v3609_v57 = vpop.f32.mrf.mxu0 }
 0x814   :  { %v1879_v58 = vadd.f32 %v2801_v55, %v1871_v56  ;;  %v1989_v55 = vld [vmem:[%s4651_s6 + $0x100] sm:$0xff]  ;;  %v2339_v56 = vld [vmem:[%s4657_s2 + $0x1e8] sm:$0xff]  ;;  %v2341_v57 = vld [vmem:[%s4657_s2 + $0x1f8] sm:$0xff] }
 0x815   :  { %2364 = vmatprep.subr.mxu0 %v2339_v56  ;;  %v2284_v56 = vld [vmem:[%s4657_s2 + $0x30] sm:$0xff] }
 0x816   :  { %v1880_v59 = vmax.f32 %v1879_v58, 0.0  ;;  %v2338_v58 = vld [vmem:[%s4657_s2 + $0x1e0] sm:$0xff] }
 0x817   :  { %2365 = vmatpush1.msra.mxu0 %v2338_v58  ;;  %v2281_v58 = vld [vmem:[%s4657_s2 + $0x18] sm:$0xff] }
 0x818   :  { %3611 = vmatpush3.msra.mxu1 %v1880_v59  ;;  %v2340_v59 = vld [vmem:[%s4657_s2 + $0x1f0] sm:$0xff] }
 0x819   :  { %3613 = vmatmul.mubr.msk.f32.vlgmr.msra.gmra.mxu1 %vm1882_vm3, %v1881_v60  ;;  %3615 = vmatprep.subr.mxu1 %v3771_v62  ;;  %v2335_v60 = vld [vmem:[%s4657_s2 + $0x1c8] sm:$0xff] }
 0x81a   :  { %3616 = vmatpush3.msra.mxu1 %v2036_v61  ;;  %3647 = vmatprep.mubr.msk.f32.mxu1 %vm3772_vm2, %v3771_v62  ;;  %v2337_v61 = vld [vmem:[%s4657_s2 + $0x1d8] sm:$0xff] }
 0x81b   :  { %3617 = vmatprep.subr.mxu1 %v3771_v62  ;;  %2366 = vmatprep.subr.mxu0 %v2335_v60  ;;  %v2280_v60 = vld [vmem:[%s4657_s2 + $0x10] sm:$0xff] }
 0x81c   :  { %3618 = vmatpush3.msra.mxu1 %v2035_v63  ;;  %v2334_v63 = vld [vmem:[%s4657_s2 + $0x1c0] sm:$0xff] }
 0x81d   :  { %3619 = vmatprep.subr.mxu1 %v3771_v62  ;;  %2367 = vmatpush1.msra.mxu0 %v2334_v63  ;;  %v2573_v63 = vld [vmem:[%s3953_s25 + $0x1f8] sm:$0xff] }
 0x81e   :  { %3620 = vmatpush3.msra.mxu1 %v2034_v0  ;;  %v2336_v0 = vld [vmem:[%s4657_s2 + $0x1d0] sm:$0xff] }
 0x81f   :  { %3621 = vmatprep.subr.mxu1 %v3771_v62 }
 0x820   :  { %3622 = vmatpush3.msra.mxu1 %v2033_v1  ;;  %v2333_v1 = vld [vmem:[%s4657_s2 + $0x1b8] sm:$0xff] }
 0x821   :  { %3623 = vmatprep.subr.mxu1 %v3771_v62 }
 0x822   :  { %3624 = vmatpush3.msra.mxu1 %v2032_v2  ;;  %v2330_v2 = vld [vmem:[%s4657_s2 + $0x1a0] sm:$0xff] }
 0x823   :  { %3625 = vmatprep.subr.mxu1 %v3771_v62 }
 0x824   :  { %3626 = vmatpush3.msra.mxu1 %v2031_v3  ;;  %v2332_v3 = vld [vmem:[%s4657_s2 + $0x1b0] sm:$0xff] }
 0x825   :  { %3627 = vmatprep.subr.mxu1 %v3771_v62 }
 0x826   :  { %3628 = vmatpush3.msra.mxu1 %v2030_v4  ;;  %v2327_v4 = vld [vmem:[%s4657_s2 + $0x188] sm:$0xff] }
 0x827   :  { %3629 = vmatprep.subr.mxu1 %v3771_v62 }
 0x828   :  { %3630 = vmatpush3.msra.mxu1 %v2029_v5  ;;  %v2329_v5 = vld [vmem:[%s4657_s2 + $0x198] sm:$0xff] }
 0x829   :  { %3631 = vmatprep.subr.mxu1 %v3771_v62 }
 0x82a   :  { %3632 = vmatpush3.msra.mxu1 %v2028_v6  ;;  %v2326_v6 = vld [vmem:[%s4657_s2 + $0x180] sm:$0xff] }
 0x82b   :  { %3633 = vmatprep.subr.mxu1 %v3771_v62 }
 0x82c   :  { %3634 = vmatpush3.msra.mxu1 %v2027_v7  ;;  %v2328_v7 = vld [vmem:[%s4657_s2 + $0x190] sm:$0xff] }
 0x82d   :  { %3635 = vmatprep.subr.mxu1 %v3771_v62 }
 0x82e   :  { %3636 = vmatpush3.msra.mxu1 %v2026_v8  ;;  %v2323_v8 = vld [vmem:[%s4657_s2 + $0x168] sm:$0xff] }
 0x82f   :  { %3637 = vmatprep.subr.mxu1 %v3771_v62 }
 0x830   :  { %3638 = vmatpush3.msra.mxu1 %v2025_v9  ;;  %v2325_v9 = vld [vmem:[%s4657_s2 + $0x178] sm:$0xff] }
 0x831   :  { %3639 = vmatprep.subr.mxu1 %v3771_v62 }
 0x832   :  { %3640 = vmatpush3.msra.mxu1 %v2024_v10  ;;  %v2322_v10 = vld [vmem:[%s4657_s2 + $0x160] sm:$0xff] }
 0x833   :  { %3641 = vmatprep.subr.mxu1 %v3771_v62 }
 0x834   :  { %3642 = vmatpush3.msra.mxu1 %v2023_v11  ;;  %v2324_v11 = vld [vmem:[%s4657_s2 + $0x170] sm:$0xff] }
 0x835   :  { %3643 = vmatprep.subr.mxu1 %v3771_v62 }
 0x836   :  { %3644 = vmatpush3.msra.mxu1 %v2022_v12  ;;  %v2319_v12 = vld [vmem:[%s4657_s2 + $0x148] sm:$0xff] }
 0x837   :  { %3645 = vmatprep.subr.mxu1 %v3771_v62 }
 0x838   :  { %3646 = vmatpush3.msra.mxu1 %v2021_v13  ;;  %v2321_v13 = vld [vmem:[%s4657_s2 + $0x158] sm:$0xff] }
 0x839   :  { %3076 = vmatprep.subr.mxu1 %v2020_v14  ;;  %v2318_v14 = vld [vmem:[%s4657_s2 + $0x140] sm:$0xff] }
 0x8d9   :  { %v1952_v19 = vpop.f32.mrf.mxu1 }
 0x8da   :  { %3648 = vmatmul.mubr.f32.vlgmr.msra.gmra.mxu1 %v1952_v19  ;;  %v2316_v19 = vld [vmem:[%s4657_s2 + $0x130] sm:$0xff] }
 0x8db   :  { %3077 = vmatpush3.msra.mxu1 %v2004_v18  ;;  %v3614_v24 = vpop.f32.mrf.mxu1  ;;  %2263 = vmatprep.mubr.f32.mxu1 %v2124_v17  ;;  %v2317_v17 = vld [vmem:[%s4657_s2 + $0x138] sm:$0xff]  ;;  %v2314_v18 = vld [vmem:[%s4657_s2 + $0x120] sm:$0xff] }
 0x8dc   :  { %3078 = vmatprep.subr.mxu1 %v2019_v20  ;;  %v2311_v20 = vld [vmem:[%s4657_s2 + $0x108] sm:$0xff]  ;;  %v2310_v24 = vld [vmem:[%s4657_s2 + $0x100] sm:$0xff] }
 0x8dd   :  { %3079 = vmatpush3.msra.mxu1 %v2003_v23  ;;  %v2313_v23 = vld [vmem:[%s4657_s2 + $0x118] sm:$0xff] }
 0x8de   :  { %3080 = vmatprep.subr.mxu1 %v2018_v25  ;;  %v2312_v25 = vld [vmem:[%s4657_s2 + $0x110] sm:$0xff] }
 0x8df   :  { %3081 = vmatpush3.msra.mxu1 %v2002_v27  ;;  %v2307_v27 = vld [vmem:[%s4657_s2 + $0xe8] sm:$0xff] }
 0x8e0   :  { %3082 = vmatprep.subr.mxu1 %v2017_v30  ;;  %v2309_v30 = vld [vmem:[%s4657_s2 + $0xf8] sm:$0xff] }
 0x8e1   :  { %3083 = vmatpush3.msra.mxu1 %v2001_v31  ;;  %v2306_v31 = vld [vmem:[%s4657_s2 + $0xe0] sm:$0xff] }
 0x8e2   :  { %3084 = vmatprep.subr.mxu1 %v2016_v32  ;;  %v2308_v32 = vld [vmem:[%s4657_s2 + $0xf0] sm:$0xff] }
 0x8e3   :  { %3085 = vmatpush3.msra.mxu1 %v2000_v33  ;;  %v2303_v33 = vld [vmem:[%s4657_s2 + $0xc8] sm:$0xff] }
 0x8e4   :  { %3086 = vmatprep.subr.mxu1 %v2015_v34  ;;  %v2305_v34 = vld [vmem:[%s4657_s2 + $0xd8] sm:$0xff] }
 0x8e5   :  { %3087 = vmatpush3.msra.mxu1 %v1999_v35  ;;  %v2302_v35 = vld [vmem:[%s4657_s2 + $0xc0] sm:$0xff] }
 0x8e6   :  { %3088 = vmatprep.subr.mxu1 %v2014_v37  ;;  %v2304_v37 = vld [vmem:[%s4657_s2 + $0xd0] sm:$0xff] }
 0x8e7   :  { %3089 = vmatpush3.msra.mxu1 %v1998_v38  ;;  %v2299_v38 = vld [vmem:[%s4657_s2 + $0xa8] sm:$0xff] }
 0x8e8   :  { %3090 = vmatprep.subr.mxu1 %v2013_v36  ;;  %v2301_v36 = vld [vmem:[%s4657_s2 + $0xb8] sm:$0xff] }
 0x8e9   :  { %3091 = vmatpush3.msra.mxu1 %v1997_v39  ;;  %v2298_v39 = vld [vmem:[%s4657_s2 + $0xa0] sm:$0xff] }
 0x8ea   :  { %3092 = vmatprep.subr.mxu1 %v2012_v40  ;;  %v2300_v40 = vld [vmem:[%s4657_s2 + $0xb0] sm:$0xff] }
 0x8eb   :  { %3093 = vmatpush3.msra.mxu1 %v1996_v41  ;;  %v2295_v41 = vld [vmem:[%s4657_s2 + $0x88] sm:$0xff] }
 0x8ec   :  { %3094 = vmatprep.subr.mxu1 %v2011_v42  ;;  %v2297_v42 = vld [vmem:[%s4657_s2 + $0x98] sm:$0xff] }
 0x8ed   :  { %3095 = vmatpush3.msra.mxu1 %v1995_v43  ;;  %v2294_v43 = vld [vmem:[%s4657_s2 + $0x80] sm:$0xff] }
 0x8ee   :  { %3096 = vmatprep.subr.mxu1 %v2010_v44  ;;  %v2296_v44 = vld [vmem:[%s4657_s2 + $0x90] sm:$0xff] }
 0x8ef   :  { %3097 = vmatpush3.msra.mxu1 %v1994_v45  ;;  %v2291_v45 = vld [vmem:[%s4657_s2 + $0x68] sm:$0xff] }
 0x8f0   :  { %3098 = vmatprep.subr.mxu1 %v2009_v46  ;;  %v2293_v46 = vld [vmem:[%s4657_s2 + $0x78] sm:$0xff] }
 0x8f1   :  { %3099 = vmatpush3.msra.mxu1 %v1993_v47  ;;  %v2290_v47 = vld [vmem:[%s4657_s2 + $0x60] sm:$0xff] }
 0x8f2   :  { %3100 = vmatprep.subr.mxu1 %v2008_v48  ;;  %v2292_v48 = vld [vmem:[%s4657_s2 + $0x70] sm:$0xff] }
 0x8f3   :  { %3101 = vmatpush3.msra.mxu1 %v1992_v49  ;;  %v2287_v49 = vld [vmem:[%s4657_s2 + $0x48] sm:$0xff] }
 0x8f4   :  { %3102 = vmatprep.subr.mxu1 %v2007_v50  ;;  %v2289_v50 = vld [vmem:[%s4657_s2 + $0x58] sm:$0xff] }
 0x8f5   :  { %3103 = vmatpush3.msra.mxu1 %v1991_v51  ;;  %v2286_v51 = vld [vmem:[%s4657_s2 + $0x40] sm:$0xff] }
 0x8f6   :  { %3104 = vmatprep.subr.mxu1 %v2006_v52  ;;  %v2288_v52 = vld [vmem:[%s4657_s2 + $0x50] sm:$0xff] }
 0x8f7   :  { %3105 = vmatpush3.msra.mxu1 %v1990_v53  ;;  %v2283_v53 = vld [vmem:[%s4657_s2 + $0x28] sm:$0xff] }
 0x8f8   :  { %3106 = vmatprep.subr.mxu1 %v2005_v54  ;;  %v2285_v54 = vld [vmem:[%s4657_s2 + $0x38] sm:$0xff] }
 0x8f9   :  { %3107 = vmatpush3.msra.mxu1 %v1989_v55  ;;  %v2282_v55 = vld [vmem:[%s4657_s2 + $0x20] sm:$0xff] }
 0x8fa   :  { %2264 = vmatmul.mubr.f32.vlgmr.msra.gmra.mxu1 %v4435_v16  ;;  %2435 = vmatprep.subr.mxu1 %v2341_v57  ;;  %v2315_v16 = vld [vmem:[%s4657_s2 + $0x128] sm:$0xff] }
 0x8fb   :  { %2499 = vmatprep.mubr.f32.mxu1 %v3771_v62  ;;  %2436 = vmatpush1.msra.mxu1 %v2340_v59  ;;  %v2331_v62 = vld [vmem:[%s4657_s2 + $0x1a8] sm:$0xff]  ;;  %v2278_v59 = vld [vmem:[%s4657_s2] sm:$0xff] }
 0x8fc   :  { %2437 = vmatprep.subr.mxu1 %v2337_v61  ;;  %2368 = vmatprep.subr.mxu0 %v2331_v62  ;;  %v2279_v57 = vld [vmem:[%s4657_s2 + $0x8] sm:$0xff]  ;;  %v2541_v61 = vld [vmem:[%s3953_s25 + $0xf8] sm:$0xff] }
 0x8fd   :  { %2438 = vmatpush1.msra.mxu1 %v2336_v0  ;;  %2369 = vmatpush1.msra.mxu0 %v2330_v2 }
 0x8fe   :  { %2439 = vmatprep.subr.mxu1 %v2333_v1  ;;  %2370 = vmatprep.subr.mxu0 %v2327_v4  ;;  %v3073_v1 = vpop.f32.mrf.mxu0 }
 0x8ff   :  { %2440 = vmatpush1.msra.mxu1 %v2332_v3  ;;  %2371 = vmatpush1.msra.mxu0 %v2326_v6 }
 0x900   :  { %2441 = vmatprep.subr.mxu1 %v2329_v5  ;;  %2372 = vmatprep.subr.mxu0 %v2323_v8  ;;  %v3074_v2 = vpop.f32.mrf.mxu0  ;;  %v2803_v8 = vld [vmem:[%s4658_s7] ss:$0 sm:$0xff] }
 0x901   :  { %2442 = vmatpush1.msra.mxu1 %v2328_v7  ;;  %2373 = vmatpush1.msra.mxu0 %v2322_v10  ;;  %v3075_v3 = vadd.f32 %v3074_v2, %v3073_v1  ;;  %v2513_v1 = vld [vmem:[%s3953_s25 + $0x18] sm:$0xff] }
 0x902   :  { %2443 = vmatprep.subr.mxu1 %v2325_v9  ;;  %2374 = vmatprep.subr.mxu0 %v2319_v12  ;;  %v2525_v12 = vld [vmem:[%s3953_s25 + $0x78] sm:$0xff] }
 0x903   :  { %2444 = vmatpush1.msra.mxu1 %v2324_v11  ;;  %2375 = vmatpush1.msra.mxu0 %v2318_v14  ;;  %v2540_v14 = vld [vmem:[%s3953_s25 + $0xf0] sm:$0xff]  ;;  %v2545_v2 = vld [vmem:[%s3953_s25 + $0x118] sm:$0xff] }
 0x904   :  { %2445 = vmatprep.subr.mxu1 %v2321_v13  ;;  %2376 = vmatprep.subr.mxu0 %v2315_v16  ;;  %v2557_v13 = vld [vmem:[%s3953_s25 + $0x178] sm:$0xff]  ;;  %v2524_v16 = vld [vmem:[%s3953_s25 + $0x70] sm:$0xff] }
 0x905   :  { %2446 = vmatpush1.msra.mxu1 %v2320_v15  ;;  %2377 = vmatpush1.msra.mxu0 %v2314_v18  ;;  %v2572_v15 = vld [vmem:[%s3953_s25 + $0x1f0] sm:$0xff]  ;;  %v2539_v18 = vld [vmem:[%s3953_s25 + $0xe8] sm:$0xff] }
 0x906   :  { %2447 = vmatprep.subr.mxu1 %v2317_v17  ;;  %2378 = vmatprep.subr.mxu0 %v2311_v20  ;;  %v2556_v17 = vld [vmem:[%s3953_s25 + $0x170] sm:$0xff]  ;;  %v2523_v20 = vld [vmem:[%s3953_s25 + $0x68] sm:$0xff] }
 0x907   :  { %2448 = vmatpush1.msra.mxu1 %v2316_v19  ;;  %2379 = vmatpush1.msra.mxu0 %v2310_v24  ;;  %v2571_v19 = vld [vmem:[%s3953_s25 + $0x1e8] sm:$0xff]  ;;  %v2538_v24 = vld [vmem:[%s3953_s25 + $0xe0] sm:$0xff] }
 0x908   :  { %2449 = vmatprep.subr.mxu1 %v2313_v23  ;;  %2380 = vmatprep.subr.mxu0 %v2307_v27  ;;  %v2555_v23 = vld [vmem:[%s3953_s25 + $0x168] sm:$0xff]  ;;  %v2522_v27 = vld [vmem:[%s3953_s25 + $0x60] sm:$0xff] }
 0x909   :  { %2450 = vmatpush1.msra.mxu1 %v2312_v25  ;;  %2381 = vmatpush1.msra.mxu0 %v2306_v31  ;;  %v2570_v25 = vld [vmem:[%s3953_s25 + $0x1e0] sm:$0xff]  ;;  %v2537_v31 = vld [vmem:[%s3953_s25 + $0xd8] sm:$0xff] }
 0x90a   :  { %2451 = vmatprep.subr.mxu1 %v2309_v30  ;;  %2382 = vmatprep.subr.mxu0 %v2303_v33  ;;  %v2554_v30 = vld [vmem:[%s3953_s25 + $0x160] sm:$0xff]  ;;  %v2521_v33 = vld [vmem:[%s3953_s25 + $0x58] sm:$0xff] }
 0x90b   :  { %2452 = vmatpush1.msra.mxu1 %v2308_v32  ;;  %2383 = vmatpush1.msra.mxu0 %v2302_v35  ;;  %v2569_v32 = vld [vmem:[%s3953_s25 + $0x1d8] sm:$0xff]  ;;  %v2536_v35 = vld [vmem:[%s3953_s25 + $0xd0] sm:$0xff] }
 0x90c   :  { %2453 = vmatprep.subr.mxu1 %v2305_v34  ;;  %2384 = vmatprep.subr.mxu0 %v2299_v38  ;;  %v2553_v34 = vld [vmem:[%s3953_s25 + $0x158] sm:$0xff]  ;;  %v2520_v38 = vld [vmem:[%s3953_s25 + $0x50] sm:$0xff] }
 0x90d   :  { %2454 = vmatpush1.msra.mxu1 %v2304_v37  ;;  %2385 = vmatpush1.msra.mxu0 %v2298_v39  ;;  %v2568_v37 = vld [vmem:[%s3953_s25 + $0x1d0] sm:$0xff]  ;;  %v2535_v39 = vld [vmem:[%s3953_s25 + $0xc8] sm:$0xff] }
 0x90e   :  { %2455 = vmatprep.subr.mxu1 %v2301_v36  ;;  %2386 = vmatprep.subr.mxu0 %v2295_v41  ;;  %v2552_v36 = vld [vmem:[%s3953_s25 + $0x150] sm:$0xff]  ;;  %v2519_v41 = vld [vmem:[%s3953_s25 + $0x48] sm:$0xff] }
 0x90f   :  { %2456 = vmatpush1.msra.mxu1 %v2300_v40  ;;  %2387 = vmatpush1.msra.mxu0 %v2294_v43  ;;  %v2567_v40 = vld [vmem:[%s3953_s25 + $0x1c8] sm:$0xff]  ;;  %v2534_v43 = vld [vmem:[%s3953_s25 + $0xc0] sm:$0xff] }
 0x910   :  { %2457 = vmatprep.subr.mxu1 %v2297_v42  ;;  %2388 = vmatprep.subr.mxu0 %v2291_v45  ;;  %v2551_v42 = vld [vmem:[%s3953_s25 + $0x148] sm:$0xff]  ;;  %v2518_v45 = vld [vmem:[%s3953_s25 + $0x40] sm:$0xff] }
 0x911   :  { %2458 = vmatpush1.msra.mxu1 %v2296_v44  ;;  %2389 = vmatpush1.msra.mxu0 %v2290_v47  ;;  %v2566_v44 = vld [vmem:[%s3953_s25 + $0x1c0] sm:$0xff]  ;;  %v2533_v47 = vld [vmem:[%s3953_s25 + $0xb8] sm:$0xff] }
 0x912   :  { %2459 = vmatprep.subr.mxu1 %v2293_v46  ;;  %2390 = vmatprep.subr.mxu0 %v2287_v49  ;;  %v2550_v46 = vld [vmem:[%s3953_s25 + $0x140] sm:$0xff]  ;;  %v2517_v49 = vld [vmem:[%s3953_s25 + $0x38] sm:$0xff] }
 0x913   :  { %2460 = vmatpush1.msra.mxu1 %v2292_v48  ;;  %2391 = vmatpush1.msra.mxu0 %v2286_v51  ;;  %v2565_v48 = vld [vmem:[%s3953_s25 + $0x1b8] sm:$0xff]  ;;  %v2532_v51 = vld [vmem:[%s3953_s25 + $0xb0] sm:$0xff] }
 0x914   :  { %2461 = vmatprep.subr.mxu1 %v2289_v50  ;;  %2392 = vmatprep.subr.mxu0 %v2283_v53  ;;  %v2549_v50 = vld [vmem:[%s3953_s25 + $0x138] sm:$0xff]  ;;  %v2516_v53 = vld [vmem:[%s3953_s25 + $0x30] sm:$0xff] }
 0x915   :  { %2462 = vmatpush1.msra.mxu1 %v2288_v52  ;;  %2393 = vmatpush1.msra.mxu0 %v2282_v55  ;;  %v2564_v52 = vld [vmem:[%s3953_s25 + $0x1b0] sm:$0xff]  ;;  %v2531_v55 = vld [vmem:[%s3953_s25 + $0xa8] sm:$0xff] }
 0x916   :  { %2463 = vmatprep.subr.mxu1 %v2285_v54  ;;  %2394 = vmatprep.subr.mxu0 %v2279_v57  ;;  %v2548_v54 = vld [vmem:[%s3953_s25 + $0x130] sm:$0xff]  ;;  %v2515_v57 = vld [vmem:[%s3953_s25 + $0x28] sm:$0xff] }
 0x917   :  { %2464 = vmatpush1.msra.mxu1 %v2284_v56  ;;  %2395 = vmatpush1.msra.mxu0 %v2278_v59  ;;  %v2563_v56 = vld [vmem:[%s3953_s25 + $0x1a8] sm:$0xff]  ;;  %v2530_v59 = vld [vmem:[%s3953_s25 + $0xa0] sm:$0xff] }
 0x918   :  { %2465 = vmatprep.subr.mxu1 %v2281_v58  ;;  %3111 = vmatprep.subr.mxu0 %v2541_v61  ;;  %v2547_v58 = vld [vmem:[%s3953_s25 + $0x128] sm:$0xff]  ;;  %v2514_v61 = vld [vmem:[%s3953_s25 + $0x20] sm:$0xff] }
 0x919   :  { %2466 = vmatpush1.msra.mxu1 %v2280_v60  ;;  %v2562_v60 = vld [vmem:[%s3953_s25 + $0x1a0] sm:$0xff] }
 0x91a   :  { %3146 = vmatprep.subr.mxu1 %v2573_v63  ;;  %v2546_v63 = vld [vmem:[%s3953_s25 + $0x120] sm:$0xff] }
 0x99a   :  { %v2103_v0 = vpop.f32.mrf.mxu1 }
 0x99b   :  { %v2196_v6 = vadd.f32 %v3075_v3, %v2103_v0  ;;  %v2529_v0 = vld [vmem:[%s3953_s25 + $0x98] sm:$0xff]  ;;  %v2528_v3 = vld [vmem:[%s3953_s25 + $0x90] sm:$0xff] }
 0x99c   :  { %v3649_v62 = vpop.f32.mrf.mxu1 }
 0x99d   :  { %v2561_v62 = vld [vmem:[%s3953_s25 + $0x198] sm:$0xff] }
 0x9ba   :  { %v3108_v4 = vpop.f32.mrf.mxu1 }
 0x9bc   :  { %v3109_v5 = vpop.f32.mrf.mxu1 }
 0x9bd   :  { %v3110_v7 = vadd.f32 %v3109_v5, %v3108_v4  ;;  %v2560_v4 = vld [vmem:[%s3953_s25 + $0x190] sm:$0xff] }
 0x9be   :  { %v2512_v5 = vld [vmem:[%s3953_s25 + $0x10] sm:$0xff] }
 0x9bf   :  { %v2266_v9 = vadd.f32 %v3110_v7, %v2196_v6  ;;  %v2544_v6 = vld [vmem:[%s3953_s25 + $0x110] sm:$0xff]  ;;  %v2527_v7 = vld [vmem:[%s3953_s25 + $0x88] sm:$0xff] }
 0x9c1   :  { %v2276_v10 = vadd.f32 %v2803_v8, %v2266_v9  ;;  %v2559_v8 = vld [vmem:[%s3953_s25 + $0x188] sm:$0xff] }
 0x9c2   :  { %v2511_v9 = vld [vmem:[%s3953_s25 + $0x8] sm:$0xff] }
 0x9c3   :  { %v2277_v11 = vmax.f32 %v2276_v10, 0.0  ;;  %v2543_v10 = vld [vmem:[%s3953_s25 + $0x108] sm:$0xff] }
 0x9c5   :  { %2429 = vmatmul.mubr.f32.vlgmr.msra.gmra.mxu0 %v2277_v11  ;;  %2500 = vmatmul.mubr.f32.vlgmr.msra.gmra.mxu1 %v2277_v11  ;;  %v2526_v11 = vld [vmem:[%s3953_s25 + $0x80] sm:$0xff] }
 0x9c6   :  { %3112 = vmatpush3.msra.mxu0 %v2525_v12  ;;  %3147 = vmatpush3.msra.mxu1 %v2557_v13  ;;  %v2558_v12 = vld [vmem:[%s3953_s25 + $0x180] sm:$0xff] }
 0x9c7   :  { %3113 = vmatprep.subr.mxu0 %v2540_v14  ;;  %3148 = vmatprep.subr.mxu1 %v2572_v15  ;;  %v2510_v13 = vld [vmem:[%s3953_s25] sm:$0xff] }
 0x9c8   :  { %3114 = vmatpush3.msra.mxu0 %v2524_v16  ;;  %3149 = vmatpush3.msra.mxu1 %v2556_v17  ;;  %v2542_v14 = vld [vmem:[%s3953_s25 + $0x100] sm:$0xff]  ;;  %s3774_s25 = smov [#allocation2]  }
 0x9c9   :  { %3115 = vmatprep.subr.mxu0 %v2539_v18  ;;  %3150 = vmatprep.subr.mxu1 %v2571_v19  ;;  %v2342_v15 = vld [vmem:[%s3948_s27] sm:$0xf]  ;;  %s2728_s27 = sshll.u32 %s3774_s25, 4  ;;  %s2729_s27 = int_to_ptr.vmem [resolvable:$true] %s2728_s27 }
 0x9ca   :  { %3116 = vmatpush3.msra.mxu0 %v2523_v20  ;;  %3151 = vmatpush3.msra.mxu1 %v2555_v23  ;;  %v2347_v16 = vrot.slane %v2342_v15, %v178_v22  ;;  %v2355_v17 = vrot.slane %v2342_v15, %v230_v28  ;;  %v2351_v18 = vrot.slane %v2342_v15, %v202_v26  ;;  %v2804_v28 = vld [vmem:[%s3958_s13] ss:$0 sm:$0xff]  ;;  %s3709_s10 = scalar_lea.vmem %s2729_s27, 32  ;;  %p3714_p1 = scmp.lt.s32.totalorder %s2729_s27, %s2729_s27 }
 0x9cb   :  { %3117 = vmatprep.subr.mxu0 %v2538_v24  ;;  %3152 = vmatprep.subr.mxu1 %v2570_v25  ;;  %v2359_v19 = vrot.slane %v2342_v15, %v258_v29  ;;  %p3710_p0 = scmp.ne.s32.totalorder %s2729_s27, %s3709_s10  ;;  %p3715_p2 = scmp.lt.s32.totalorder %s3709_s10, %s3709_s10 }
 0x9cc   :  { %3118 = vmatpush3.msra.mxu0 %v2522_v27  ;;  %3153 = vmatpush3.msra.mxu1 %v2554_v30 }
 0x9cd   :  { %3119 = vmatprep.subr.mxu0 %v2537_v31  ;;  %3154 = vmatprep.subr.mxu1 %v2569_v32  ;;  %p3716_p3 = por %p3715_p2, %p3714_p1 }
 0x9ce   :  { %3120 = vmatpush3.msra.mxu0 %v2521_v33  ;;  %3155 = vmatpush3.msra.mxu1 %v2553_v34 }
 0x9cf   :  { %3121 = vmatprep.subr.mxu0 %v2536_v35  ;;  %3156 = vmatprep.subr.mxu1 %v2568_v37  ;;  %p3717_p4 = pnand %p3716_p3, %p3710_p0 }
 0x9d0   :  { %3122 = vmatpush3.msra.mxu0 %v2520_v38  ;;  %3157 = vmatpush3.msra.mxu1 %v2552_v36 }
 0x9d1   :  { %3123 = vmatprep.subr.mxu0 %v2535_v39  ;;  %3158 = vmatprep.subr.mxu1 %v2567_v40 }
 0x9d2   :  { %3124 = vmatpush3.msra.mxu0 %v2519_v41  ;;  %3159 = vmatpush3.msra.mxu1 %v2551_v42 }
 0x9d3   :  { %3125 = vmatprep.subr.mxu0 %v2534_v43  ;;  %3160 = vmatprep.subr.mxu1 %v2566_v44 }
 0x9d4   :  { %3126 = vmatpush3.msra.mxu0 %v2518_v45  ;;  %3161 = vmatpush3.msra.mxu1 %v2550_v46 }
 0x9d5   :  { %3127 = vmatprep.subr.mxu0 %v2533_v47  ;;  %3162 = vmatprep.subr.mxu1 %v2565_v48 }
 0x9d6   :  { %3128 = vmatpush3.msra.mxu0 %v2517_v49  ;;  %3163 = vmatpush3.msra.mxu1 %v2549_v50 }
 0x9d7   :  { %3129 = vmatprep.subr.mxu0 %v2532_v51  ;;  %3164 = vmatprep.subr.mxu1 %v2564_v52 }
 0x9d8   :  { %3130 = vmatpush3.msra.mxu0 %v2516_v53  ;;  %3165 = vmatpush3.msra.mxu1 %v2548_v54 }
 0x9d9   :  { %3131 = vmatprep.subr.mxu0 %v2531_v55  ;;  %3166 = vmatprep.subr.mxu1 %v2563_v56 }
 0x9da   :  { %3132 = vmatpush3.msra.mxu0 %v2515_v57  ;;  %3167 = vmatpush3.msra.mxu1 %v2547_v58 }
 0x9db   :  { %3133 = vmatprep.subr.mxu0 %v2530_v59  ;;  %3168 = vmatprep.subr.mxu1 %v2562_v60 }
 0x9dc   :  { %3134 = vmatpush3.msra.mxu0 %v2514_v61  ;;  %3169 = vmatpush3.msra.mxu1 %v2546_v63 }
 0x9dd   :  { %3135 = vmatprep.subr.mxu0 %v2529_v0  ;;  %3170 = vmatprep.subr.mxu1 %v2561_v62 }
 0x9de   :  { %3136 = vmatpush3.msra.mxu0 %v2513_v1  ;;  %3171 = vmatpush3.msra.mxu1 %v2545_v2 }
 0x9df   :  { %3137 = vmatprep.subr.mxu0 %v2528_v3  ;;  %3172 = vmatprep.subr.mxu1 %v2560_v4 }
 0x9e0   :  { %3138 = vmatpush3.msra.mxu0 %v2512_v5  ;;  %3173 = vmatpush3.msra.mxu1 %v2544_v6 }
 0x9e1   :  { %3139 = vmatprep.subr.mxu0 %v2527_v7  ;;  %3174 = vmatprep.subr.mxu1 %v2559_v8 }
 0x9e2   :  { %3140 = vmatpush3.msra.mxu0 %v2511_v9  ;;  %3175 = vmatpush3.msra.mxu1 %v2543_v10 }
 0x9e3   :  { %3141 = vmatprep.subr.mxu0 %v2526_v11  ;;  %3176 = vmatprep.subr.mxu1 %v2558_v12 }
 0x9e4   :  { %3142 = vmatpush3.msra.mxu0 %v2510_v13  ;;  %3177 = vmatpush3.msra.mxu1 %v2542_v14 }
 0xa85   :  { %v2430_v20 = vpop.f32.mrf.mxu0  ;;  %v2501_v23 = vpop.f32.mrf.mxu1 }
 0xa86   :  { %v2431_v24 = vadd.f32 %v2430_v20, %v2347_v16  ;;  %v2502_v25 = vadd.f32 %v2501_v23, %v2355_v17 }
 0xa87   :  { %v2432_v27 = vpop.f32.mrf.mxu0  ;;  %v2503_v30 = vpop.f32.mrf.mxu1 }
 0xa88   :  { %v2433_v31 = vadd.f32 %v2432_v27, %v2351_v18  ;;  %v2504_v32 = vadd.f32 %v2503_v30, %v2359_v19  ;;  %v2506_v34 = vmax.f32 %v2431_v24, 0.0  ;;  %v2508_v35 = vmax.f32 %v2502_v25, 0.0 }
 0xa8a   :  { %v2507_v33 = vmax.f32 %v2433_v31, 0.0  ;;  %v2509_v22 = vmax.f32 %v2504_v32, 0.0 }
 0xa8c   :  { %2645 = vmatprep.mubr.f32.mxu0 %v2507_v33  ;;  %2715 = vmatprep.mubr.f32.mxu1 %v2509_v22 }
 0xa8d   :  { %2646 = vmatmul.mubr.f32.vlgmr.msra.gmra.mxu0 %v2506_v34  ;;  %2716 = vmatmul.mubr.f32.vlgmr.msra.gmra.mxu1 %v2508_v35 }
 0xb4d   :  { %v3143_v26 = vpop.f32.mrf.mxu0  ;;  %v3178_v21 = vpop.f32.mrf.mxu1 }
 0xb4f   :  { %v3144_v29 = vpop.f32.mrf.mxu0  ;;  %v3179_v37 = vpop.f32.mrf.mxu1 }
 0xb50   :  { %v3145_v38 = vadd.f32 %v3144_v29, %v3143_v26  ;;  %v3180_v39 = vadd.f32 %v3179_v37, %v3178_v21 }
 0xb52   :  { %v2648_v36 = vadd.f32 %v3145_v38, %v2804_v28 }
 0xb54   :  { %v2718_v40 = vadd.f32 %v3180_v39, %v2648_v36 }
 0xb56   :  { %2721 = vst [vmem:[#allocation2] sm:$0x3] %v2718_v40 }
 0xb57   :  { %3720 = shalt.err (!%p3717_p4)
}
 0xb58   :  { %2731 = dma.vmem_to_hbm [thread:$0]  %s2729_s27, 32, %s3963_s21, [#allocation3]  }
 0xb59   :  { %3729 = dma.done.wait [#allocation3], 32  }
 0xb5a   :  { %3730 = vsyncadd [#allocation3], 4294967264 }
 0xb5b   :  { %2735 = vsyncpa [#allocation3], 1 }

</bundles_post_ra>
